<compile_context>
chip_gen: v5e
topology: v5e:2x2
jax: 0.10.0
libtpu: 0.0.40
codegen_flags: <defaults>
</compile_context>

<pallas_src>
import math

import jax
import jax.numpy as jnp
from jax.experimental import pallas as pl
from jax.experimental.pallas import tpu as pltpu

LATENT_DIM = 512
NUM_LAYERS = 4                     # EqualLinear layers per Mapper
LR_MUL = 0.01
NEG_SLOPE = 0.2
ACT_SCALE = math.sqrt(2.0)         # fused_leaky_relu scale
W_SCALE = (1.0 / math.sqrt(LATENT_DIM)) * LR_MUL   # EqualLinear weight scale
GROUPS = ("coarse", "medium", "fine")


# ------------------------------ Pallas kernel --------------------------------
def _make_mapper_kernel(batch, maxl, counts):
    """counts[g] = number of valid style rows of group g (remaining rows are zero pad)."""
    inv_counts = [1.0 / float(c) for c in counts]

    def kernel(x_ref, w_ref, b_ref, o_ref):
        # x_ref: (batch*maxl, D) f32     w_ref: (NUM_LAYERS, D, D) bf16
        # b_ref: (NUM_LAYERS, 1, D) f32  o_ref: (batch*maxl, D) f32
        g = pl.program_id(0)           # mapper group (coarse / medium / fine)

        # --- PixelNorm: mean of x^2 over dim=1 (style rows), per batch ---------
        # 1/num_valid_rows for this group (padded rows are zero -> only the
        # divisor matters).
        inv_n = jnp.float32(inv_counts[-1])
        for gi in range(len(inv_counts) - 1):
            inv_n = jnp.where(g == gi, jnp.float32(inv_counts[gi]), inv_n)

        x = x_ref[...].astype(jnp.float32)               # (batch*maxl, D)
        parts = []
        for bb in range(batch):                          # static unroll over batch
            rows = x[bb * maxl:(bb + 1) * maxl, :]       # (maxl, D), 8-aligned slice
            ms = jnp.sum(rows * rows, axis=0, keepdims=True) * inv_n   # (1, D)
            parts.append(rows * jax.lax.rsqrt(ms + 1e-8))
        h = parts[0] if batch == 1 else jnp.concatenate(parts, axis=0)

        b_all = b_ref[...]                               # (NUM_LAYERS, 1, D) f32

        # --- 4x EqualLinear (scale/lr_mul pre-folded) + fused leaky-relu --------
        # Activation stays in vregs for the whole layer loop.
        for l in range(NUM_LAYERS):                      # static unroll
            y = jnp.dot(h.astype(jnp.bfloat16), w_ref[l],    # bf16 MXU, f32 accum
                        preferred_element_type=jnp.float32)
            y = y + b_all[l]                             # (1, D) broadcast
            h = jnp.where(y >= 0.0, y, NEG_SLOPE * y) * ACT_SCALE

        o_ref[...] = h.astype(o_ref.dtype)

    return kernel


def _run_fused_mappers(x_groups, w_stack, b_stack, batch, maxl, counts):
    G, rows, D = x_groups.shape
    kernel = _make_mapper_kernel(batch, maxl, counts)
    return pl.pallas_call(
        kernel,
        out_shape=jax.ShapeDtypeStruct((G, rows, D), x_groups.dtype),
        grid=(G,),
        in_specs=[
            # latents for this group: (rows, 512)
            pl.BlockSpec((None, rows, D), lambda g: (g, 0, 0)),
            # all 4 layer weights for this group in one ~2 MiB bf16 block
            pl.BlockSpec((None, NUM_LAYERS, D, D), lambda g: (g, 0, 0, 0)),
            # all 4 biases for this group in one block
            pl.BlockSpec((None, NUM_LAYERS, 1, D), lambda g: (g, 0, 0, 0)),
        ],
        out_specs=pl.BlockSpec((None, rows, D), lambda g: (g, 0, 0)),
        compiler_params=pltpu.CompilerParams(
            dimension_semantics=("parallel",)),
    )(x_groups, w_stack, b_stack)


# ------------------------------ parameters -----------------------------------
def init_mapper_params(key):
    """Raw params mirroring torch __init__: weight = randn(out,in)/lr_mul, bias = zeros."""
    w = jax.random.normal(key, (NUM_LAYERS, LATENT_DIM, LATENT_DIM), jnp.float32) / LR_MUL
    b = jnp.zeros((NUM_LAYERS, LATENT_DIM), jnp.float32)
    return w, b


def prepare_levels_mapper_params(raw_params, opts):
    """One-time folding: transpose weights to (in,out), fold the EqualLinear scale
    into bf16 weights and lr_mul into the f32 biases, stack enabled groups."""
    names = [n for n in GROUPS if not opts[f"no_{n}_mapper"]]
    if not names:
        return names, None, None
    w_stack = jnp.stack([
        (jnp.transpose(raw_params[n][0], (0, 2, 1)) * W_SCALE).astype(jnp.bfloat16)
        for n in names])                                     # (G, 4, 512, 512) bf16
    b_stack = jnp.stack([
        (raw_params[n][1] * LR_MUL).reshape(NUM_LAYERS, 1, LATENT_DIM)
        for n in names])                                     # (G, 4, 1, 512) f32
    return names, w_stack, b_stack


# -------------------------------- forward -------------------------------------
def levels_mapper_forward(x, prepared, opts):
    names, w_stack, b_stack = prepared
    B, S, D = x.shape
    slices = {"coarse": x[:, 0:4, :], "medium": x[:, 4:8, :], "fine": x[:, 8:, :]}

    out_groups = None
    if names:
        counts = tuple(int(slices[n].shape[1]) for n in names)
        maxl = -(-max(counts) // 8) * 8            # pad group length to 8 sublanes
        x_groups = jnp.stack([
            jnp.pad(slices[n],
                    ((0, 0), (0, maxl - slices[n].shape[1]), (0, 0))
                    ).reshape(B * maxl, D)
            for n in names])                       # (G, B*maxl, 512), lane-dense
        out_flat = _run_fused_mappers(x_groups, w_stack, b_stack, B, maxl, counts)
        out_groups = out_flat.reshape(len(names), B, maxl, D)

    outs, gi = [], 0
    for n in GROUPS:
        if opts[f"no_{n}_mapper"]:
            outs.append(jnp.zeros_like(slices[n]))
        else:
            outs.append(out_groups[gi, :, :slices[n].shape[1], :])
            gi += 1
    return jnp.concatenate(outs, axis=1)


# ---------------- pure-JAX reference (original f32 semantics) -----------------
def _mapper_ref(x, w, b):
    ms = jnp.mean(x * x, axis=1, keepdims=True)              # torch PixelNorm, dim=1
    h = x * jax.lax.rsqrt(ms + 1e-8)
    for i in range(NUM_LAYERS):
        y = jnp.einsum("bld,od->blo", h, w[i] * W_SCALE) + b[i] * LR_MUL
        h = jnp.where(y >= 0.0, y, NEG_SLOPE * y) * ACT_SCALE
    return h


if __name__ == "__main__":
    key = jax.random.PRNGKey(0)
    kx, kc, km, kf = jax.random.split(key, 4)

    B, N_STYLES = 2, 18                            # W+ latent: (B, 18, 512)
    x = jax.random.normal(kx, (B, N_STYLES, LATENT_DIM), jnp.float32)

    opts = {"no_coarse_mapper": False, "no_medium_mapper": False, "no_fine_mapper": False}
    raw_params = {
        "coarse": init_mapper_params(kc),
        "medium": init_mapper_params(km),
        "fine": init_mapper_params(kf),
    }

    names, w_stack, b_stack = prepare_levels_mapper_params(raw_params, opts)

    @jax.jit
    def forward(latents, ws, bs):
        return levels_mapper_forward(latents, (names, ws, bs), opts)

    out = jax.block_until_ready(forward(x, w_stack, b_stack))
    assert out.shape == (B, N_STYLES, LATENT_DIM), out.shape

    ref_parts = []
    for n, sl in (("coarse", x[:, :4]), ("medium", x[:, 4:8]), ("fine", x[:, 8:])):
        if opts[f"no_{n}_mapper"]:
            ref_parts.append(jnp.zeros_like(sl))
        else:
            ref_parts.append(_mapper_ref(sl, *raw_params[n]))
    ref = jnp.concatenate(ref_parts, axis=1)

    max_err = float(jnp.max(jnp.abs(out - ref)))
    assert jnp.allclose(out, ref, rtol=3e-2, atol=3e-2), f"max abs err = {max_err}"

    print("KERNEL_OK")
</pallas_src>

<mosaic_0001>
module attributes {stable_mosaic.version = 11 : i64} {
  func.func @kernel(%arg0: i32, %arg1: memref<1x32x512xf32, #tpu.memory_space<vmem>>, %arg2: memref<1x4x512x512xbf16, #tpu.memory_space<vmem>>, %arg3: memref<1x4x1x512xf32, #tpu.memory_space<vmem>>, %arg4: memref<1x32x512xf32, #tpu.memory_space<vmem>>) attributes {dimension_semantics = [#tpu.dimension_semantics<parallel>], iteration_bounds = array<i64: 3>, scalar_prefetch = 0 : i64, scratch_operands = 0 : i64, tpu.core_type = #tpu.core_type<tc>, window_params = [{transform_indices = @transform_0, window_bounds = array<i64: 1, 32, 512>}, {transform_indices = @transform_1, window_bounds = array<i64: 1, 4, 512, 512>}, {transform_indices = @transform_2, window_bounds = array<i64: 1, 4, 1, 512>}, {transform_indices = @transform_3, window_bounds = array<i64: 1, 32, 512>}]} {
    %c0_i32 = arith.constant 0 : i32
    %0 = arith.cmpi eq, %arg0, %c0_i32 : i32
    %cst = arith.constant 2.500000e-01 : f32
    %cst_0 = arith.constant 1.000000e-01 : f32
    %1 = arith.select %0, %cst, %cst_0 : f32
    %c1_i32 = arith.constant 1 : i32
    %2 = arith.cmpi eq, %arg0, %c1_i32 : i32
    %cst_1 = arith.constant 2.500000e-01 : f32
    %3 = arith.select %2, %cst_1, %1 : f32
    %c0 = arith.constant 0 : index
    %c0_2 = arith.constant 0 : index
    %c0_3 = arith.constant 0 : index
    %4 = vector.load %arg1[%c0, %c0_2, %c0_3] : memref<1x32x512xf32, #tpu.memory_space<vmem>>, vector<1x32x512xf32>
    %5 = vector.shape_cast %4 : vector<1x32x512xf32> to vector<32x512xf32>
    %6 = vector.extract_strided_slice %5 {offsets = [0, 0], sizes = [16, 512], strides = [1, 1]} : vector<32x512xf32> to vector<16x512xf32>
    %7 = arith.mulf %6, %6 : vector<16x512xf32>
    %cst_4 = arith.constant dense<0.000000e+00> : vector<512xf32>
    %8 = vector.multi_reduction <add>, %7, %cst_4 [0] : vector<16x512xf32> to vector<512xf32>
    %9 = vector.shape_cast %8 : vector<512xf32> to vector<1x512xf32>
    %10 = vector.broadcast %3 : f32 to vector<1x512xf32>
    %11 = arith.mulf %9, %10 : vector<1x512xf32>
    %cst_5 = arith.constant 9.99999993E-9 : f32
    %12 = vector.broadcast %cst_5 : f32 to vector<1x512xf32>
    %13 = arith.addf %11, %12 : vector<1x512xf32>
    %14 = math.rsqrt %13 : vector<1x512xf32>
    %15 = vector.broadcast %14 : vector<1x512xf32> to vector<16x512xf32>
    %16 = arith.mulf %6, %15 : vector<16x512xf32>
    %17 = vector.extract_strided_slice %5 {offsets = [16, 0], sizes = [16, 512], strides = [1, 1]} : vector<32x512xf32> to vector<16x512xf32>
    %18 = arith.mulf %17, %17 : vector<16x512xf32>
    %cst_6 = arith.constant dense<0.000000e+00> : vector<512xf32>
    %19 = vector.multi_reduction <add>, %18, %cst_6 [0] : vector<16x512xf32> to vector<512xf32>
    %20 = vector.shape_cast %19 : vector<512xf32> to vector<1x512xf32>
    %21 = vector.broadcast %3 : f32 to vector<1x512xf32>
    %22 = arith.mulf %20, %21 : vector<1x512xf32>
    %cst_7 = arith.constant 9.99999993E-9 : f32
    %23 = vector.broadcast %cst_7 : f32 to vector<1x512xf32>
    %24 = arith.addf %22, %23 : vector<1x512xf32>
    %25 = math.rsqrt %24 : vector<1x512xf32>
    %26 = vector.broadcast %25 : vector<1x512xf32> to vector<16x512xf32>
    %27 = arith.mulf %17, %26 : vector<16x512xf32>
    %28 = tpu.concatenate %16, %27 in 0 : vector<16x512xf32>, vector<16x512xf32> -> vector<32x512xf32>
    %c0_8 = arith.constant 0 : index
    %c0_9 = arith.constant 0 : index
    %c0_10 = arith.constant 0 : index
    %c0_11 = arith.constant 0 : index
    %29 = vector.load %arg3[%c0_8, %c0_9, %c0_10, %c0_11] : memref<1x4x1x512xf32, #tpu.memory_space<vmem>>, vector<1x4x1x512xf32>
    %30 = vector.shape_cast %29 : vector<1x4x1x512xf32> to vector<4x1x512xf32>
    %31 = arith.truncf %28 : vector<32x512xf32> to vector<32x512xbf16>
    %c0_12 = arith.constant 0 : index
    %c0_13 = arith.constant 0 : index
    %c0_14 = arith.constant 0 : index
    %c0_15 = arith.constant 0 : index
    %32 = vector.load %arg2[%c0_12, %c0_13, %c0_14, %c0_15] : memref<1x4x512x512xbf16, #tpu.memory_space<vmem>>, vector<1x1x512x512xbf16>
    %33 = vector.shape_cast %32 : vector<1x1x512x512xbf16> to vector<512x512xbf16>
    %cst_16 = arith.constant dense<0.000000e+00> : vector<32x512xf32>
    %34 = tpu.matmul %31, %33, %cst_16 {dimension_numbers = #tpu.dot_dimension_numbers<[1], [0], [0], [1], [0, 0, 1, 1], [], []>} : vector<32x512xbf16>, vector<512x512xbf16>, vector<32x512xf32> -> vector<32x512xf32>
    %35 = vector.extract_strided_slice %30 {offsets = [0, 0, 0], sizes = [1, 1, 512], strides = [1, 1, 1]} : vector<4x1x512xf32> to vector<1x1x512xf32>
    %36 = vector.shape_cast %35 : vector<1x1x512xf32> to vector<1x512xf32>
    %37 = vector.broadcast %36 : vector<1x512xf32> to vector<32x512xf32>
    %38 = arith.addf %34, %37 : vector<32x512xf32>
    %cst_17 = arith.constant 0.000000e+00 : f32
    %39 = vector.broadcast %cst_17 : f32 to vector<32x512xf32>
    %40 = arith.cmpf oge, %38, %39 : vector<32x512xf32>
    %cst_18 = arith.constant 2.000000e-01 : f32
    %41 = vector.broadcast %cst_18 : f32 to vector<32x512xf32>
    %42 = arith.mulf %41, %38 : vector<32x512xf32>
    %43 = arith.select %40, %38, %42 : vector<32x512xi1>, vector<32x512xf32>
    %cst_19 = arith.constant 1.41421354 : f32
    %44 = vector.broadcast %cst_19 : f32 to vector<32x512xf32>
    %45 = arith.mulf %43, %44 : vector<32x512xf32>
    %46 = arith.truncf %45 : vector<32x512xf32> to vector<32x512xbf16>
    %c0_20 = arith.constant 0 : index
    %c1 = arith.constant 1 : index
    %c0_21 = arith.constant 0 : index
    %c0_22 = arith.constant 0 : index
    %47 = vector.load %arg2[%c0_20, %c1, %c0_21, %c0_22] : memref<1x4x512x512xbf16, #tpu.memory_space<vmem>>, vector<1x1x512x512xbf16>
    %48 = vector.shape_cast %47 : vector<1x1x512x512xbf16> to vector<512x512xbf16>
    %cst_23 = arith.constant dense<0.000000e+00> : vector<32x512xf32>
    %49 = tpu.matmul %46, %48, %cst_23 {dimension_numbers = #tpu.dot_dimension_numbers<[1], [0], [0], [1], [0, 0, 1, 1], [], []>} : vector<32x512xbf16>, vector<512x512xbf16>, vector<32x512xf32> -> vector<32x512xf32>
    %50 = vector.extract_strided_slice %30 {offsets = [1, 0, 0], sizes = [1, 1, 512], strides = [1, 1, 1]} : vector<4x1x512xf32> to vector<1x1x512xf32>
    %51 = vector.shape_cast %50 : vector<1x1x512xf32> to vector<1x512xf32>
    %52 = vector.broadcast %51 : vector<1x512xf32> to vector<32x512xf32>
    %53 = arith.addf %49, %52 : vector<32x512xf32>
    %cst_24 = arith.constant 0.000000e+00 : f32
    %54 = vector.broadcast %cst_24 : f32 to vector<32x512xf32>
    %55 = arith.cmpf oge, %53, %54 : vector<32x512xf32>
    %cst_25 = arith.constant 2.000000e-01 : f32
    %56 = vector.broadcast %cst_25 : f32 to vector<32x512xf32>
    %57 = arith.mulf %56, %53 : vector<32x512xf32>
    %58 = arith.select %55, %53, %57 : vector<32x512xi1>, vector<32x512xf32>
    %cst_26 = arith.constant 1.41421354 : f32
    %59 = vector.broadcast %cst_26 : f32 to vector<32x512xf32>
    %60 = arith.mulf %58, %59 : vector<32x512xf32>
    %61 = arith.truncf %60 : vector<32x512xf32> to vector<32x512xbf16>
    %c0_27 = arith.constant 0 : index
    %c2 = arith.constant 2 : index
    %c0_28 = arith.constant 0 : index
    %c0_29 = arith.constant 0 : index
    %62 = vector.load %arg2[%c0_27, %c2, %c0_28, %c0_29] : memref<1x4x512x512xbf16, #tpu.memory_space<vmem>>, vector<1x1x512x512xbf16>
    %63 = vector.shape_cast %62 : vector<1x1x512x512xbf16> to vector<512x512xbf16>
    %cst_30 = arith.constant dense<0.000000e+00> : vector<32x512xf32>
    %64 = tpu.matmul %61, %63, %cst_30 {dimension_numbers = #tpu.dot_dimension_numbers<[1], [0], [0], [1], [0, 0, 1, 1], [], []>} : vector<32x512xbf16>, vector<512x512xbf16>, vector<32x512xf32> -> vector<32x512xf32>
    %65 = vector.extract_strided_slice %30 {offsets = [2, 0, 0], sizes = [1, 1, 512], strides = [1, 1, 1]} : vector<4x1x512xf32> to vector<1x1x512xf32>
    %66 = vector.shape_cast %65 : vector<1x1x512xf32> to vector<1x512xf32>
    %67 = vector.broadcast %66 : vector<1x512xf32> to vector<32x512xf32>
    %68 = arith.addf %64, %67 : vector<32x512xf32>
    %cst_31 = arith.constant 0.000000e+00 : f32
    %69 = vector.broadcast %cst_31 : f32 to vector<32x512xf32>
    %70 = arith.cmpf oge, %68, %69 : vector<32x512xf32>
    %cst_32 = arith.constant 2.000000e-01 : f32
    %71 = vector.broadcast %cst_32 : f32 to vector<32x512xf32>
    %72 = arith.mulf %71, %68 : vector<32x512xf32>
    %73 = arith.select %70, %68, %72 : vector<32x512xi1>, vector<32x512xf32>
    %cst_33 = arith.constant 1.41421354 : f32
    %74 = vector.broadcast %cst_33 : f32 to vector<32x512xf32>
    %75 = arith.mulf %73, %74 : vector<32x512xf32>
    %76 = arith.truncf %75 : vector<32x512xf32> to vector<32x512xbf16>
    %c0_34 = arith.constant 0 : index
    %c3 = arith.constant 3 : index
    %c0_35 = arith.constant 0 : index
    %c0_36 = arith.constant 0 : index
    %77 = vector.load %arg2[%c0_34, %c3, %c0_35, %c0_36] : memref<1x4x512x512xbf16, #tpu.memory_space<vmem>>, vector<1x1x512x512xbf16>
    %78 = vector.shape_cast %77 : vector<1x1x512x512xbf16> to vector<512x512xbf16>
    %cst_37 = arith.constant dense<0.000000e+00> : vector<32x512xf32>
    %79 = tpu.matmul %76, %78, %cst_37 {dimension_numbers = #tpu.dot_dimension_numbers<[1], [0], [0], [1], [0, 0, 1, 1], [], []>} : vector<32x512xbf16>, vector<512x512xbf16>, vector<32x512xf32> -> vector<32x512xf32>
    %80 = vector.extract_strided_slice %30 {offsets = [3, 0, 0], sizes = [1, 1, 512], strides = [1, 1, 1]} : vector<4x1x512xf32> to vector<1x1x512xf32>
    %81 = vector.shape_cast %80 : vector<1x1x512xf32> to vector<1x512xf32>
    %82 = vector.broadcast %81 : vector<1x512xf32> to vector<32x512xf32>
    %83 = arith.addf %79, %82 : vector<32x512xf32>
    %cst_38 = arith.constant 0.000000e+00 : f32
    %84 = vector.broadcast %cst_38 : f32 to vector<32x512xf32>
    %85 = arith.cmpf oge, %83, %84 : vector<32x512xf32>
    %cst_39 = arith.constant 2.000000e-01 : f32
    %86 = vector.broadcast %cst_39 : f32 to vector<32x512xf32>
    %87 = arith.mulf %86, %83 : vector<32x512xf32>
    %88 = arith.select %85, %83, %87 : vector<32x512xi1>, vector<32x512xf32>
    %cst_40 = arith.constant 1.41421354 : f32
    %89 = vector.broadcast %cst_40 : f32 to vector<32x512xf32>
    %90 = arith.mulf %88, %89 : vector<32x512xf32>
    %c0_41 = arith.constant 0 : index
    %c0_42 = arith.constant 0 : index
    %c0_43 = arith.constant 0 : index
    %91 = vector.load %arg4[%c0_41, %c0_42, %c0_43] : memref<1x32x512xf32, #tpu.memory_space<vmem>>, vector<1x32x512xf32>
    %92 = vector.shape_cast %91 : vector<1x32x512xf32> to vector<32x512xf32>
    %93 = vector.shape_cast %90 : vector<32x512xf32> to vector<1x32x512xf32>
    tpu.vector_store %arg4[%c0_41, %c0_42, %c0_43], %93 {strides = array<i32>} : memref<1x32x512xf32, #tpu.memory_space<vmem>>, vector<1x32x512xf32>,
    return
  }
  func.func @transform_0(%arg0: i32) -> (i32, i32, i32) {
    %c0_i32 = arith.constant 0 : i32
    %c0_i32_0 = arith.constant 0 : i32
    %c0_i32_1 = arith.constant 0 : i32
    return %arg0, %c0_i32, %c0_i32_0 : i32, i32, i32
  }
  func.func @transform_1(%arg0: i32) -> (i32, i32, i32, i32) {
    %c0_i32 = arith.constant 0 : i32
    %c0_i32_0 = arith.constant 0 : i32
    %c0_i32_1 = arith.constant 0 : i32
    %c0_i32_2 = arith.constant 0 : i32
    return %arg0, %c0_i32, %c0_i32_0, %c0_i32_1 : i32, i32, i32, i32
  }
  func.func @transform_2(%arg0: i32) -> (i32, i32, i32, i32) {
    %c0_i32 = arith.constant 0 : i32
    %c0_i32_0 = arith.constant 0 : i32
    %c0_i32_1 = arith.constant 0 : i32
    %c0_i32_2 = arith.constant 0 : i32
    return %arg0, %c0_i32, %c0_i32_0, %c0_i32_1 : i32, i32, i32, i32
  }
  func.func @transform_3(%arg0: i32) -> (i32, i32, i32) {
    %c0_i32 = arith.constant 0 : i32
    %c0_i32_0 = arith.constant 0 : i32
    %c0_i32_1 = arith.constant 0 : i32
    return %arg0, %c0_i32, %c0_i32_0 : i32, i32, i32
  }
}

</mosaic_0001>

<bundles_post_ra>
// kernel: forward.1
= control target key start
LH: loop header
LB: loop body
LE: loop exit
PB: predicated region body
PF: predicated region fallthrough
CT: control target
= control target key end

     0   :  { %8 = vsyncpa [#allocation3], 0  ;;  %s10341_s0 = inlined_call_operand.vmem [shape: f32[3,32,512], index: 0, kind: input, shape index: {}]   ;;  %s10342_s1 = inlined_call_operand.hbm [shape: bf16[3,4,512,512], index: 1, kind: input, shape index: {}]   ;;  %s10343_s2 = inlined_call_operand.hbm [shape: f32[3,4,1,512], index: 2, kind: input, shape index: {}]   ;;  %s10344_s3 = inlined_call_operand.vmem [shape: f32[3,32,512], index: 3, kind: output, shape index: {}]  }
   0x1   :  { %10 = vsyncpa [#allocation3 + $0x1], 0 }
   0x2   :  { %11 = vsyncpa [#allocation5], 0 }
   0x3   :  { %13 = vsyncpa [#allocation5 + $0x1], 0  ;;  %s8348_s12 = smov 0   ;;  %s8350_s13 = smov 0  }
   0x4   :  { %s8352_s14 = smov 0   ;;  %s8354_s15 = smov 0  }
   0x5 LB: > { %s8367_s16 = sadd.s32 4294967295, %s8322_s15   ;;  %s8370_s17 = sadd.s32 1, %s8322_s15   ;;  %s8322_s15 = sphi %s8354_s15, %s10360_s15   ;;  %s8318_s14 = sphi %s8352_s14, %s10359_s14   ;;  %s8314_s13 = sphi %s8350_s13, %s10358_s13   ;;  %s8310_s12 = sphi %s8348_s12, %s10357_s12  }
   0x6   : > { %s49_s18 = ssub.s32 %s8322_s15, %s8370_s17  ;;  %s52_s19 = sadd.s32 1, %s8318_s14 }
   0x7   : > { %p50_p0 = scmp.eq.s32.totalorder %s49_s18, 0  ;;  %p59_p1 = scmp.ne.s32.totalorder %s8318_s14, %s8314_s13 }
   0x8   : > { %p60_p2 = scmp.eq.s32.totalorder %s8322_s15, 0  ;;  %p65_p3 = scmp.ne.s32.totalorder %s8314_s13, %s8310_s12 }
   0x9   : > { %s8380_s20 = scalar_select %p50_p0, %s8318_s14, %s52_s19  }
   0xa   : > { %p8382_p4 = por %p60_p2, %p59_p1  ;;  %p66_p5 = scmp.eq.s32.totalorder %s8367_s16, 0 }
   0xb   : > { %p8171_p6 = scmp.lt.s32.totalorder %s8322_s15, 3  ;;  %s8395_s23 = sand.u32 1, %s8318_s14  }
   0xc   : > { %p8390_p7 = por %p66_p5, %p65_p3  ;;  %s5199_s24 = sshll.u32 %s8395_s23, 12 }
   0xd   : > { %s7645_s25 = sshll.u32 %s8322_s15, 12  ;;  %s153_s29 = scalar_lea.vmem [#allocation2], %s5199_s24 }
   0xe   : > { %s158_s28 = scalar_lea.hbm %s10342_s1, %s7645_s25  ;;  %s161_s30 = sshll.u32 %s153_s29, 4  ;;  %s162_s30 = int_to_ptr.vmem [resolvable:$true] %s161_s30 }
   0xf   : > { %s159_s4 = sshll.u32 %s158_s28, 4  ;;  %p8404_p8 = pnand %p8171_p6, %p8382_p4  ;;  %s160_s4 = int_to_ptr.hbm [resolvable:$true] %s159_s4 }
  0x10   : > { %p5204_p9 = scmp.ge.s32.totalorder %s8322_s15, 1  ;;  %s150_s6 = scalar_lea.sflag [#allocation3], %s8395_s23 }
  0x11   : > { %s8224_s7 = sshra.s32 %s160_s4, 4  ;;  %p8228_p11 = pneg %p8404_p8  ;;  %s8225_s7 = int_to_ptr.hbm [resolvable:$true] %s8224_s7 }
  0x12   : > { %s8226_s8 = scalar_lea.hbm %s8225_s7, 4096  ;;  %s8231_s11 = scalar_lea.hbm %s10342_s1, 12288 }
  0x13   : > { %p8227_p10 = scmp.ne.s32.totalorder %s8225_s7, %s8226_s8  ;;  %p8232_p0 = scmp.lt.s32.totalorder %s8225_s7, %s10342_s1 }
  0x14   : > { %p8233_p1 = scmp.lt.s32.totalorder %s8231_s11, %s8226_s8 }
  0x15   : > { %p8229_p12 = pnand %p8228_p11, %p8227_p10 }
  0x16   : > { %p8234_p2 = por %p8233_p1, %p8232_p0 }
  0x17   : > { %p8230_p13 = pneg %p8229_p12 }
  0x19   : > { %p8235_p3 = pnand %p8234_p2, %p8230_p13 }
  0x1b   : > { %8238 = shalt.err (!%p8235_p3)
}
  0x1c   : > { %s8324_s19 = smov 256   ;;  %s8325_s21 = smov 16  }
  0x1d   : > { %8167 = dma.hbm_to_vmem [thread:$0]  (!%p8404_p8), %s160_s4, 65536, %s162_s30, %s150_s6, %s8324_s19, %s8324_s19, %s8325_s21  }
  0x1e   : > { %p190_p4 = scmp.lt.s32.totalorder %s8322_s15, 4  ;;  %s5202_s24 = sshll.u32 %s8395_s23, 4 }
  0x1f   : > { %s5203_s25 = sshll.u32 %s8322_s15, 4  ;;  %s175_s7 = scalar_lea.vmem [#allocation4], %s5202_s24 }
  0x20   : > { %p8428_p6 = pnand %p5204_p9, %p190_p4  ;;  %s179_s29 = scalar_lea.hbm %s10343_s2, %s5203_s25 }
  0x21   : > { %s182_s8 = sshll.u32 %s175_s7, 4  ;;  %s180_s9 = sshll.u32 %s179_s29, 4  ;;  %s183_s8 = int_to_ptr.vmem [resolvable:$true] %s182_s8  ;;  %s181_s9 = int_to_ptr.hbm [resolvable:$true] %s180_s9 }
  0x22   : > { %s172_s10 = scalar_lea.sflag [#allocation5], %s8395_s23  ;;  %s8254_s30 = sshra.s32 %s181_s9, 4  ;;  %s8255_s30 = int_to_ptr.hbm [resolvable:$true] %s8254_s30 }
  0x23   : > { %s8256_s4 = scalar_lea.hbm %s8255_s30, 16  ;;  %s8261_s11 = scalar_lea.hbm %s10343_s2, 48 }
  0x24   : > { %p8257_p10 = scmp.ne.s32.totalorder %s8255_s30, %s8256_s4  ;;  %p8262_p13 = scmp.lt.s32.totalorder %s8255_s30, %s10343_s2 }
  0x25   : > { %p8263_p0 = scmp.lt.s32.totalorder %s8261_s11, %s8256_s4 }
  0x26   : > { %p8259_p9 = pnand %p8257_p10, %p8228_p11 }
  0x27   : > { %p8264_p1 = por %p8263_p0, %p8262_p13 }
  0x28   : > { %p8260_p12 = pneg %p8259_p9 }
  0x2a   : > { %p8265_p2 = pnand %p8264_p1, %p8260_p12 }
  0x2c   : > { %8268 = shalt.err (!%p8265_p2)
}
  0x2d   : > { %s8326_s23 = smov 64   ;;  %s8327_s19 = smov 4  }
  0x2e   : > { %8170 = dma.hbm_to_vmem [thread:$0]  (!%p8404_p8), %s181_s9, 256, %s183_s8, %s172_s10, %s8326_s23, %s8326_s23, %s8327_s19  }
  0x2f   : > { %194 = sbr.rel (%p8428_p6) target bundleno = 1137 (0x471), region = 32  ;;  %s196_s21 = sand.u32 (!%p8428_p6), 1, %s8314_s13  }
  0x30   : > { %s5205_s24 = sshll.u32 (!%p8428_p6), %s196_s21, 12  ;;  %s197_s25 = scalar_lea.sflag (!%p8428_p6), [#allocation3], %s196_s21 }
  0x31   : > { %s8450_s27 = scalar_lea.vmem (!%p8428_p6), [#allocation2], %s5205_s24 }
  0x34   : > { %8301 = dma.done.wait (%p8390_p7), %s197_s25, 65536  }
  0x35   : > { %8303 = vsyncadd (%p8390_p7), %s197_s25, 4294901760  ;;  %s5206_s28 = sshll.u32 %s196_s21, 4  ;;  %s207_s29 = scalar_lea.sflag [#allocation5], %s196_s21 }
  0x36   : > { %s8456_s5 = scalar_lea.vmem [#allocation4], %s5206_s28 }
  0x37   : > { %8305 = dma.done.wait (%p8390_p7), %s207_s29, 256  }
  0x38   : > { %8307 = vsyncadd (%p8390_p7), %s207_s29, 4294967040  ;;  %p244_p8 = scmp.lt.s32.totalorder %s8367_s16, 2  ;;  %v5325_v0 = vld [vmem:[%s8450_s27 + $0xe0] sm:$0xf]  ;;  %v7678_v1 = vld [vmem:[%s8450_s27 + $0xec] sm:$0xf0] }
  0x39   : > { %v5453_v2 = vld [vmem:[%s8450_s27 + $0x1e0] sm:$0xf]  ;;  %v5326_v3 = vor.u32 %v7678_v1, %v5325_v0  ;;  %v7710_v4 = vld [vmem:[%s8450_s27 + $0x1ec] sm:$0xf0]  ;;  %p256_p7 = scmp.eq.s32.totalorder %s8367_s16, 1 }
  0x3a   : > { %s8464_s26 = scalar_select %p244_p8, %s8367_s16, 2  ;;  %v5581_v5 = vld [vmem:[%s8450_s27 + $0x2e0] sm:$0xf]  ;;  %v7742_v6 = vld [vmem:[%s8450_s27 + $0x2ec] sm:$0xf0]  ;;  %v5454_v7 = vor.u32 %v7710_v4, %v5453_v2 }
  0x3b   : > { %v5582_v8 = vor.u32 %v7742_v6, %v5581_v5  ;;  %v5709_v9 = vld [vmem:[%s8450_s27 + $0x3e0] sm:$0xf]  ;;  %v7774_v10 = vld [vmem:[%s8450_s27 + $0x3ec] sm:$0xf0]  ;;  %1248 = vmatpush.bf16.msra.mxu0 %v5326_v3 }
  0x3c   : > { %v5309_v11 = vld [vmem:[%s8450_s27 + $0xc0] sm:$0xf]  ;;  %v5710_v12 = vor.u32 %v7774_v10, %v5709_v9  ;;  %v7674_v13 = vld [vmem:[%s8450_s27 + $0xcc] sm:$0xf0]  ;;  %1267 = vmatpush.bf16.msra.mxu1 %v5454_v7  ;;  %s7646_s22 = sshll.u32 %s8464_s26, 7 }
  0x3d   : > { %v5437_v14 = vld [vmem:[%s8450_s27 + $0x1c0] sm:$0xf]  ;;  %v7706_v15 = vld [vmem:[%s8450_s27 + $0x1cc] sm:$0xf0]  ;;  %1286 = vmatpush.bf16.msra.mxu2 %v5582_v8  ;;  %v5310_v16 = vor.u32 %v7674_v13, %v5309_v11  ;;  %s8547_s9 = scalar_lea.vmem %s10341_s0, %s7646_s22  ;;  %s10307_s4 = scalar_lea.vmem %s10344_s3, %s7646_s22 }
  0x3e   : > { %v5438_v17 = vor.u32 %v7706_v15, %v5437_v14  ;;  %v5565_v18 = vld [vmem:[%s8450_s27 + $0x2c0] sm:$0xf]  ;;  %v7738_v19 = vld [vmem:[%s8450_s27 + $0x2cc] sm:$0xf0]  ;;  %1305 = vmatpush.bf16.msra.mxu3 %v5710_v12 }
  0x3f   : > { %v5693_v20 = vld [vmem:[%s8450_s27 + $0x3c0] sm:$0xf]  ;;  %v5566_v21 = vor.u32 %v7738_v19, %v5565_v18  ;;  %v7770_v22 = vld [vmem:[%s8450_s27 + $0x3cc] sm:$0xf0]  ;;  %1249 = vmatpush.bf16.msra.mxu0 %v5310_v16 }
  0x40   : > { %v5293_v23 = vld [vmem:[%s8450_s27 + $0xa0] sm:$0xf]  ;;  %v7670_v24 = vld [vmem:[%s8450_s27 + $0xac] sm:$0xf0]  ;;  %v5694_v25 = vor.u32 %v7770_v22, %v5693_v20  ;;  %1268 = vmatpush.bf16.msra.mxu1 %v5438_v17 }
  0x41   : > { %v5421_v26 = vld [vmem:[%s8450_s27 + $0x1a0] sm:$0xf]  ;;  %v7702_v27 = vld [vmem:[%s8450_s27 + $0x1ac] sm:$0xf0]  ;;  %v5294_v29 = vor.u32 %v7670_v24, %v5293_v23  ;;  %1287 = vmatpush.bf16.msra.mxu2 %v5566_v21 }
  0x42   : > { %v5549_v28 = vld [vmem:[%s8450_s27 + $0x2a0] sm:$0xf]  ;;  %v7734_v30 = vld [vmem:[%s8450_s27 + $0x2ac] sm:$0xf0]  ;;  %v5422_v33 = vor.u32 %v7702_v27, %v5421_v26  ;;  %1306 = vmatpush.bf16.msra.mxu3 %v5694_v25 }
  0x43   : > { %v5677_v31 = vld [vmem:[%s8450_s27 + $0x3a0] sm:$0xf]  ;;  %v7766_v32 = vld [vmem:[%s8450_s27 + $0x3ac] sm:$0xf0]  ;;  %v5550_v34 = vor.u32 %v7734_v30, %v5549_v28  ;;  %1250 = vmatpush.bf16.msra.mxu0 %v5294_v29 }
  0x44   : > { %v5277_v35 = vld [vmem:[%s8450_s27 + $0x80] sm:$0xf]  ;;  %v7666_v36 = vld [vmem:[%s8450_s27 + $0x8c] sm:$0xf0]  ;;  %v5678_v38 = vor.u32 %v7766_v32, %v5677_v31  ;;  %1269 = vmatpush.bf16.msra.mxu1 %v5422_v33  ;;  %v8588_v32 = vld [vmem:[%s8547_s9 + $0x8] sm:$0xff] }
  0x45   : > { %v5405_v37 = vld [vmem:[%s8450_s27 + $0x180] sm:$0xf]  ;;  %v7698_v39 = vld [vmem:[%s8450_s27 + $0x18c] sm:$0xf0]  ;;  %v5278_v44 = vor.u32 %v7666_v36, %v5277_v35  ;;  %1288 = vmatpush.bf16.msra.mxu2 %v5550_v34  ;;  %v8591_v33 = vld [vmem:[%s8547_s9 + $0x28] sm:$0xff]  ;;  %v275_v36 = vmul.f32 %v8588_v32, %v8588_v32 }
  0x46   : > { %v5533_v40 = vld [vmem:[%s8450_s27 + $0x280] sm:$0xf]  ;;  %v7730_v41 = vld [vmem:[%s8450_s27 + $0x28c] sm:$0xf0]  ;;  %v5406_v46 = vor.u32 %v7698_v39, %v5405_v37  ;;  %1307 = vmatpush.bf16.msra.mxu3 %v5678_v38  ;;  %v279_v37 = vmul.f32 %v8591_v33, %v8591_v33 }
  0x47   : > { %v5661_v42 = vld [vmem:[%s8450_s27 + $0x380] sm:$0xf]  ;;  %v7762_v43 = vld [vmem:[%s8450_s27 + $0x38c] sm:$0xf0]  ;;  %v5534_v47 = vor.u32 %v7730_v41, %v5533_v40  ;;  %1251 = vmatpush.bf16.msra.mxu0 %v5278_v44  ;;  %v8612_v40 = vld [vmem:[%s8547_s9 + $0x18] sm:$0xff] }
  0x48   : > { %v5261_v45 = vld [vmem:[%s8450_s27 + $0x60] sm:$0xf]  ;;  %v7662_v48 = vld [vmem:[%s8450_s27 + $0x6c] sm:$0xf0]  ;;  %v5662_v51 = vor.u32 %v7762_v43, %v5661_v42  ;;  %1270 = vmatpush.bf16.msra.mxu1 %v5406_v46  ;;  %v8615_v41 = vld [vmem:[%s8547_s9 + $0x38] sm:$0xff]  ;;  %v277_v44 = vmul.f32 %v8612_v40, %v8612_v40 }
  0x49   : > { %v5389_v49 = vld [vmem:[%s8450_s27 + $0x160] sm:$0xf]  ;;  %v7694_v50 = vld [vmem:[%s8450_s27 + $0x16c] sm:$0xf0]  ;;  %v5262_v58 = vor.u32 %v7662_v48, %v5261_v45  ;;  %1289 = vmatpush.bf16.msra.mxu2 %v5534_v47  ;;  %v8628_v47 = vld [vmem:[%s8547_s9 + $0x48] sm:$0xff]  ;;  %v289_v48 = vadd.f32 %v279_v37, %v275_v36 }
  0x4a   : > { %v5517_v52 = vld [vmem:[%s8450_s27 + $0x260] sm:$0xf]  ;;  %v7726_v53 = vld [vmem:[%s8450_s27 + $0x26c] sm:$0xf0]  ;;  %v5390_v1 = vor.u32 %v7694_v50, %v5389_v49  ;;  %1308 = vmatpush.bf16.msra.mxu3 %v5662_v51  ;;  %v281_v49 = vmul.f32 %v8615_v41, %v8615_v41  ;;  %v7676_v37 = vld [vmem:[%s8450_s27 + $0xe4] sm:$0xf] }
  0x4b   : > { %v5645_v54 = vld [vmem:[%s8450_s27 + $0x360] sm:$0xf]  ;;  %v7758_v55 = vld [vmem:[%s8450_s27 + $0x36c] sm:$0xf0]  ;;  %v5518_v2 = vor.u32 %v7726_v53, %v5517_v52  ;;  %1252 = vmatpush.bf16.msra.mxu0 %v5262_v58  ;;  %v8637_v52 = vld [vmem:[%s8547_s9 + $0x68] sm:$0xff] }
  0x4c   : > { %v5245_v56 = vld [vmem:[%s8450_s27 + $0x40] sm:$0xf]  ;;  %v7658_v57 = vld [vmem:[%s8450_s27 + $0x4c] sm:$0xf0]  ;;  %v5646_v6 = vor.u32 %v7758_v55, %v5645_v54  ;;  %1271 = vmatpush.bf16.msra.mxu1 %v5390_v1 }
  0x4d   : > { %v5373_v59 = vld [vmem:[%s8450_s27 + $0x140] sm:$0xf]  ;;  %v7690_v60 = vld [vmem:[%s8450_s27 + $0x14c] sm:$0xf0]  ;;  %v5246_v13 = vor.u32 %v7658_v57, %v5245_v56  ;;  %1290 = vmatpush.bf16.msra.mxu2 %v5518_v2 }
  0x4e   : > { %v5501_v61 = vld [vmem:[%s8450_s27 + $0x240] sm:$0xf]  ;;  %v7722_v62 = vld [vmem:[%s8450_s27 + $0x24c] sm:$0xf0]  ;;  %v5374_v17 = vor.u32 %v7690_v60, %v5373_v59  ;;  %1309 = vmatpush.bf16.msra.mxu3 %v5646_v6  ;;  %v368_v59 = vmul.f32 %v8628_v47, %v8628_v47  ;;  %v372_v60 = vmul.f32 %v8637_v52, %v8637_v52 }
  0x4f   : > { %v5629_v63 = vld [vmem:[%s8450_s27 + $0x340] sm:$0xf]  ;;  %v7754_v0 = vld [vmem:[%s8450_s27 + $0x34c] sm:$0xf0]  ;;  %v5502_v18 = vor.u32 %v7722_v62, %v5501_v61  ;;  %1253 = vmatpush.bf16.msra.mxu0 %v5246_v13  ;;  %v290_v61 = vrot.slane %v289_v48, 4  ;;  %v303_v62 = vadd.f32 %v281_v49, %v277_v44 }
  0x50   : > { %v8516_v3 = vld [vmem:[%s8450_s27 + $0x20] sm:$0xf]  ;;  %v8519_v4 = vld [vmem:[%s8450_s27 + $0x2c] sm:$0xf0]  ;;  %v5630_v19 = vor.u32 %v7754_v0, %v5629_v63  ;;  %1272 = vmatpush.bf16.msra.mxu1 %v5374_v17  ;;  %v7708_v49 = vld [vmem:[%s8450_s27 + $0x1e4] sm:$0xf] }
  0x51   : > { %v8522_v5 = vld [vmem:[%s8450_s27 + $0x120] sm:$0xf]  ;;  %v8525_v7 = vld [vmem:[%s8450_s27 + $0x12c] sm:$0xf0]  ;;  %v5230_v22 = vor.u32 %v8519_v4, %v8516_v3  ;;  %1291 = vmatpush.bf16.msra.mxu2 %v5502_v18  ;;  %v382_v3 = vadd.f32 %v372_v60, %v368_v59  ;;  %v291_v6 = vadd.f32 %v290_v61, %v289_v48  ;;  %v5711_v59 = vld [vmem:[%s8450_s27 + $0x3f0] sm:$0xf0] }
  0x52   : > { %v8528_v8 = vld [vmem:[%s8450_s27 + $0x220] sm:$0xf]  ;;  %v8531_v9 = vld [vmem:[%s8450_s27 + $0x22c] sm:$0xf0]  ;;  %v5358_v23 = vor.u32 %v8525_v7, %v8522_v5  ;;  %1310 = vmatpush.bf16.msra.mxu3 %v5630_v19  ;;  %v304_v7 = vrot.slane %v303_v62, 4 }
  0x53   : > { %v8534_v10 = vld [vmem:[%s8450_s27 + $0x320] sm:$0xf]  ;;  %v8537_v11 = vld [vmem:[%s8450_s27 + $0x32c] sm:$0xf0]  ;;  %v5486_v24 = vor.u32 %v8531_v9, %v8528_v8  ;;  %1254 = vmatpush.bf16.msra.mxu0 %v5230_v22  ;;  %v8659_v9 = vld [vmem:[%s8547_s9 + $0x58] sm:$0xff]  ;;  %v292_v18 = vrot.slane %v291_v6, 2 }
  0x54   : > { %v8540_v12 = vld [vmem:[%s8450_s27] sm:$0xf]  ;;  %v8550_v14 = vld [vmem:[%s8450_s27 + $0xc] sm:$0xf0]  ;;  %v5614_v25 = vor.u32 %v8537_v11, %v8534_v10  ;;  %1273 = vmatpush.bf16.msra.mxu1 %v5358_v23  ;;  %v305_v19 = vadd.f32 %v304_v7, %v303_v62  ;;  %v5311_v7 = vld [vmem:[%s8450_s27 + $0xd0] sm:$0xf0] }
  0x55   : > { %v8553_v15 = vld [vmem:[%s8450_s27 + $0x100] sm:$0xf]  ;;  %v8556_v16 = vld [vmem:[%s8450_s27 + $0x10c] sm:$0xf0]  ;;  %v5214_v28 = vor.u32 %v8550_v14, %v8540_v12  ;;  %1292 = vmatpush.bf16.msra.mxu2 %v5486_v24  ;;  %v383_v12 = vrot.slane %v382_v3, 4  ;;  %v8664_v14 = vld [vmem:[%s8547_s9 + $0x78] sm:$0xff]  ;;  %v370_v24 = vmul.f32 %v8659_v9, %v8659_v9 }
  0x56   : > { %v8559_v20 = vld [vmem:[%s8450_s27 + $0x200] sm:$0xf]  ;;  %v8562_v21 = vld [vmem:[%s8450_s27 + $0x20c] sm:$0xf0]  ;;  %v5342_v29 = vor.u32 %v8556_v16, %v8553_v15  ;;  %1311 = vmatpush.bf16.msra.mxu3 %v5614_v25  ;;  %v293_v25 = vadd.f32 %v292_v18, %v291_v6  ;;  %v374_v15 = vmul.f32 %v8664_v14, %v8664_v14  ;;  %v7672_v6 = vld [vmem:[%s8450_s27 + $0xc4] sm:$0xf] }
  0x57   : > { %v8573_v26 = vld [vmem:[%s8547_s9] sm:$0xff]  ;;  %v8594_v34 = vld [vmem:[%s8547_s9 + $0x10] sm:$0xff]  ;;  %v5470_v35 = vor.u32 %v8562_v21, %v8559_v20  ;;  %s8600_s10 = scalar_select %p66_p5, 0.25, 0.1  ;;  %1255 = vmatpush.bf16.msra.mxu0 %v5214_v28  ;;  %v8671_v23 = vadd.f32 %v383_v12, %v382_v3  ;;  %v306_v28 = vrot.slane %v305_v19, 2  ;;  %v5314_v18 = vor.u32 %v7672_v6, %v5311_v7 }
  0x58   : > { %v8576_v27 = vld [vmem:[%s8547_s9 + $0x20] sm:$0xff]  ;;  %v274_v30 = vmul.f32 %v8573_v26, %v8573_v26  ;;  %v8607_v38 = vld [vmem:[%s8547_s9 + $0x30] sm:$0xff]  ;;  %v276_v39 = vmul.f32 %v8594_v34, %v8594_v34  ;;  %1274 = vmatpush.bf16.msra.mxu1 %v5342_v29 }
  0x59   : > { %v278_v31 = vmul.f32 %v8576_v27, %v8576_v27  ;;  %v280_v43 = vmul.f32 %v8607_v38, %v8607_v38  ;;  %v8622_v45 = vld [vmem:[%s8547_s9 + $0x40] sm:$0xff]  ;;  %v8640_v53 = vld [vmem:[%s8547_s9 + $0x50] sm:$0xff]  ;;  %s10362_s10 = smov (%p256_p7, %s8600_s10), 0.25  ;;  %1293 = vmatpush.bf16.msra.mxu2 %v5470_v35  ;;  %v307_v44 = vadd.f32 %v306_v28, %v305_v19  ;;  %v385_v60 = vrot.slane %v8671_v23, 2 }
  0x5a   : > { %v8625_v46 = vld [vmem:[%s8547_s9 + $0x60] sm:$0xff]  ;;  %v367_v50 = vmul.f32 %v8622_v45, %v8622_v45  ;;  %v8643_v54 = vld [vmem:[%s8547_s9 + $0x70] sm:$0xff]  ;;  %v369_v0 = vmul.f32 %v8640_v53, %v8640_v53  ;;  %v8666_v17 = vstv %s10362_s10 }
  0x5b   : > { %v282_v42 = vadd.f32 %v278_v31, %v274_v30  ;;  %v371_v51 = vmul.f32 %v8625_v46, %v8625_v46  ;;  %v5597_v55 = vld [vmem:[%s8450_s27 + $0x300] sm:$0xf]  ;;  %v7746_v56 = vld [vmem:[%s8450_s27 + $0x30c] sm:$0xf0]  ;;  %v296_v58 = vadd.f32 %v280_v43, %v276_v39  ;;  %v373_v4 = vmul.f32 %v8643_v54, %v8643_v54  ;;  %v7740_v30 = vld [vmem:[%s8450_s27 + $0x2e4] sm:$0xf] }
  0x5c   : > { %v5598_v5 = vor.u32 %v7746_v56, %v5597_v55  ;;  %v5583_v31 = vld [vmem:[%s8450_s27 + $0x2f0] sm:$0xf0]  ;;  %v294_v43 = vrot.slane %v293_v25, 1  ;;  %v308_v62 = vrot.slane %v307_v44, 1 }
  0x5d   : > { %v283_v57 = vrot.slane %v282_v42, 4  ;;  %v375_v63 = vadd.f32 %v371_v51, %v367_v50  ;;  %v297_v2 = vrot.slane %v296_v58, 4  ;;  %v8661_v13 = vadd.f32 %v373_v4, %v369_v0  ;;  %v5327_v39 = vld [vmem:[%s8450_s27 + $0xf0] sm:$0xf0]  ;;  %v7736_v0 = vld [vmem:[%s8450_s27 + $0x2c4] sm:$0xf] }
  0x5e   : > { %1312 = vmatpush.bf16.msra.mxu3 %v5598_v5  ;;  %v5586_v35 = vor.u32 %v7740_v30, %v5583_v31  ;;  %v5330_v48 = vor.u32 %v7676_v37, %v5327_v39  ;;  %v5455_v50 = vld [vmem:[%s8450_s27 + $0x1f0] sm:$0xf0]  ;;  %v295_v61 = vadd.f32 %v294_v43, %v293_v25  ;;  %v309_v12 = vadd.f32 %v308_v62, %v307_v44  ;;  %v7732_v31 = vld [vmem:[%s8450_s27 + $0x2a4] sm:$0xf] }
  0x5f   : > { %v284_v1 = vadd.f32 %v283_v57, %v282_v42  ;;  %v376_v8 = vrot.slane %v375_v63, 4  ;;  %v298_v11 = vadd.f32 %v297_v2, %v296_v58  ;;  %v390_v42 = vrot.slane %v8661_v13, 4  ;;  %v7772_v58 = vld [vmem:[%s8450_s27 + $0x3e4] sm:$0xf]  ;;  %v5439_v19 = vld [vmem:[%s8450_s27 + $0x1d0] sm:$0xf0] }
  0x60   : > { %1362 = vmatpush.bf16.msrb.mxu2 %v5586_v35  ;;  %v5458_v57 = vor.u32 %v7708_v49, %v5455_v50  ;;  %1324 = vmatpush.bf16.msrb.mxu0 %v5330_v48  ;;  %v7668_v35 = vld [vmem:[%s8450_s27 + $0xa4] sm:$0xf]  ;;  %v5295_v37 = vld [vmem:[%s8450_s27 + $0xb0] sm:$0xf0]  ;;  %v386_v39 = vadd.f32 %v385_v60, %v8671_v23 }
  0x61   : > { %v285_v10 = vrot.slane %v284_v1, 2  ;;  %v377_v20 = vadd.f32 %v376_v8, %v375_v63  ;;  %v299_v22 = vrot.slane %v298_v11, 2  ;;  %v5714_v63 = vor.u32 %v7772_v58, %v5711_v59  ;;  %v7704_v8 = vld [vmem:[%s8450_s27 + $0x1c4] sm:$0xf]  ;;  %v5423_v49 = vld [vmem:[%s8450_s27 + $0x1b0] sm:$0xf0] }
  0x62   : > { %1343 = vmatpush.bf16.msrb.mxu1 %v5458_v57  ;;  %v5442_v30 = vor.u32 %v7704_v8, %v5439_v19  ;;  %v5298_v44 = vor.u32 %v7668_v35, %v5295_v37  ;;  %v7700_v48 = vld [vmem:[%s8450_s27 + $0x1a4] sm:$0xf]  ;;  %v391_v57 = vadd.f32 %v390_v42, %v8661_v13  ;;  %v5535_v60 = vld [vmem:[%s8450_s27 + $0x290] sm:$0xf0]  ;;  %v387_v6 = vrot.slane %v386_v39, 1 }
  0x63   : > { %v286_v21 = vadd.f32 %v285_v10, %v284_v1  ;;  %v378_v36 = vrot.slane %v377_v20, 2  ;;  %v300_v29 = vadd.f32 %v299_v22, %v298_v11  ;;  %v5567_v1 = vld [vmem:[%s8450_s27 + $0x2d0] sm:$0xf0]  ;;  %v8693_v10 = vadd.f32 %v374_v15, %v370_v24  ;;  %1381 = vmatpush.bf16.msrb.mxu3 %v5714_v63  ;;  %v7728_v59 = vld [vmem:[%s8450_s27 + $0x284] sm:$0xf] }
  0x64   : > { %v5570_v5 = vor.u32 %v7736_v0, %v5567_v1  ;;  %v312_v11 = vmul.f32 %v8666_v17, %v295_v61  ;;  %1325 = vmatpush.bf16.msrb.mxu0 %v5314_v18  ;;  %v5426_v23 = vor.u32 %v7700_v48, %v5423_v49  ;;  %v7664_v61 = vld [vmem:[%s8450_s27 + $0x84] sm:$0xf]  ;;  %v5538_v62 = vor.u32 %v7728_v59, %v5535_v60  ;;  %v5279_v63 = vld [vmem:[%s8450_s27 + $0x90] sm:$0xf0] }
  0x65   : > { %v287_v16 = vrot.slane %v286_v21, 1  ;;  %v379_v51 = vadd.f32 %v378_v36, %v377_v20  ;;  %v301_v56 = vrot.slane %v300_v29, 1  ;;  %v7768_v20 = vld [vmem:[%s8450_s27 + $0x3c4] sm:$0xf]  ;;  %v5551_v36 = vld [vmem:[%s8450_s27 + $0x2b0] sm:$0xf0]  ;;  %v388_v19 = vadd.f32 %v387_v6, %v386_v39 }
  0x66   : > { %1363 = vmatpush.bf16.msrb.mxu2 %v5570_v5  ;;  %v8704_v15 = vadd.f32 1e-08, %v312_v11  ;;  %1344 = vmatpush.bf16.msrb.mxu1 %v5442_v30  ;;  %v7696_v0 = vld [vmem:[%s8450_s27 + $0x184] sm:$0xf]  ;;  %v5407_v1 = vld [vmem:[%s8450_s27 + $0x190] sm:$0xf0] }
  0x67   : > { %v288_v55 = vadd.f32 %v287_v16, %v286_v21  ;;  %v380_v2 = vrot.slane %v379_v51, 1  ;;  %v302_v4 = vadd.f32 %v301_v56, %v300_v29  ;;  %v5695_v21 = vld [vmem:[%s8450_s27 + $0x3d0] sm:$0xf0]  ;;  %v314_v16 = vmul.f32 %v8666_v17, %v309_v12  ;;  %v7760_v13 = vld [vmem:[%s8450_s27 + $0x384] sm:$0xf] }
  0x68   : > { %v5698_v24 = vor.u32 %v7768_v20, %v5695_v21  ;;  %v5554_v29 = vor.u32 %v7732_v31, %v5551_v36  ;;  %v5679_v56 = vld [vmem:[%s8450_s27 + $0x3b0] sm:$0xf0]  ;;  %1326 = vmatpush.bf16.msrb.mxu0 %v5298_v44  ;;  %v392_v7 = vrot.slane %v391_v57, 2  ;;  %v397_v8 = vrot.slane %v8693_v10, 4 }
  0x69   : > { %v311_v3 = vmul.f32 %v8666_v17, %v288_v55  ;;  %v381_v22 = vadd.f32 %v380_v2, %v379_v51  ;;  %v313_v28 = vmul.f32 %v8666_v17, %v302_v4  ;;  %v8717_v51 = vadd.f32 1e-08, %v314_v16  ;;  %v7764_v55 = vld [vmem:[%s8450_s27 + $0x3a4] sm:$0xf]  ;;  %v5663_v42 = vld [vmem:[%s8450_s27 + $0x390] sm:$0xf0] }
  0x6a   : > { %1382 = vmatpush.bf16.msrb.mxu3 %v5698_v24  ;;  %1364 = vmatpush.bf16.msrb.mxu2 %v5554_v29  ;;  %v5682_v58 = vor.u32 %v7764_v55, %v5679_v56  ;;  %v5282_v2 = vor.u32 %v7664_v61, %v5279_v63  ;;  %v5666_v5 = vor.u32 %v7760_v13, %v5663_v42  ;;  %vm335_vm1 = vweird.f32 %v8704_v15  ;;  %v7752_v61 = vld [vmem:[%s8450_s27 + $0x344] sm:$0xf] }
  0x6b   : > { %v8699_v25 = vadd.f32 1e-08, %v311_v3  ;;  %v8711_v43 = vadd.f32 1e-08, %v313_v28  ;;  %v403_v50 = vmul.f32 %v381_v22, %v8666_v17  ;;  %1345 = vmatpush.bf16.msrb.mxu1 %v5426_v23  ;;  %v5410_v3 = vor.u32 %v7696_v0, %v5407_v1 }
  0x6c   : > { %1327 = vmatpush.bf16.msrb.mxu0 %v5282_v2  ;;  %v393_v20 = vadd.f32 %v392_v7, %v391_v57  ;;  %v398_v28 = vadd.f32 %v397_v8, %v8693_v10  ;;  %vm355_vm3 = vweird.f32 %v8717_v51  ;;  %v404_v36 = vmul.f32 %v388_v19, %v8666_v17 }
  0x6d   : > { %8208 = vrsqrt.f32 %v8699_v25  ;;  %v8734_v4 = vadd.f32 1e-08, %v403_v50  ;;  %vm325_vm0 = vweird.f32 %v8699_v25  ;;  %vm345_vm2 = vweird.f32 %v8711_v43 }
  0x6e   : > { %8210 = vrsqrt.f32 %v8704_v15  ;;  %1383 = vmatpush.bf16.msrb.mxu3 %v5682_v58  ;;  %1365 = vmatpush.bf16.msrb.mxu2 %v5538_v62  ;;  %v394_v35 = vrot.slane %v393_v20, 1  ;;  %v8748_v44 = vadd.f32 1e-08, %v404_v36  ;;  %v399_v23 = vrot.slane %v398_v28, 2  ;;  %v7692_v36 = vld [vmem:[%s8450_s27 + $0x164] sm:$0xf] }
  0x6f   : > { %8212 = vrsqrt.f32 %v8711_v43  ;;  %1346 = vmatpush.bf16.msrb.mxu1 %v5410_v3  ;;  %vm417_vm6 = vweird.f32 %v8734_v4 }
  0x70   : > { %8214 = vrsqrt.f32 %v8717_v51  ;;  %v395_v50 = vadd.f32 %v394_v35, %v393_v20  ;;  %v400_v2 = vadd.f32 %v399_v23, %v398_v28  ;;  %v7660_v28 = vld [vmem:[%s8450_s27 + $0x64] sm:$0xf]  ;;  %vm427_vm15 = vweird.f32 %v8748_v44 }
  0x71   : > { %8216 = vrsqrt.f32 %v8734_v4 }
  0x72   : > { %1384 = vmatpush.bf16.msrb.mxu3 %v5666_v5  ;;  %8218 = vrsqrt.f32 %v8748_v44  ;;  %v405_v0 = vmul.f32 %v395_v50, %v8666_v17 }
  0x73   : > { %v8209_v11 = vpop.eup %8208 }
  0x74   : > { %v8211_v12 = vpop.eup %8210  ;;  %v320_v18 = vmul.f32 %v8209_v11, %v8699_v25  ;;  %vm326_vm4 = vweird.f32 %v8209_v11  ;;  %v8773_v42 = vadd.f32 1e-08, %v405_v0 }
  0x75   : > { %v8213_v21 = vpop.eup %8212  ;;  %v330_v22 = vmul.f32 %v8211_v12, %v8704_v15  ;;  %vm336_vm5 = vweird.f32 %v8211_v12  ;;  %vm327_vm8 = vmor %vm325_vm0, %vm326_vm4 }
  0x76   : > { %v8215_v30 = vpop.eup %8214  ;;  %v321_v24 = vmul.f32 %v8209_v11, %v320_v18  ;;  %v340_v31 = vmul.f32 %v8213_v21, %v8711_v43  ;;  %vm346_vm7 = vweird.f32 %v8213_v21  ;;  %vm8762_vm10 = vmor %vm335_vm1, %vm336_vm5  ;;  %8220 = vrsqrt.f32 %v8773_v42 }
  0x77   : > { %v331_v16 = vmul.f32 %v8211_v12, %v330_v22  ;;  %v350_v29 = vmul.f32 %v8215_v30, %v8717_v51  ;;  %v8750_v10 = vpop.eup %8216  ;;  %vm356_vm9 = vweird.f32 %v8215_v30  ;;  %vm347_vm11 = vmor %vm345_vm2, %vm346_vm7  ;;  %v7724_v22 = vld [vmem:[%s8450_s27 + $0x264] sm:$0xf]  ;;  %vm437_vm2 = vweird.f32 %v8773_v42 }
  0x78   : > { %v322_v37 = vmul.f32 0.5, %v321_v24  ;;  %v341_v39 = vmul.f32 %v8213_v21, %v340_v31  ;;  %v412_v57 = vmul.f32 %v8750_v10, %v8734_v4  ;;  %vm418_vm12 = vweird.f32 %v8750_v10  ;;  %vm357_vm13 = vmor %vm355_vm3, %vm356_vm9  ;;  %v8781_v19 = vpop.eup %8218  ;;  %v5263_v31 = vld [vmem:[%s8450_s27 + $0x70] sm:$0xf0] }
  0x79   : > { %v332_v48 = vmul.f32 0.5, %v331_v16  ;;  %v351_v49 = vmul.f32 %v8215_v30, %v350_v29  ;;  %v422_v16 = vmul.f32 %v8781_v19, %v8748_v44  ;;  %v7720_v29 = vld [vmem:[%s8450_s27 + $0x244] sm:$0xf]  ;;  %vm8814_vm14 = vmor %vm417_vm6, %vm418_vm12  ;;  %v5375_v4 = vld [vmem:[%s8450_s27 + $0x150] sm:$0xf0]  ;;  %vm428_vm0 = vweird.f32 %v8781_v19 }
  0x7a   : > { %v323_v55 = vsub.f32 1.5, %v322_v37  ;;  %v342_v56 = vmul.f32 0.5, %v341_v39  ;;  %v413_v63 = vmul.f32 %v8750_v10, %v412_v57  ;;  %v401_v39 = vrot.slane %v400_v2, 1  ;;  %vm8846_vm1 = vmor %vm427_vm15, %vm428_vm0 }
  0x7b   : > { %v333_v58 = vsub.f32 1.5, %v332_v48  ;;  %v352_v59 = vmul.f32 0.5, %v351_v49  ;;  %v5503_v48 = vld [vmem:[%s8450_s27 + $0x250] sm:$0xf0]  ;;  %v7656_v49 = vld [vmem:[%s8450_s27 + $0x44] sm:$0xf]  ;;  %v423_v50 = vmul.f32 %v8781_v19, %v422_v16 }
  0x7c   : > { %v324_v60 = vmul.f32 %v8209_v11, %v323_v55  ;;  %v343_v62 = vsub.f32 1.5, %v342_v56  ;;  %v414_v15 = vmul.f32 0.5, %v413_v63  ;;  %v5247_v55 = vld [vmem:[%s8450_s27 + $0x50] sm:$0xf0]  ;;  %v7688_v56 = vld [vmem:[%s8450_s27 + $0x144] sm:$0xf]  ;;  %v402_v57 = vadd.f32 %v401_v39, %v400_v2 }
  0x7d   : > { %v334_v25 = vmul.f32 %v8211_v12, %v333_v58  ;;  %v353_v1 = vsub.f32 1.5, %v352_v59  ;;  %v5266_v58 = vor.u32 %v7660_v28, %v5263_v31  ;;  %v424_v0 = vmul.f32 0.5, %v423_v50  ;;  %v5471_v31 = vld [vmem:[%s8450_s27 + $0x210] sm:$0xf0]  ;;  %v7680_v16 = vld [vmem:[%s8450_s27 + $0x104] sm:$0xf] }
  0x7e   : > { %v328_v3 = vsel %vm327_vm8, %v8209_v11, %v324_v60  ;;  %v344_v13 = vmul.f32 %v8213_v21, %v343_v62  ;;  %v415_v18 = vsub.f32 1.5, %v414_v15  ;;  %v5631_v62 = vld [vmem:[%s8450_s27 + $0x350] sm:$0xf0]  ;;  %v406_v2 = vmul.f32 %v402_v57, %v8666_v17  ;;  %v7744_v39 = vld [vmem:[%s8450_s27 + $0x304] sm:$0xf] }
  0x7f   : > { %v359_v5 = vmul.f32 %v328_v3, %v8573_v26  ;;  %v363_v43 = vmul.f32 %v328_v3, %v8576_v27  ;;  %v338_v6 = vsel %vm8762_vm10, %v8211_v12, %v334_v25  ;;  %v354_v7 = vmul.f32 %v8215_v30, %v353_v1  ;;  %v7716_v1 = vld [vmem:[%s8450_s27 + $0x224] sm:$0xf]  ;;  %1328 = vmatpush.bf16.msrb.mxu0 %v5266_v58  ;;  %v5487_v15 = vld [vmem:[%s8450_s27 + $0x230] sm:$0xf0]  ;;  %v5333_v58 = vld [vmem:[%s8450_s27 + $0xe8] sm:$0xf] }
  0x80   : > { %v360_v8 = vmul.f32 %v338_v6, %v8588_v32  ;;  %v364_v51 = vmul.f32 %v338_v6, %v8591_v33  ;;  %v348_v11 = vsel %vm347_vm11, %v8213_v21, %v344_v13  ;;  %v5519_v32 = vld [vmem:[%s8450_s27 + $0x270] sm:$0xf0]  ;;  %v5506_v25 = vor.u32 %v7720_v29, %v5503_v48 }
  0x81   : > { %v8783_v20 = vpack.c.bf16 %v363_v43, %v359_v5  ;;  %v361_v26 = vmul.f32 %v348_v11, %v8594_v34  ;;  %v365_v27 = vmul.f32 %v348_v11, %v8607_v38  ;;  %v358_v12 = vsel %vm357_vm13, %v8215_v30, %v354_v7  ;;  %v5391_v34 = vld [vmem:[%s8450_s27 + $0x170] sm:$0xf0]  ;;  %v7652_v5 = vld [vmem:[%s8450_s27 + $0x24] sm:$0xf] }
  0x82   : > { %v8790_v24 = vpack.c.bf16 %v364_v51, %v360_v8  ;;  %v362_v33 = vmul.f32 %v358_v12, %v8612_v40  ;;  %v366_v21 = vmul.f32 %v358_v12, %v8615_v41  ;;  %v416_v30 = vmul.f32 %v8750_v10, %v415_v18  ;;  %v7756_v40 = vld [vmem:[%s8450_s27 + $0x364] sm:$0xf]  ;;  %v5647_v41 = vld [vmem:[%s8450_s27 + $0x370] sm:$0xf0] }
  0x83   : > { %1256 = vmatmul.bf16.vlgmr.msra.gmra.mxu0 %v8783_v20  ;;  %v8798_v38 = vpack.c.bf16 %v365_v27, %v361_v26  ;;  %v5522_v23 = vor.u32 %v7724_v22, %v5519_v32  ;;  %v5394_v59 = vor.u32 %v7692_v36, %v5391_v34  ;;  %v5650_v60 = vor.u32 %v7756_v40, %v5647_v41  ;;  %v5231_v43 = vld [vmem:[%s8450_s27 + $0x30] sm:$0xf0]  ;;  %v7684_v8 = vld [vmem:[%s8450_s27 + $0x124] sm:$0xf] }
  0x84   : > { %1275 = vmatmul.bf16.vlgmr.msra.gmra.mxu1 %v8790_v24  ;;  %v8808_v35 = vpack.c.bf16 %v366_v21, %v362_v33  ;;  %v420_v63 = vsel %vm8814_vm14, %v8750_v10, %v416_v30  ;;  %v5250_v3 = vor.u32 %v7656_v49, %v5247_v55  ;;  %v5378_v13 = vor.u32 %v7688_v56, %v5375_v4  ;;  %v8838_v10 = vpop.eup %8220  ;;  %v5359_v51 = vld [vmem:[%s8450_s27 + $0x130] sm:$0xf0]  ;;  %v7748_v26 = vld [vmem:[%s8450_s27 + $0x324] sm:$0xf]  ;;  %v5589_v55 = vld [vmem:[%s8450_s27 + $0x2e8] sm:$0xf] }
  0x85   : > { %1294 = vmatmul.bf16.vlgmr.msra.gmra.mxu2 %v8798_v38  ;;  %1347 = vmatpush.bf16.msrb.mxu1 %v5394_v59  ;;  %v425_v6 = vsub.f32 1.5, %v424_v0  ;;  %v5634_v7 = vor.u32 %v7752_v61, %v5631_v62  ;;  %v432_v11 = vmul.f32 %v8838_v10, %v8773_v42  ;;  %v8852_v18 = vadd.f32 1e-08, %v406_v2  ;;  %v5615_v27 = vld [vmem:[%s8450_s27 + $0x330] sm:$0xf0] }
  0x86   : > { %1313 = vmatmul.bf16.vlgmr.msra.gmra.mxu3 %v8808_v35  ;;  %1366 = vmatpush.bf16.msrb.mxu2 %v5522_v23  ;;  %v451_v12 = vmul.f32 %v420_v63, %v8622_v45  ;;  %v455_v22 = vmul.f32 %v420_v63, %v8625_v46  ;;  %v5490_v32 = vor.u32 %v7716_v1, %v5487_v15  ;;  %v7712_v45 = vld [vmem:[%s8450_s27 + $0x204] sm:$0xf]  ;;  %vm438_vm3 = vweird.f32 %v8838_v10  ;;  %v5215_v30 = vld [vmem:[%s8450_s27 + $0x10] sm:$0xf0]  ;;  %v7743_v56 = vld [vmem:[%s8450_s27 + $0x2f4] sm:$0xf0] }
  0x87   : > { %1385 = vmatpush.bf16.msrb.mxu3 %v5650_v60  ;;  %v426_v44 = vmul.f32 %v8781_v19, %v425_v6  ;;  %v433_v28 = vmul.f32 %v8838_v10, %v432_v11  ;;  %8222 = vrsqrt.f32 %v8852_v18  ;;  %1329 = vmatpush.bf16.msrb.mxu0 %v5250_v3  ;;  %v5234_v33 = vor.u32 %v7652_v5, %v5231_v43  ;;  %v7648_v46 = vld [vmem:[%s8450_s27 + $0x4] sm:$0xf]  ;;  %v5343_v40 = vld [vmem:[%s8450_s27 + $0x110] sm:$0xf0]  ;;  %vm8884_vm4 = vmor %vm437_vm2, %vm438_vm3 }
  0x88   : > { %v5362_v21 = vor.u32 %v7684_v8, %v5359_v51  ;;  %v5618_v34 = vor.u32 %v7748_v26, %v5615_v27  ;;  %v5599_v48 = vld [vmem:[%s8450_s27 + $0x310] sm:$0xf0]  ;;  %v5474_v49 = vor.u32 %v7712_v45, %v5471_v31  ;;  %v5346_v4 = vor.u32 %v7680_v16, %v5343_v40  ;;  %v7679_v59 = vld [vmem:[%s8450_s27 + $0xf4] sm:$0xf0]  ;;  %v5461_v42 = vld [vmem:[%s8450_s27 + $0x1e8] sm:$0xf] }
  0x89   : > { %1348 = vmatpush.bf16.msrb.mxu1 %v5378_v13  ;;  %v430_v36 = vsel %vm8846_vm1, %v8781_v19, %v426_v44  ;;  %v434_v37 = vmul.f32 0.5, %v433_v28  ;;  %v8876_v19 = vpack.c.bf16 %v455_v22, %v451_v12  ;;  %v5602_v57 = vor.u32 %v7744_v39, %v5599_v48  ;;  %v7711_v0 = vld [vmem:[%s8450_s27 + $0x1f4] sm:$0xf0]  ;;  %v5573_v15 = vld [vmem:[%s8450_s27 + $0x2c8] sm:$0xf] }
  0x8a   : > { %1367 = vmatpush.bf16.msrb.mxu2 %v5506_v25  ;;  %v452_v41 = vmul.f32 %v430_v36, %v8628_v47  ;;  %v456_v29 = vmul.f32 %v430_v36, %v8637_v52  ;;  %v5218_v52 = vor.u32 %v7648_v46, %v5215_v30  ;;  %v5590_v62 = vor.u32 %v7743_v56, %v5589_v55  ;;  %v5717_v25 = vld [vmem:[%s8450_s27 + $0x3e8] sm:$0xf]  ;;  %v7775_v1 = vld [vmem:[%s8450_s27 + $0x3f4] sm:$0xf0] }
  0x8b   : > { %1386 = vmatpush.bf16.msrb.mxu3 %v5634_v7  ;;  %v435_v23 = vsub.f32 1.5, %v434_v37  ;;  %1330 = vmatpush.bf16.msrb.mxu0 %v5234_v33  ;;  %v5334_v63 = vor.u32 %v7679_v59, %v5333_v58  ;;  %v5462_v3 = vor.u32 %v7711_v0, %v5461_v42  ;;  %v5718_v13 = vor.u32 %v7775_v1, %v5717_v25  ;;  %v7739_v5 = vld [vmem:[%s8450_s27 + $0x2d4] sm:$0xf0]  ;;  %v5317_v43 = vld [vmem:[%s8450_s27 + $0xc8] sm:$0xf] }
  0x8c   : > { %v8878_v50 = vpack.c.bf16 %v456_v29, %v452_v41  ;;  %v7675_v7 = vld [vmem:[%s8450_s27 + $0xd4] sm:$0xf0]  ;;  %v5445_v8 = vld [vmem:[%s8450_s27 + $0x1c8] sm:$0xf]  ;;  %vm447_vm5 = vweird.f32 %v8852_v18 }
  0x8d   : > { %1349 = vmatpush.bf16.msrb.mxu1 %v5362_v21  ;;  %v8893_v60 = vpop.eup %8222  ;;  %v436_v61 = vmul.f32 %v8838_v10, %v435_v23  ;;  %v7707_v26 = vld [vmem:[%s8450_s27 + $0x1d4] sm:$0xf0]  ;;  %v5701_v27 = vld [vmem:[%s8450_s27 + $0x3c8] sm:$0xf] }
  0x8e   : > { %1368 = vmatpush.bf16.msrb.mxu2 %v5490_v32  ;;  %v442_v2 = vmul.f32 %v8893_v60, %v8852_v18  ;;  %v7771_v12 = vld [vmem:[%s8450_s27 + $0x3d4] sm:$0xf0]  ;;  %vm448_vm6 = vweird.f32 %v8893_v60  ;;  %v5301_v44 = vld [vmem:[%s8450_s27 + $0xa8] sm:$0xf]  ;;  %v5446_v33 = vor.u32 %v7707_v26, %v5445_v8 }
  0x8f   : > { %1387 = vmatpush.bf16.msrb.mxu3 %v5618_v34  ;;  %v440_v6 = vsel %vm8884_vm4, %v8838_v10, %v436_v61  ;;  %1331 = vmatpush.bf16.msrb.mxu0 %v5218_v52  ;;  %v5557_v10 = vld [vmem:[%s8450_s27 + $0x2a8] sm:$0xf]  ;;  %v7735_v22 = vld [vmem:[%s8450_s27 + $0x2b4] sm:$0xf0]  ;;  %v5702_v21 = vor.u32 %v7771_v12, %v5701_v27  ;;  %vm449_vm7 = vmor %vm447_vm5, %vm448_vm6 }
  0x90   : > { %v453_v51 = vmul.f32 %v440_v6, %v8640_v53  ;;  %v457_v17 = vmul.f32 %v440_v6, %v8643_v54  ;;  %v443_v11 = vmul.f32 %v8893_v60, %v442_v2  ;;  %v5574_v53 = vor.u32 %v7739_v5, %v5573_v15  ;;  %v7671_v45 = vld [vmem:[%s8450_s27 + $0xb4] sm:$0xf0]  ;;  %v5429_v31 = vld [vmem:[%s8450_s27 + $0x1a8] sm:$0xf] }
  0x91   : > { %1350 = vmatpush.bf16.msrb.mxu1 %v5346_v4  ;;  %v5318_v54 = vor.u32 %v7675_v7, %v5317_v43  ;;  %v7703_v46 = vld [vmem:[%s8450_s27 + $0x1b4] sm:$0xf0]  ;;  %v5685_v36 = vld [vmem:[%s8450_s27 + $0x3a8] sm:$0xf]  ;;  %v5558_v16 = vor.u32 %v7735_v22, %v5557_v10  ;;  %v5302_v40 = vor.u32 %v7671_v45, %v5301_v44 }
  0x92   : > { %1369 = vmatpush.bf16.msrb.mxu2 %v5474_v49  ;;  %v8922_v32 = vpack.c.bf16 %v457_v17, %v453_v51  ;;  %v444_v28 = vmul.f32 0.5, %v443_v11  ;;  %v7767_v34 = vld [vmem:[%s8450_s27 + $0x3b4] sm:$0xf0]  ;;  %v5430_v29 = vor.u32 %v7703_v46, %v5429_v31  ;;  %v5541_v39 = vld [vmem:[%s8450_s27 + $0x288] sm:$0xf] }
  0x93   : > { %1261 = vmatmul.bf16.gmra.mxu0 %v8876_v19  ;;  %1388 = vmatpush.bf16.msrb.mxu3 %v5602_v57  ;;  %v5686_v37 = vor.u32 %v7767_v34, %v5685_v36  ;;  %v7731_v48 = vld [vmem:[%s8450_s27 + $0x294] sm:$0xf0]  ;;  %v5413_v49 = vld [vmem:[%s8450_s27 + $0x188] sm:$0xf] }
  0x94   : > { %1280 = vmatmul.bf16.gmra.mxu1 %v8878_v50  ;;  %1400 = vmatpush.bf16.msra.mxu0 %v5334_v63  ;;  %v445_v30 = vsub.f32 1.5, %v444_v28  ;;  %v7699_v23 = vld [vmem:[%s8450_s27 + $0x194] sm:$0xf0]  ;;  %v5285_v47 = vld [vmem:[%s8450_s27 + $0x88] sm:$0xf]  ;;  %v5542_v4 = vor.u32 %v7731_v48, %v5541_v39 }
  0x95   : > { %1419 = vmatpush.bf16.msra.mxu1 %v5462_v3  ;;  %1299 = vmatmul.bf16.gmra.mxu2 %v8922_v32  ;;  %v7667_v52 = vld [vmem:[%s8450_s27 + $0x94] sm:$0xf0]  ;;  %v5669_v57 = vld [vmem:[%s8450_s27 + $0x388] sm:$0xf]  ;;  %v5414_v59 = vor.u32 %v7699_v23, %v5413_v49 }
  0x96   : > { %1438 = vmatpush.bf16.msra.mxu2 %v5590_v62  ;;  %v446_v41 = vmul.f32 %v8893_v60, %v445_v30  ;;  %v7763_v58 = vld [vmem:[%s8450_s27 + $0x394] sm:$0xf0]  ;;  %v5397_v0 = vld [vmem:[%s8450_s27 + $0x168] sm:$0xf] }
  0x97   : > { %1457 = vmatpush.bf16.msra.mxu3 %v5718_v13  ;;  %v7727_v61 = vld [vmem:[%s8450_s27 + $0x274] sm:$0xf0]  ;;  %v5670_v62 = vor.u32 %v7763_v58, %v5669_v57  ;;  %v5653_v2 = vld [vmem:[%s8450_s27 + $0x368] sm:$0xf]  ;;  %v5335_v58 = vld [vmem:[%s8450_s27 + $0xf8] sm:$0xf0] }
  0x98   : > { %1401 = vmatpush.bf16.msra.mxu0 %v5318_v54  ;;  %v450_v18 = vsel %vm449_vm7, %v8893_v60, %v446_v41  ;;  %v5286_v60 = vor.u32 %v7667_v52, %v5285_v47  ;;  %v7663_v63 = vld [vmem:[%s8450_s27 + $0x74] sm:$0xf0]  ;;  %v5509_v15 = vld [vmem:[%s8450_s27 + $0x248] sm:$0xf]  ;;  %v7741_v52 = vld [vmem:[%s8450_s27 + $0x2ec] sm:$0xf] }
  0x99   : > { %1420 = vmatpush.bf16.msra.mxu1 %v5446_v33  ;;  %v454_v55 = vmul.f32 %v450_v18, %v8659_v9  ;;  %v458_v56 = vmul.f32 %v450_v18, %v8664_v14  ;;  %v5525_v9 = vld [vmem:[%s8450_s27 + $0x268] sm:$0xf]  ;;  %v7695_v25 = vld [vmem:[%s8450_s27 + $0x174] sm:$0xf0] }
  0x9a   : > { %1439 = vmatpush.bf16.msra.mxu2 %v5574_v53  ;;  %v5269_v14 = vld [vmem:[%s8450_s27 + $0x68] sm:$0xf]  ;;  %v5526_v1 = vor.u32 %v7727_v61, %v5525_v9  ;;  %v7759_v3 = vld [vmem:[%s8450_s27 + $0x374] sm:$0xf0]  ;;  %v5398_v13 = vor.u32 %v7695_v25, %v5397_v0  ;;  %v5575_v25 = vld [vmem:[%s8450_s27 + $0x2d8] sm:$0xf0] }
  0x9b   : > { %1458 = vmatpush.bf16.msra.mxu3 %v5702_v21  ;;  %v8946_v42 = vpack.c.bf16 %v458_v56, %v454_v55  ;;  %v7723_v5 = vld [vmem:[%s8450_s27 + $0x254] sm:$0xf0]  ;;  %v5270_v43 = vor.u32 %v7663_v63, %v5269_v14  ;;  %v5381_v6 = vld [vmem:[%s8450_s27 + $0x148] sm:$0xf]  ;;  %v5654_v8 = vor.u32 %v7759_v3, %v5653_v2  ;;  %v5591_v55 = vld [vmem:[%s8450_s27 + $0x2f8] sm:$0xf0] }
  0x9c   : > { %1402 = vmatpush.bf16.msra.mxu0 %v5302_v40  ;;  %v7691_v7 = vld [vmem:[%s8450_s27 + $0x154] sm:$0xf0]  ;;  %v5253_v51 = vld [vmem:[%s8450_s27 + $0x48] sm:$0xf]  ;;  %v5510_v11 = vor.u32 %v7723_v5, %v5509_v15  ;;  %v7677_v56 = vld [vmem:[%s8450_s27 + $0xec] sm:$0xf]  ;;  %v5594_v57 = vor.u32 %v7741_v52, %v5591_v55 }
  0x9d   : > { %1421 = vmatpush.bf16.msra.mxu1 %v5430_v29  ;;  %1318 = vmatmul.bf16.gmra.mxu3 %v8946_v42  ;;  %v7659_v17 = vld [vmem:[%s8450_s27 + $0x54] sm:$0xf0]  ;;  %v5637_v26 = vld [vmem:[%s8450_s27 + $0x348] sm:$0xf]  ;;  %v5382_v12 = vor.u32 %v7691_v7, %v5381_v6  ;;  %v5338_v9 = vor.u32 %v7677_v56, %v5335_v58  ;;  %v7773_v14 = vld [vmem:[%s8450_s27 + $0x3ec] sm:$0xf] }
  0x9e   : > { %1440 = vmatpush.bf16.msra.mxu2 %v5558_v16  ;;  %v7755_v27 = vld [vmem:[%s8450_s27 + $0x354] sm:$0xf0]  ;;  %v5493_v53 = vld [vmem:[%s8450_s27 + $0x228] sm:$0xf]  ;;  %v5254_v10 = vor.u32 %v7659_v17, %v5253_v51  ;;  %v7737_v63 = vld [vmem:[%s8450_s27 + $0x2cc] sm:$0xf] }
  0x9f   : > { %1459 = vmatpush.bf16.msra.mxu3 %v5686_v37  ;;  %v7719_v54 = vld [vmem:[%s8450_s27 + $0x234] sm:$0xf0]  ;;  %v5365_v22 = vld [vmem:[%s8450_s27 + $0x128] sm:$0xf]  ;;  %v5638_v28 = vor.u32 %v7755_v27, %v5637_v26  ;;  %v5319_v2 = vld [vmem:[%s8450_s27 + $0xd8] sm:$0xf0] }
  0xa0   : > { %1403 = vmatpush.bf16.msra.mxu0 %v5286_v60  ;;  %v7687_v44 = vld [vmem:[%s8450_s27 + $0x134] sm:$0xf0]  ;;  %v5237_v33 = vld [vmem:[%s8450_s27 + $0x28] sm:$0xf]  ;;  %v5494_v45 = vor.u32 %v7719_v54, %v5493_v53  ;;  %v5463_v60 = vld [vmem:[%s8450_s27 + $0x1f8] sm:$0xf0] }
  0xa1   : > { %1422 = vmatpush.bf16.msra.mxu1 %v5414_v59  ;;  %v7655_v21 = vld [vmem:[%s8450_s27 + $0x34] sm:$0xf0]  ;;  %v5621_v31 = vld [vmem:[%s8450_s27 + $0x328] sm:$0xf]  ;;  %v5366_v36 = vor.u32 %v7687_v44, %v5365_v22  ;;  %v7709_v59 = vld [vmem:[%s8450_s27 + $0x1ec] sm:$0xf] }
  0xa2   : > { %1441 = vmatpush.bf16.msra.mxu2 %v5542_v4  ;;  %v7751_v46 = vld [vmem:[%s8450_s27 + $0x334] sm:$0xf0]  ;;  %v5477_v34 = vld [vmem:[%s8450_s27 + $0x208] sm:$0xf]  ;;  %v5238_v16 = vor.u32 %v7655_v21, %v5237_v33  ;;  %v5466_v61 = vor.u32 %v7709_v59, %v5463_v60  ;;  %v7705_v3 = vld [vmem:[%s8450_s27 + $0x1cc] sm:$0xf] }
  0xa3   : > { %1332 = vmatmul.bf16.vlgmr.msrb.gmra.mxu0 %v8783_v20  ;;  %1460 = vmatpush.bf16.msra.mxu3 %v5670_v62  ;;  %v7715_v30 = vld [vmem:[%s8450_s27 + $0x214] sm:$0xf0]  ;;  %v5349_v40 = vld [vmem:[%s8450_s27 + $0x108] sm:$0xf]  ;;  %v5622_v29 = vor.u32 %v7751_v46, %v5621_v31  ;;  %v5719_v62 = vld [vmem:[%s8450_s27 + $0x3f8] sm:$0xf0] }
  0xa4   : > { %1351 = vmatmul.bf16.vlgmr.msrb.gmra.mxu1 %v8790_v24  ;;  %1404 = vmatpush.bf16.msra.mxu0 %v5270_v43  ;;  %v7683_v41 = vld [vmem:[%s8450_s27 + $0x114] sm:$0xf0]  ;;  %v5221_v37 = vld [vmem:[%s8450_s27 + $0x8] sm:$0xf]  ;;  %v5478_v48 = vor.u32 %v7715_v30, %v5477_v34  ;;  %v5722_v0 = vor.u32 %v7773_v14, %v5719_v62  ;;  %v7769_v15 = vld [vmem:[%s8450_s27 + $0x3cc] sm:$0xf]  ;;  %v5578_v43 = vor.u32 %v7737_v63, %v5575_v25 }
  0xa5   : > { %1423 = vmatpush.bf16.msra.mxu1 %v5398_v13  ;;  %1370 = vmatmul.bf16.vlgmr.msrb.gmra.mxu2 %v8798_v38  ;;  %v7651_v39 = vld [vmem:[%s8450_s27 + $0x14] sm:$0xf0]  ;;  %v5605_v49 = vld [vmem:[%s8450_s27 + $0x308] sm:$0xf]  ;;  %v5350_v18 = vor.u32 %v7683_v41, %v5349_v40  ;;  %v5447_v13 = vld [vmem:[%s8450_s27 + $0x1d8] sm:$0xf0] }
  0xa6   : > { %1442 = vmatpush.bf16.msra.mxu2 %v5526_v1  ;;  %v7747_v23 = vld [vmem:[%s8450_s27 + $0x314] sm:$0xf0]  ;;  %v5222_v47 = vor.u32 %v7651_v39, %v5221_v37  ;;  %v7673_v1 = vld [vmem:[%s8450_s27 + $0xcc] sm:$0xf]  ;;  %v5703_v5 = vld [vmem:[%s8450_s27 + $0x3d8] sm:$0xf0]  ;;  %v5450_v51 = vor.u32 %v7705_v3, %v5447_v13 }
  0xa7   : > { %1461 = vmatpush.bf16.msra.mxu3 %v5654_v8  ;;  %v5606_v4 = vor.u32 %v7747_v23, %v5605_v49  ;;  %v5322_v6 = vor.u32 %v7673_v1, %v5319_v2  ;;  %v7733_v7 = vld [vmem:[%s8450_s27 + $0x2ac] sm:$0xf]  ;;  %v5559_v8 = vld [vmem:[%s8450_s27 + $0x2b8] sm:$0xf0]  ;;  %v5706_v17 = vor.u32 %v7769_v15, %v5703_v5 }
  0xa8   : > { %1405 = vmatpush.bf16.msra.mxu0 %v5254_v10  ;;  %v5303_v26 = vld [vmem:[%s8450_s27 + $0xb8] sm:$0xf0]  ;;  %v7701_v27 = vld [vmem:[%s8450_s27 + $0x1ac] sm:$0xf]  ;;  %v5562_v10 = vor.u32 %v7733_v7, %v5559_v8 }
  0xa9   : > { %1424 = vmatpush.bf16.msra.mxu1 %v5382_v12  ;;  %v5431_v12 = vld [vmem:[%s8450_s27 + $0x1b8] sm:$0xf0]  ;;  %v7765_v53 = vld [vmem:[%s8450_s27 + $0x3ac] sm:$0xf] }
  0xaa   : > { %1443 = vmatpush.bf16.msra.mxu2 %v5510_v11  ;;  %v7669_v11 = vld [vmem:[%s8450_s27 + $0xac] sm:$0xf]  ;;  %v5687_v54 = vld [vmem:[%s8450_s27 + $0x3b8] sm:$0xf0]  ;;  %v5434_v44 = vor.u32 %v7701_v27, %v5431_v12 }
  0xab   : > { %1462 = vmatpush.bf16.msra.mxu3 %v5638_v28  ;;  %v5306_v22 = vor.u32 %v7669_v11, %v5303_v26  ;;  %v5690_v28 = vor.u32 %v7765_v53, %v5687_v54  ;;  %v7729_v33 = vld [vmem:[%s8450_s27 + $0x28c] sm:$0xf]  ;;  %v5543_v21 = vld [vmem:[%s8450_s27 + $0x298] sm:$0xf0] }
  0xac   : > { %1406 = vmatpush.bf16.msra.mxu0 %v5238_v16  ;;  %v5415_v31 = vld [vmem:[%s8450_s27 + $0x198] sm:$0xf0]  ;;  %v7665_v46 = vld [vmem:[%s8450_s27 + $0x8c] sm:$0xf]  ;;  %v5546_v34 = vor.u32 %v7729_v33, %v5543_v21 }
  0xad   : > { %1425 = vmatpush.bf16.msra.mxu1 %v5366_v36  ;;  %1389 = vmatmul.bf16.vlgmr.msrb.gmra.mxu3 %v8808_v35  ;;  %v5287_v36 = vld [vmem:[%s8450_s27 + $0x98] sm:$0xf0]  ;;  %v7761_v30 = vld [vmem:[%s8450_s27 + $0x38c] sm:$0xf] }
  0xae   : > { %1444 = vmatpush.bf16.msra.mxu2 %v5494_v45  ;;  %v7697_v45 = vld [vmem:[%s8450_s27 + $0x18c] sm:$0xf]  ;;  %v5671_v16 = vld [vmem:[%s8450_s27 + $0x398] sm:$0xf0]  ;;  %v5290_v41 = vor.u32 %v7665_v46, %v5287_v36  ;;  %v5965_v46 = vld [vmem:[%s8450_s27 + $0x4e0] sm:$0xf] }
  0xaf   : > { %1463 = vmatpush.bf16.msra.mxu3 %v5622_v29  ;;  %v5418_v40 = vor.u32 %v7697_v45, %v5415_v31  ;;  %v7725_v29 = vld [vmem:[%s8450_s27 + $0x26c] sm:$0xf]  ;;  %v5527_v37 = vld [vmem:[%s8450_s27 + $0x278] sm:$0xf0]  ;;  %v7806_v36 = vld [vmem:[%s8450_s27 + $0x4ec] sm:$0xf0] }
  0xb0   : > { %1407 = vmatpush.bf16.msra.mxu0 %v5222_v47  ;;  %v7661_v39 = vld [vmem:[%s8450_s27 + $0x6c] sm:$0xf]  ;;  %v5271_v49 = vld [vmem:[%s8450_s27 + $0x78] sm:$0xf0]  ;;  %v5530_v47 = vor.u32 %v7725_v29, %v5527_v37  ;;  %v7798_v29 = vld [vmem:[%s8450_s27 + $0x4ac] sm:$0xf0] }
  0xb1   : > { %1426 = vmatpush.bf16.msra.mxu1 %v5350_v18  ;;  %v7693_v23 = vld [vmem:[%s8450_s27 + $0x16c] sm:$0xf]  ;;  %v5399_v18 = vld [vmem:[%s8450_s27 + $0x178] sm:$0xf0]  ;;  %v5274_v58 = vor.u32 %v7661_v39, %v5271_v49  ;;  %v5917_v39 = vld [vmem:[%s8450_s27 + $0x480] sm:$0xf] }
  0xb2   : > { %1445 = vmatpush.bf16.msra.mxu2 %v5478_v48  ;;  %v5674_v48 = vor.u32 %v7761_v30, %v5671_v16  ;;  %v7757_v52 = vld [vmem:[%s8450_s27 + $0x36c] sm:$0xf]  ;;  %v5655_v55 = vld [vmem:[%s8450_s27 + $0x378] sm:$0xf0]  ;;  %v5402_v56 = vor.u32 %v7693_v23, %v5399_v18  ;;  %v5966_v30 = vor.u32 %v7806_v36, %v5965_v46  ;;  %v7802_v16 = vld [vmem:[%s8450_s27 + $0x4cc] sm:$0xf0] }
  0xb3   : > { %1337 = vmatmul.bf16.gmra.mxu0 %v8876_v19  ;;  %1464 = vmatpush.bf16.msra.mxu3 %v5606_v4  ;;  %v7721_v4 = vld [vmem:[%s8450_s27 + $0x24c] sm:$0xf]  ;;  %v5383_v60 = vld [vmem:[%s8450_s27 + $0x158] sm:$0xf0]  ;;  %v5901_v49 = vld [vmem:[%s8450_s27 + $0x460] sm:$0xf] }
  0xb4   : > { %1356 = vmatmul.bf16.gmra.mxu1 %v8878_v50  ;;  %1476 = vmatpush.bf16.msrb.mxu0 %v5338_v9  ;;  %v7689_v59 = vld [vmem:[%s8450_s27 + $0x14c] sm:$0xf]  ;;  %v5658_v9 = vor.u32 %v7757_v52, %v5655_v55  ;;  %v5255_v14 = vld [vmem:[%s8450_s27 + $0x58] sm:$0xf0]  ;;  %v7790_v23 = vld [vmem:[%s8450_s27 + $0x46c] sm:$0xf0] }
  0xb5   : > { %1495 = vmatpush.bf16.msrb.mxu1 %v5466_v61  ;;  %1375 = vmatmul.bf16.gmra.mxu2 %v8922_v32  ;;  %v7657_v61 = vld [vmem:[%s8450_s27 + $0x4c] sm:$0xf]  ;;  %v5386_v25 = vor.u32 %v7689_v59, %v5383_v60  ;;  %v5495_v2 = vld [vmem:[%s8450_s27 + $0x238] sm:$0xf0]  ;;  %v7786_v18 = vld [vmem:[%s8450_s27 + $0x44c] sm:$0xf0] }
  0xb6   : > { %1514 = vmatpush.bf16.msrb.mxu2 %v5594_v57  ;;  %v5511_v57 = vld [vmem:[%s8450_s27 + $0x258] sm:$0xf0]  ;;  %v7753_v63 = vld [vmem:[%s8450_s27 + $0x34c] sm:$0xf]  ;;  %v5258_v3 = vor.u32 %v7657_v61, %v5255_v14  ;;  %v5869_v52 = vld [vmem:[%s8450_s27 + $0x420] sm:$0xf] }
  0xb7   : > { %1533 = vmatpush.bf16.msrb.mxu3 %v5722_v0  ;;  %v5514_v62 = vor.u32 %v7721_v4, %v5511_v57  ;;  %v5639_v0 = vld [vmem:[%s8450_s27 + $0x358] sm:$0xf0]  ;;  %v7717_v1 = vld [vmem:[%s8450_s27 + $0x22c] sm:$0xf]  ;;  %v7782_v55 = vld [vmem:[%s8450_s27 + $0x42c] sm:$0xf0] }
  0xb8   : > { %1477 = vmatpush.bf16.msrb.mxu0 %v5322_v6  ;;  %v7685_v13 = vld [vmem:[%s8450_s27 + $0x12c] sm:$0xf]  ;;  %v5367_v15 = vld [vmem:[%s8450_s27 + $0x138] sm:$0xf0]  ;;  %v5642_v5 = vor.u32 %v7753_v63, %v5639_v0  ;;  %v5498_v7 = vor.u32 %v7717_v1, %v5495_v2  ;;  %v7838_v61 = vld [vmem:[%s8450_s27 + $0x5ec] sm:$0xf0] }
  0xb9   : > { %1496 = vmatpush.bf16.msrb.mxu1 %v5450_v51  ;;  %v5239_v6 = vld [vmem:[%s8450_s27 + $0x38] sm:$0xf0]  ;;  %v7749_v8 = vld [vmem:[%s8450_s27 + $0x32c] sm:$0xf]  ;;  %v7804_v14 = vld [vmem:[%s8450_s27 + $0x4e4] sm:$0xf] }
  0xba   : > { %1515 = vmatpush.bf16.msrb.mxu2 %v5578_v43  ;;  %v7653_v43 = vld [vmem:[%s8450_s27 + $0x2c] sm:$0xf]  ;;  %v5623_v51 = vld [vmem:[%s8450_s27 + $0x338] sm:$0xf0]  ;;  %v7826_v46 = vld [vmem:[%s8450_s27 + $0x58c] sm:$0xf0] }
  0xbb   : > { %1534 = vmatpush.bf16.msrb.mxu3 %v5706_v17  ;;  %v5370_v17 = vor.u32 %v7685_v13, %v5367_v15  ;;  %v7713_v11 = vld [vmem:[%s8450_s27 + $0x20c] sm:$0xf]  ;;  %v5479_v26 = vld [vmem:[%s8450_s27 + $0x218] sm:$0xf0]  ;;  %v5242_v27 = vor.u32 %v7653_v43, %v5239_v6  ;;  %v5626_v54 = vor.u32 %v7749_v8, %v5623_v51  ;;  %v6077_v15 = vld [vmem:[%s8450_s27 + $0x5c0] sm:$0xf] }
  0xbc   : > { %1478 = vmatpush.bf16.msrb.mxu0 %v5306_v22  ;;  %v7681_v12 = vld [vmem:[%s8450_s27 + $0x10c] sm:$0xf]  ;;  %v5351_v53 = vld [vmem:[%s8450_s27 + $0x118] sm:$0xf0]  ;;  %v7800_v43 = vld [vmem:[%s8450_s27 + $0x4c4] sm:$0xf] }
  0xbd   : > { %1497 = vmatpush.bf16.msrb.mxu1 %v5434_v44  ;;  %1394 = vmatmul.bf16.gmra.mxu3 %v8946_v42  ;;  %v5223_v22 = vld [vmem:[%s8450_s27 + $0x18] sm:$0xf0]  ;;  %v5482_v44 = vor.u32 %v7713_v11, %v5479_v26  ;;  %v5354_v21 = vor.u32 %v7681_v12, %v5351_v53  ;;  %v6061_v11 = vld [vmem:[%s8450_s27 + $0x5a0] sm:$0xf]  ;;  %v7830_v26 = vld [vmem:[%s8450_s27 + $0x5ac] sm:$0xf0] }
  0xbe   : > { %1516 = vmatpush.bf16.msrb.mxu2 %v5562_v10  ;;  %v7649_v10 = vld [vmem:[%s8450_s27 + $0xc] sm:$0xf]  ;;  %v5607_v33 = vld [vmem:[%s8450_s27 + $0x318] sm:$0xf0]  ;;  %v7792_v36 = vld [vmem:[%s8450_s27 + $0x484] sm:$0xf] }
  0xbf   : > { %1535 = vmatpush.bf16.msrb.mxu3 %v5690_v28  ;;  %v7745_v28 = vld [vmem:[%s8450_s27 + $0x30c] sm:$0xf]  ;;  %v5226_v45 = vor.u32 %v7649_v10, %v5223_v22  ;;  %v5935_v10 = vld [vmem:[%s8450_s27 + $0x4b0] sm:$0xf0] }
  0xc0   : > { %1479 = vmatpush.bf16.msrb.mxu0 %v5290_v41  ;;  %v5610_v31 = vor.u32 %v7745_v28, %v5607_v33  ;;  %v5933_v41 = vld [vmem:[%s8450_s27 + $0x4a0] sm:$0xf] }
  0xc1   : > { %1498 = vmatpush.bf16.msrb.mxu1 %v5418_v40  ;;  %v5934_v37 = vor.u32 %v7798_v29, %v5933_v41 }
  0xc2   : > { %1517 = vmatpush.bf16.msrb.mxu2 %v5546_v34  ;;  %v5949_v34 = vld [vmem:[%s8450_s27 + $0x4c0] sm:$0xf] }
  0xc3   : > { %1408 = vmatmul.bf16.vlgmr.msra.gmra.mxu0 %v8783_v20  ;;  %1536 = vmatpush.bf16.msrb.mxu3 %v5674_v48  ;;  %v5950_v40 = vor.u32 %v7802_v16, %v5949_v34 }
  0xc4   : > { %1427 = vmatmul.bf16.vlgmr.msra.gmra.mxu1 %v8790_v24  ;;  %1480 = vmatpush.bf16.msrb.mxu0 %v5274_v58  ;;  %v7778_v58 = vld [vmem:[%s8450_s27 + $0x40c] sm:$0xf0] }
  0xc5   : > { %1499 = vmatpush.bf16.msrb.mxu1 %v5402_v56  ;;  %1446 = vmatmul.bf16.vlgmr.msra.gmra.mxu2 %v8798_v38  ;;  %v9083_v56 = vld [vmem:[%s8456_s5] sm:$0xf] }
  0xc6   : > { %1518 = vmatpush.bf16.msrb.mxu2 %v5530_v47 }
  0xc7   : > { %1537 = vmatpush.bf16.msrb.mxu3 %v5658_v9  ;;  %v6093_v9 = vld [vmem:[%s8450_s27 + $0x5e0] sm:$0xf] }
  0xc8   : > { %1481 = vmatpush.bf16.msrb.mxu0 %v5258_v3  ;;  %v6094_v0 = vor.u32 %v7838_v61, %v6093_v9  ;;  %v5997_v9 = vld [vmem:[%s8450_s27 + $0x520] sm:$0xf]  ;;  %v7814_v61 = vld [vmem:[%s8450_s27 + $0x52c] sm:$0xf0] }
  0xc9   : > { %1500 = vmatpush.bf16.msrb.mxu1 %v5386_v25  ;;  %v5967_v25 = vld [vmem:[%s8450_s27 + $0x4f0] sm:$0xf0] }
  0xca   : > { %1519 = vmatpush.bf16.msrb.mxu2 %v5514_v62  ;;  %v5970_v3 = vor.u32 %v7804_v14, %v5967_v25  ;;  %v7780_v14 = vld [vmem:[%s8450_s27 + $0x424] sm:$0xf] }
  0xcb   : > { %1538 = vmatpush.bf16.msrb.mxu3 %v5642_v5  ;;  %v7834_v5 = vld [vmem:[%s8450_s27 + $0x5cc] sm:$0xf0] }
  0xcc   : > { %1482 = vmatpush.bf16.msrb.mxu0 %v5242_v27  ;;  %v6078_v6 = vor.u32 %v7834_v5, %v6077_v15  ;;  %v7796_v27 = vld [vmem:[%s8450_s27 + $0x4a4] sm:$0xf] }
  0xcd   : > { %1501 = vmatpush.bf16.msrb.mxu1 %v5370_v17  ;;  %1465 = vmatmul.bf16.vlgmr.msra.gmra.mxu3 %v8808_v35  ;;  %v5938_v33 = vor.u32 %v7796_v27, %v5935_v10  ;;  %v7836_v27 = vld [vmem:[%s8450_s27 + $0x5e4] sm:$0xf] }
  0xce   : > { %1520 = vmatpush.bf16.msrb.mxu2 %v5498_v7  ;;  %v5951_v7 = vld [vmem:[%s8450_s27 + $0x4d0] sm:$0xf0] }
  0xcf   : > { %1539 = vmatpush.bf16.msrb.mxu3 %v5626_v54  ;;  %v5954_v51 = vor.u32 %v7800_v43, %v5951_v7  ;;  %v6062_v54 = vor.u32 %v7830_v26, %v6061_v11  ;;  %v6221_v11 = vld [vmem:[%s8450_s27 + $0x6e0] sm:$0xf]  ;;  %v7870_v26 = vld [vmem:[%s8450_s27 + $0x6ec] sm:$0xf0] }
  0xd0   : > { %1483 = vmatpush.bf16.msrb.mxu0 %v5226_v45 }
  0xd1   : > { %1502 = vmatpush.bf16.msrb.mxu1 %v5354_v21 }
  0xd2   : > { %1521 = vmatpush.bf16.msrb.mxu2 %v5482_v44 }
  0xd3   : > { %1413 = vmatmul.bf16.gmra.mxu0 %v8876_v19  ;;  %1540 = vmatpush.bf16.msrb.mxu3 %v5610_v31  ;;  %v6045_v31 = vld [vmem:[%s8450_s27 + $0x580] sm:$0xf] }
  0xd4   : > { %1432 = vmatmul.bf16.gmra.mxu1 %v8878_v50  ;;  %2402 = vmatpush.bf16.msra.mxu0 %v5966_v30  ;;  %v6046_v34 = vor.u32 %v7826_v46, %v6045_v31  ;;  %v5919_v30 = vld [vmem:[%s8450_s27 + $0x490] sm:$0xf0]  ;;  %v6205_v46 = vld [vmem:[%s8450_s27 + $0x6c0] sm:$0xf] }
  0xd5   : > { %1451 = vmatmul.bf16.gmra.mxu2 %v8922_v32  ;;  %2421 = vmatpush.bf16.msra.mxu1 %v6094_v0  ;;  %v5922_v41 = vor.u32 %v7792_v36, %v5919_v30  ;;  %v5871_v0 = vld [vmem:[%s8450_s27 + $0x430] sm:$0xf0]  ;;  %v7866_v36 = vld [vmem:[%s8450_s27 + $0x6cc] sm:$0xf0] }
  0xd6   : > { %v6206_v30 = vor.u32 %v7866_v36, %v6205_v46 }
  0xd8   : > { %2403 = vmatpush.bf16.msra.mxu0 %v5950_v40 }
  0xd9   : > { %2422 = vmatpush.bf16.msra.mxu1 %v6078_v6  ;;  %v5855_v6 = vld [vmem:[%s8450_s27 + $0x410] sm:$0xf0] }
  0xdc   : > { %2404 = vmatpush.bf16.msra.mxu0 %v5934_v37  ;;  %v6029_v37 = vld [vmem:[%s8450_s27 + $0x560] sm:$0xf] }
  0xdd   : > { %1470 = vmatmul.bf16.gmra.mxu3 %v8946_v42  ;;  %2423 = vmatpush.bf16.msra.mxu1 %v6062_v54  ;;  %v6095_v54 = vld [vmem:[%s8450_s27 + $0x5f0] sm:$0xf0] }
  0xe1   : > { %2424 = vmatpush.bf16.msra.mxu1 %v6046_v34 }
  0xe3   : > { %1484 = vmatmul.bf16.vlgmr.msrb.gmra.mxu0 %v8783_v20  ;;  %v7794_v20 = vld [vmem:[%s8450_s27 + $0x48c] sm:$0xf0] }
  0xe4   : > { %1503 = vmatmul.bf16.vlgmr.msrb.gmra.mxu1 %v8790_v24  ;;  %v5918_v48 = vor.u32 %v7794_v20, %v5917_v39  ;;  %v5902_v24 = vor.u32 %v7790_v23, %v5901_v49  ;;  %v7822_v39 = vld [vmem:[%s8450_s27 + $0x56c] sm:$0xf0]  ;;  %v7788_v20 = vld [vmem:[%s8450_s27 + $0x464] sm:$0xf] }
  0xe5   : > { %1522 = vmatmul.bf16.vlgmr.msrb.gmra.mxu2 %v8798_v38  ;;  %v5885_v38 = vld [vmem:[%s8450_s27 + $0x440] sm:$0xf] }
  0xe6   : > { %2405 = vmatpush.bf16.msra.mxu0 %v5918_v48  ;;  %v5886_v47 = vor.u32 %v7786_v18, %v5885_v38  ;;  %v5903_v38 = vld [vmem:[%s8450_s27 + $0x470] sm:$0xf0] }
  0xea   : > { %2406 = vmatpush.bf16.msra.mxu0 %v5902_v24  ;;  %v6030_v24 = vor.u32 %v7822_v39, %v6029_v37  ;;  %v7803_v39 = vld [vmem:[%s8450_s27 + $0x4d4] sm:$0xf0] }
  0xec   : > { %2425 = vmatpush.bf16.msra.mxu1 %v6030_v24  ;;  %v6189_v24 = vld [vmem:[%s8450_s27 + $0x6a0] sm:$0xf] }
  0xed   : > { %1541 = vmatmul.bf16.vlgmr.msrb.gmra.mxu3 %v8808_v35  ;;  %v5870_v35 = vor.u32 %v7782_v55, %v5869_v52 }
  0xee   : > { %2407 = vmatpush.bf16.msra.mxu0 %v5886_v47  ;;  %v5906_v47 = vor.u32 %v7788_v20, %v5903_v38  ;;  %v7862_v38 = vld [vmem:[%s8450_s27 + $0x6ac] sm:$0xf0] }
  0xf2   : > { %2408 = vmatpush.bf16.msra.mxu0 %v5870_v35  ;;  %v6013_v35 = vld [vmem:[%s8450_s27 + $0x540] sm:$0xf] }
  0xf3   : > { %1489 = vmatmul.bf16.gmra.mxu0 %v8876_v19  ;;  %v9086_v19 = vperm.slane %v9083_v56, 0 }
  0xf4   : > { %1508 = vmatmul.bf16.gmra.mxu1 %v8878_v50 }
  0xf5   : > { %1527 = vmatmul.bf16.gmra.mxu2 %v8922_v32  ;;  %v5853_v32 = vld [vmem:[%s8450_s27 + $0x400] sm:$0xf] }
  0xf6   : > { %v5854_v59 = vor.u32 %v7778_v58, %v5853_v32  ;;  %v5887_v58 = vld [vmem:[%s8450_s27 + $0x450] sm:$0xf0] }
  0xf8   : > { %2409 = vmatpush.bf16.msra.mxu0 %v5854_v59 }
  0xfc   : > { %2478 = vmatpush.bf16.msrb.mxu0 %v5970_v3  ;;  %v7810_v3 = vld [vmem:[%s8450_s27 + $0x50c] sm:$0xf0] }
  0xfd   : > { %1546 = vmatmul.bf16.gmra.mxu3 %v8946_v42 }
 0x100   : > { %v1257_v50 = vpop.f32.mrf.mxu0  ;;  %2479 = vmatpush.bf16.msrb.mxu0 %v5954_v51 }
 0x101   : > { %v1258_v4 = vadd.f32 %v1257_v50, %v9086_v19  ;;  %v1276_v57 = vpop.f32.mrf.mxu1  ;;  %v7818_v50 = vld [vmem:[%s8450_s27 + $0x54c] sm:$0xf0] }
 0x102   : > { %v6014_v32 = vor.u32 %v7818_v50, %v6013_v35  ;;  %v6190_v35 = vor.u32 %v7862_v38, %v6189_v24  ;;  %v6063_v50 = vld [vmem:[%s8450_s27 + $0x5b0] sm:$0xf0]  ;;  %v7812_v24 = vld [vmem:[%s8450_s27 + $0x524] sm:$0xf] }
 0x103   : > { %v1277_v60 = vadd.f32 %v1276_v57, %v1258_v4  ;;  %v7784_v4 = vld [vmem:[%s8450_s27 + $0x444] sm:$0xf] }
 0x104   : > { %2480 = vmatpush.bf16.msrb.mxu0 %v5938_v33  ;;  %v5890_v59 = vor.u32 %v7784_v4, %v5887_v58  ;;  %2426 = vmatpush.bf16.msra.mxu1 %v6014_v32  ;;  %v5941_v32 = vld [vmem:[%s8450_s27 + $0x4a8] sm:$0xf]  ;;  %v7799_v58 = vld [vmem:[%s8450_s27 + $0x4b4] sm:$0xf0] }
 0x108   : > { %v1295_v62 = vpop.f32.mrf.mxu2  ;;  %v1259_v63 = vpop.f32.mrf.mxu0  ;;  %2481 = vmatpush.bf16.msrb.mxu0 %v5922_v41  ;;  %v5957_v41 = vld [vmem:[%s8450_s27 + $0x4c8] sm:$0xf] }
 0x109   : > { %v1296_v1 = vadd.f32 %v1295_v62, %v1277_v60  ;;  %v1314_v2 = vpop.f32.mrf.mxu3  ;;  %v1278_v42 = vpop.f32.mrf.mxu1  ;;  %v1260_v13 = vadd.f32 %v1259_v63, %v9086_v19  ;;  %v5998_v63 = vor.u32 %v7814_v61, %v5997_v9  ;;  %v5942_v61 = vor.u32 %v7799_v58, %v5941_v32 }
 0x10b   : > { %v1315_v8 = vadd.f32 %v1314_v2, %v1296_v1  ;;  %v1279_v17 = vadd.f32 %v1278_v42, %v1260_v13  ;;  %v5874_v1 = vor.u32 %v7780_v14, %v5871_v0  ;;  %2427 = vmatpush.bf16.msra.mxu1 %v5998_v63  ;;  %v5981_v42 = vld [vmem:[%s8450_s27 + $0x500] sm:$0xf]  ;;  %v7776_v13 = vld [vmem:[%s8450_s27 + $0x404] sm:$0xf]  ;;  %v7858_v63 = vld [vmem:[%s8450_s27 + $0x68c] sm:$0xf0] }
 0x10c   : > { %2482 = vmatpush.bf16.msrb.mxu0 %v5906_v47  ;;  %v5982_v43 = vor.u32 %v7810_v3, %v5981_v42  ;;  %v6047_v42 = vld [vmem:[%s8450_s27 + $0x590] sm:$0xf0]  ;;  %v5925_v3 = vld [vmem:[%s8450_s27 + $0x488] sm:$0xf] }
 0x10d   : > { %v1568_v22 = vmul.f32 0.2, %v1315_v8  ;;  %vm1552_vm8 = vcmp.ge.f32.partialorder %v1315_v8, 0.0 }
 0x10f   : > { %v1584_v16 = vsel %vm1552_vm8, %v1315_v8, %v1568_v22  ;;  %v5858_v8 = vor.u32 %v7776_v13, %v5855_v6  ;;  %2428 = vmatpush.bf16.msra.mxu1 %v5982_v43  ;;  %v6098_v22 = vor.u32 %v7836_v27, %v6095_v54  ;;  %v7795_v43 = vld [vmem:[%s8450_s27 + $0x494] sm:$0xf0] }
 0x110   : > { %v1297_v12 = vpop.f32.mrf.mxu2  ;;  %v1262_v53 = vpop.f32.mrf.mxu0  ;;  %v1600_v48 = vmul.f32 1.4142135, %v1584_v16  ;;  %2483 = vmatpush.bf16.msrb.mxu0 %v5890_v59  ;;  %v7832_v16 = vld [vmem:[%s8450_s27 + $0x5c4] sm:$0xf] }
 0x111   : > { %v1298_v44 = vadd.f32 %v1297_v12, %v1279_v17  ;;  %v1281_v28 = vpop.f32.mrf.mxu1  ;;  %v1316_v21 = vpop.f32.mrf.mxu3  ;;  %v1263_v52 = vadd.f32 %v1262_v53, %v9086_v19  ;;  %v9131_v17 = vperm.slane %v9083_v56, 1  ;;  %v6222_v53 = vor.u32 %v7870_v26, %v6221_v11  ;;  %v7820_v11 = vld [vmem:[%s8450_s27 + $0x564] sm:$0xf] }
 0x113   : > { %v1317_v45 = vadd.f32 %v1316_v21, %v1298_v44  ;;  %v1282_v60 = vadd.f32 %v1281_v28, %v1263_v52  ;;  %v5973_v44 = vld [vmem:[%s8450_s27 + $0x4e8] sm:$0xf]  ;;  %v7807_v28 = vld [vmem:[%s8450_s27 + $0x4f4] sm:$0xf0]  ;;  %2440 = vmatpush.bf16.msra.mxu2 %v6222_v53  ;;  %2497 = vmatpush.bf16.msrb.mxu1 %v6098_v22 }
 0x114   : > { %2484 = vmatpush.bf16.msrb.mxu0 %v5874_v1  ;;  %v5909_v22 = vld [vmem:[%s8450_s27 + $0x468] sm:$0xf] }
 0x115   : > { %vm1556_vm9 = vcmp.ge.f32.partialorder %v1317_v45, 0.0  ;;  %v1572_v40 = vmul.f32 0.2, %v1317_v45 }
 0x117   : > { %v1588_v29 = vsel %vm1556_vm9, %v1317_v45, %v1572_v40  ;;  %v5974_v45 = vor.u32 %v7807_v28, %v5973_v44  ;;  %v6079_v40 = vld [vmem:[%s8450_s27 + $0x5d0] sm:$0xf0]  ;;  %2441 = vmatpush.bf16.msra.mxu2 %v6206_v30  ;;  %v7791_v44 = vld [vmem:[%s8450_s27 + $0x474] sm:$0xf0] }
 0x118   : > { %v1604_v49 = vmul.f32 1.4142135, %v1588_v29  ;;  %v1264_v23 = vpop.f32.mrf.mxu0  ;;  %v1300_v57 = vpop.f32.mrf.mxu2  ;;  %2485 = vmatpush.bf16.msrb.mxu0 %v5858_v8  ;;  %v6082_v37 = vor.u32 %v7832_v16, %v6079_v40  ;;  %v6157_v8 = vld [vmem:[%s8450_s27 + $0x660] sm:$0xf]  ;;  %v6015_v30 = vld [vmem:[%s8450_s27 + $0x550] sm:$0xf0] }
 0x119   : > { %v1283_v18 = vpop.f32.mrf.mxu1  ;;  %v1301_v2 = vadd.f32 %v1300_v57, %v1282_v60  ;;  %v1265_v15 = vadd.f32 %v1264_v23, %v9086_v19  ;;  %v5893_v16 = vld [vmem:[%s8450_s27 + $0x448] sm:$0xf] }
 0x11a   : > { %v9114_v55 = vpack.c.bf16 %v1604_v49, %v1600_v48  ;;  %v5958_v49 = vor.u32 %v7803_v39, %v5957_v41  ;;  %2498 = vmatpush.bf16.msrb.mxu1 %v6082_v37 }
 0x11b   : > { %v1284_v12 = vadd.f32 %v1283_v18, %v1265_v15  ;;  %v7828_v18 = vld [vmem:[%s8450_s27 + $0x5a4] sm:$0xf]  ;;  %2442 = vmatpush.bf16.msra.mxu2 %v6190_v35 }
 0x11c   : > { %2410 = vmatmul.bf16.vlgmr.msra.gmra.mxu0 %v9114_v55  ;;  %v6066_v57 = vor.u32 %v7828_v18, %v6063_v50 }
 0x11d   : > { %2554 = vmatpush.bf16.msra.mxu0 %v5974_v45  ;;  %v6141_v45 = vld [vmem:[%s8450_s27 + $0x640] sm:$0xf] }
 0x11e   : > { %2499 = vmatpush.bf16.msrb.mxu1 %v6066_v57  ;;  %v7783_v57 = vld [vmem:[%s8450_s27 + $0x434] sm:$0xf0] }
 0x120   : > { %v1333_v62 = vpop.f32.mrf.mxu0  ;;  %v1302_v5 = vpop.f32.mrf.mxu2 }
 0x121   : > { %v1352_v25 = vpop.f32.mrf.mxu1  ;;  %v1319_v7 = vpop.f32.mrf.mxu3  ;;  %v1303_v33 = vadd.f32 %v1302_v5, %v1284_v12  ;;  %v1334_v21 = vadd.f32 %v1333_v62, %v9131_v17  ;;  %2555 = vmatpush.bf16.msra.mxu0 %v5958_v49  ;;  %v6173_v62 = vld [vmem:[%s8450_s27 + $0x680] sm:$0xf] }
 0x122   : > { %v1320_v51 = vadd.f32 %v1319_v7, %v1301_v2  ;;  %v6174_v1 = vor.u32 %v7858_v63, %v6173_v62  ;;  %v7824_v2 = vld [vmem:[%s8450_s27 + $0x584] sm:$0xf]  ;;  %v5926_v7 = vor.u32 %v7795_v43, %v5925_v3  ;;  %v6125_v49 = vld [vmem:[%s8450_s27 + $0x620] sm:$0xf] }
 0x123   : > { %v1353_v48 = vadd.f32 %v1352_v25, %v1334_v21  ;;  %v6050_v5 = vor.u32 %v7824_v2, %v6047_v42  ;;  %v5861_v2 = vld [vmem:[%s8450_s27 + $0x408] sm:$0xf] }
 0x124   : > { %vm1560_vm10 = vcmp.ge.f32.partialorder %v1320_v51, 0.0  ;;  %v1576_v31 = vmul.f32 0.2, %v1320_v51  ;;  %2443 = vmatpush.bf16.msra.mxu2 %v6174_v1  ;;  %v5983_v1 = vld [vmem:[%s8450_s27 + $0x510] sm:$0xf0] }
 0x125   : > { %2556 = vmatpush.bf16.msra.mxu0 %v5942_v61  ;;  %2500 = vmatpush.bf16.msrb.mxu1 %v6050_v5  ;;  %v6109_v61 = vld [vmem:[%s8450_s27 + $0x600] sm:$0xf]  ;;  %v7779_v5 = vld [vmem:[%s8450_s27 + $0x414] sm:$0xf0] }
 0x126   : > { %v1592_v23 = vsel %vm1560_vm10, %v1320_v51, %v1576_v31  ;;  %v7854_v51 = vld [vmem:[%s8450_s27 + $0x66c] sm:$0xf0] }
 0x127   : > { %v1608_v59 = vmul.f32 1.4142135, %v1592_v23  ;;  %v6158_v12 = vor.u32 %v7854_v51, %v6157_v8  ;;  %v7850_v31 = vld [vmem:[%s8450_s27 + $0x64c] sm:$0xf0]  ;;  %v7868_v51 = vld [vmem:[%s8450_s27 + $0x6e4] sm:$0xf] }
 0x128   : > { %v1335_v19 = vpop.f32.mrf.mxu0  ;;  %v1371_v34 = vpop.f32.mrf.mxu2  ;;  %v6142_v36 = vor.u32 %v7850_v31, %v6141_v45  ;;  %v7846_v23 = vld [vmem:[%s8450_s27 + $0x62c] sm:$0xf0] }
 0x129   : > { %v9137_v10 = vpop.f32.mrf.mxu1  ;;  %v1321_v29 = vpop.f32.mrf.mxu3  ;;  %v1372_v9 = vadd.f32 %v1371_v34, %v1353_v48  ;;  %v1336_v0 = vadd.f32 %v1335_v19, %v9131_v17  ;;  %2557 = vmatpush.bf16.msra.mxu0 %v5926_v7  ;;  %v6031_v19 = vld [vmem:[%s8450_s27 + $0x570] sm:$0xf0]  ;;  %2444 = vmatpush.bf16.msra.mxu2 %v6158_v12  ;;  %v7816_v34 = vld [vmem:[%s8450_s27 + $0x544] sm:$0xf]  ;;  %v6349_v7 = vld [vmem:[%s8450_s27 + $0x7e0] sm:$0xf] }
 0x12a   : > { %v1322_v20 = vadd.f32 %v1321_v29, %v1303_v33  ;;  %v6034_v54 = vor.u32 %v7820_v11, %v6031_v19  ;;  %v6018_v41 = vor.u32 %v7816_v34, %v6015_v30  ;;  %v7787_v29 = vld [vmem:[%s8450_s27 + $0x454] sm:$0xf0]  ;;  %v7902_v8 = vld [vmem:[%s8450_s27 + $0x7ec] sm:$0xf0]  ;;  %v6223_v12 = vld [vmem:[%s8450_s27 + $0x6f0] sm:$0xf0] }
 0x12b   : > { %v1355_v26 = vadd.f32 %v9137_v10, %v1336_v0  ;;  %v5910_v10 = vor.u32 %v7791_v44, %v5909_v22  ;;  %v6226_v19 = vor.u32 %v7868_v51, %v6223_v12  ;;  %v7839_v22 = vld [vmem:[%s8450_s27 + $0x5f4] sm:$0xf0]  ;;  %v7805_v44 = vld [vmem:[%s8450_s27 + $0x4ec] sm:$0xf]  ;;  %v6053_v51 = vld [vmem:[%s8450_s27 + $0x588] sm:$0xf] }
 0x12c   : > { %vm1564_vm11 = vcmp.ge.f32.partialorder %v1322_v20, 0.0  ;;  %v1580_v47 = vmul.f32 0.2, %v1322_v20  ;;  %2501 = vmatpush.bf16.msrb.mxu1 %v6034_v54  ;;  %v6101_v54 = vld [vmem:[%s8450_s27 + $0x5e8] sm:$0xf] }
 0x12d   : > { %2558 = vmatpush.bf16.msra.mxu0 %v5910_v10  ;;  %2445 = vmatpush.bf16.msra.mxu2 %v6142_v36  ;;  %v6102_v10 = vor.u32 %v7839_v22, %v6101_v54  ;;  %v7898_v36 = vld [vmem:[%s8450_s27 + $0x7cc] sm:$0xf0]  ;;  %v7793_v54 = vld [vmem:[%s8450_s27 + $0x48c] sm:$0xf]  ;;  %v5927_v22 = vld [vmem:[%s8450_s27 + $0x498] sm:$0xf0] }
 0x12e   : > { %v1596_v60 = vsel %vm1564_vm11, %v1322_v20, %v1580_v47  ;;  %v5894_v20 = vor.u32 %v7787_v29, %v5893_v16  ;;  %v6126_v47 = vor.u32 %v7846_v23, %v6125_v49  ;;  %v7864_v16 = vld [vmem:[%s8450_s27 + $0x6c4] sm:$0xf] }
 0x12f   : > { %v1612_v14 = vmul.f32 1.4142135, %v1596_v60 }
 0x130   : > { %v1338_v52 = vpop.f32.mrf.mxu0  ;;  %v1373_v25 = vpop.f32.mrf.mxu2  ;;  %2502 = vmatpush.bf16.msrb.mxu1 %v6018_v41  ;;  %v6085_v41 = vld [vmem:[%s8450_s27 + $0x5c8] sm:$0xf] }
 0x131   : > { %v1357_v4 = vpop.f32.mrf.mxu1  ;;  %v1390_v13 = vpop.f32.mrf.mxu3  ;;  %v9161_v15 = vpack.c.bf16 %v1612_v14, %v1608_v59  ;;  %v1374_v28 = vadd.f32 %v1373_v25, %v1355_v26  ;;  %v1339_v33 = vadd.f32 %v1338_v52, %v9131_v17  ;;  %2559 = vmatpush.bf16.msra.mxu0 %v5894_v20  ;;  %v5999_v52 = vld [vmem:[%s8450_s27 + $0x530] sm:$0xf0]  ;;  %2446 = vmatpush.bf16.msra.mxu2 %v6126_v47  ;;  %v7842_v14 = vld [vmem:[%s8450_s27 + $0x60c] sm:$0xf0]  ;;  %v7808_v25 = vld [vmem:[%s8450_s27 + $0x504] sm:$0xf] }
 0x132   : > { %v1391_v6 = vadd.f32 %v1390_v13, %v1372_v9  ;;  %v6002_v50 = vor.u32 %v7812_v24, %v5999_v52  ;;  %v6110_v0 = vor.u32 %v7842_v14, %v6109_v61  ;;  %v5986_v13 = vor.u32 %v7808_v25, %v5983_v1  ;;  %v7801_v20 = vld [vmem:[%s8450_s27 + $0x4cc] sm:$0xf]  ;;  %v6317_v47 = vld [vmem:[%s8450_s27 + $0x7a0] sm:$0xf]  ;;  %v7894_v52 = vld [vmem:[%s8450_s27 + $0x7ac] sm:$0xf0] }
 0x133   : > { %2415 = vmatmul.bf16.gmra.mxu0 %v9161_v15  ;;  %v1358_v39 = vadd.f32 %v1357_v4, %v1339_v33  ;;  %v5877_v4 = vld [vmem:[%s8450_s27 + $0x428] sm:$0xf] }
 0x134   : > { %vm1553_vm12 = vcmp.ge.f32.partialorder %v1391_v6, 0.0  ;;  %v1569_v21 = vmul.f32 0.2, %v1391_v6  ;;  %v5878_v60 = vor.u32 %v7783_v57, %v5877_v4  ;;  %2503 = vmatpush.bf16.msrb.mxu1 %v6002_v50  ;;  %v7860_v50 = vld [vmem:[%s8450_s27 + $0x6a4] sm:$0xf] }
 0x135   : > { %2447 = vmatpush.bf16.msra.mxu2 %v6110_v0  ;;  %v5943_v0 = vld [vmem:[%s8450_s27 + $0x4b8] sm:$0xf0] }
 0x136   : > { %v1585_v48 = vsel %vm1553_vm12, %v1391_v6, %v1569_v21  ;;  %2560 = vmatpush.bf16.msra.mxu0 %v5878_v60  ;;  %v9200_v6 = vperm.slane %v9083_v56, 2  ;;  %v5975_v21 = vld [vmem:[%s8450_s27 + $0x4f8] sm:$0xf0]  ;;  %v7831_v60 = vld [vmem:[%s8450_s27 + $0x5b4] sm:$0xf0] }
 0x137   : > { %v1601_v32 = vmul.f32 1.4142135, %v1585_v48  ;;  %v5978_v31 = vor.u32 %v7805_v44, %v5975_v21  ;;  %v5959_v48 = vld [vmem:[%s8450_s27 + $0x4d8] sm:$0xf0]  ;;  %v7852_v21 = vld [vmem:[%s8450_s27 + $0x664] sm:$0xf] }
 0x138   : > { %v1340_v27 = vpop.f32.mrf.mxu0  ;;  %v1376_v46 = vpop.f32.mrf.mxu2  ;;  %2504 = vmatpush.bf16.msrb.mxu1 %v5986_v13 }
 0x139   : > { %v9170_v53 = vpop.f32.mrf.mxu1  ;;  %v1392_v40 = vpop.f32.mrf.mxu3  ;;  %v1377_v59 = vadd.f32 %v1376_v46, %v1358_v39  ;;  %v1341_v62 = vadd.f32 %v1340_v27, %v9131_v17  ;;  %v5862_v17 = vor.u32 %v7779_v5, %v5861_v2  ;;  %v6350_v27 = vor.u32 %v7902_v8, %v6349_v7  ;;  %2516 = vmatpush.bf16.msrb.mxu2 %v6226_v19  ;;  %v6333_v46 = vld [vmem:[%s8450_s27 + $0x7c0] sm:$0xf]  ;;  %v7835_v39 = vld [vmem:[%s8450_s27 + $0x5d4] sm:$0xf0]  ;;  %v7856_v7 = vld [vmem:[%s8450_s27 + $0x684] sm:$0xf] }
 0x13a   : > { %v1393_v37 = vadd.f32 %v1392_v40, %v1374_v28  ;;  %v6334_v30 = vor.u32 %v7898_v36, %v6333_v46  ;;  %v6207_v40 = vld [vmem:[%s8450_s27 + $0x6d0] sm:$0xf0]  ;;  %v6086_v24 = vor.u32 %v7835_v39, %v6085_v41  ;;  %v6301_v2 = vld [vmem:[%s8450_s27 + $0x780] sm:$0xf]  ;;  %v7827_v19 = vld [vmem:[%s8450_s27 + $0x594] sm:$0xf0] }
 0x13b   : > { %v1360_v11 = vadd.f32 %v9170_v53, %v1341_v62  ;;  %2561 = vmatpush.bf16.msra.mxu0 %v5862_v17  ;;  %2459 = vmatpush.bf16.msra.mxu3 %v6350_v27  ;;  %v6175_v8 = vld [vmem:[%s8450_s27 + $0x690] sm:$0xf0]  ;;  %v6054_v44 = vor.u32 %v7827_v19, %v6053_v51  ;;  %v5879_v51 = vld [vmem:[%s8450_s27 + $0x438] sm:$0xf0] }
 0x13c   : > { %vm1557_vm13 = vcmp.ge.f32.partialorder %v1393_v37, 0.0  ;;  %v1573_v38 = vmul.f32 0.2, %v1393_v37  ;;  %v6178_v12 = vor.u32 %v7856_v7, %v6175_v8  ;;  %v6159_v46 = vld [vmem:[%s8450_s27 + $0x670] sm:$0xf0] }
 0x13e   : > { %v1589_v58 = vsel %vm1557_vm13, %v1393_v37, %v1573_v38  ;;  %v6210_v37 = vor.u32 %v7864_v16, %v6207_v40  ;;  %v5962_v38 = vor.u32 %v7801_v20, %v5959_v48  ;;  %v7823_v16 = vld [vmem:[%s8450_s27 + $0x574] sm:$0xf0]  ;;  %v7789_v40 = vld [vmem:[%s8450_s27 + $0x46c] sm:$0xf]  ;;  %v6269_v48 = vld [vmem:[%s8450_s27 + $0x740] sm:$0xf] }
 0x13f   : > { %v1605_v9 = vmul.f32 1.4142135, %v1589_v58  ;;  %2460 = vmatpush.bf16.msra.mxu3 %v6334_v30  ;;  %v6037_v30 = vld [vmem:[%s8450_s27 + $0x568] sm:$0xf] }
 0x140   : > { %v1409_v18 = vpop.f32.mrf.mxu0  ;;  %v1378_v63 = vpop.f32.mrf.mxu2  ;;  %2517 = vmatpush.bf16.msrb.mxu2 %v6210_v37  ;;  %v5911_v37 = vld [vmem:[%s8450_s27 + $0x478] sm:$0xf0] }
 0x141   : > { %v9186_v35 = vpop.f32.mrf.mxu1  ;;  %v1395_v42 = vpop.f32.mrf.mxu3  ;;  %v9196_v3 = vpack.c.bf16 %v1605_v9, %v1601_v32  ;;  %v1379_v28 = vadd.f32 %v1378_v63, %v1360_v11  ;;  %v1410_v53 = vadd.f32 %v1409_v18, %v9200_v6  ;;  %v6318_v32 = vor.u32 %v7894_v52, %v6317_v47  ;;  %v7797_v9 = vld [vmem:[%s8450_s27 + $0x4ac] sm:$0xf]  ;;  %v6021_v47 = vld [vmem:[%s8450_s27 + $0x548] sm:$0xf] }
 0x142   : > { %v1396_v43 = vadd.f32 %v1395_v42, %v1377_v59  ;;  %v6069_v59 = vld [vmem:[%s8450_s27 + $0x5a8] sm:$0xf]  ;;  %v5946_v1 = vor.u32 %v7797_v9, %v5943_v0  ;;  %v7890_v42 = vld [vmem:[%s8450_s27 + $0x78c] sm:$0xf0]  ;;  %v5914_v20 = vor.u32 %v7789_v40, %v5911_v37 }
 0x143   : > { %2429 = vmatmul.bf16.vlgmr.msra.gmra.mxu1 %v9196_v3  ;;  %2486 = vmatmul.bf16.vlgmr.msrb.gmra.mxu0 %v9114_v55  ;;  %v1429_v23 = vadd.f32 %v9186_v35, %v1410_v53  ;;  %v6191_v35 = vld [vmem:[%s8450_s27 + $0x6b0] sm:$0xf0]  ;;  %v6070_v63 = vor.u32 %v7831_v60, %v6069_v59  ;;  %v6302_v17 = vor.u32 %v7890_v42, %v6301_v2  ;;  %v6285_v53 = vld [vmem:[%s8450_s27 + $0x760] sm:$0xf]  ;;  %v6005_v42 = vld [vmem:[%s8450_s27 + $0x528] sm:$0xf] }
 0x144   : > { %vm1561_vm14 = vcmp.ge.f32.partialorder %v1396_v43, 0.0  ;;  %v1577_v45 = vmul.f32 0.2, %v1396_v43  ;;  %2573 = vmatpush.bf16.msra.mxu1 %v6102_v10  ;;  %2630 = vmatpush.bf16.msrb.mxu0 %v5978_v31  ;;  %v6194_v58 = vor.u32 %v7860_v50, %v6191_v35  ;;  %v7886_v10 = vld [vmem:[%s8450_s27 + $0x76c] sm:$0xf0] }
 0x145   : > { %2461 = vmatpush.bf16.msra.mxu3 %v6318_v32  ;;  %v6286_v31 = vor.u32 %v7886_v10, %v6285_v53  ;;  %v5895_v32 = vld [vmem:[%s8450_s27 + $0x458] sm:$0xf0]  ;;  %v7840_v53 = vld [vmem:[%s8450_s27 + $0x604] sm:$0xf]  ;;  %v6111_v10 = vld [vmem:[%s8450_s27 + $0x610] sm:$0xf0] }
 0x146   : > { %v1593_v18 = vsel %vm1561_vm14, %v1396_v43, %v1577_v45  ;;  %2518 = vmatpush.bf16.msrb.mxu2 %v6194_v58 }
 0x147   : > { %v1609_v61 = vmul.f32 1.4142135, %v1593_v18  ;;  %v6143_v18 = vld [vmem:[%s8450_s27 + $0x650] sm:$0xf0] }
 0x148   : > { %v9208_v26 = vpop.f32.mrf.mxu0  ;;  %v1447_v34 = vpop.f32.mrf.mxu2  ;;  %2574 = vmatpush.bf16.msra.mxu1 %v6086_v24  ;;  %2631 = vmatpush.bf16.msrb.mxu0 %v5962_v38  ;;  %v7848_v38 = vld [vmem:[%s8450_s27 + $0x644] sm:$0xf] }
 0x149   : > { %v9215_v33 = vpop.f32.mrf.mxu1  ;;  %v1397_v29 = vpop.f32.mrf.mxu3  ;;  %v1448_v62 = vadd.f32 %v1447_v34, %v1429_v23  ;;  %v1412_v13 = vadd.f32 %v9208_v26, %v9200_v6  ;;  %2462 = vmatpush.bf16.msra.mxu3 %v6302_v17  ;;  %v6162_v34 = vor.u32 %v7852_v21, %v6159_v46  ;;  %v6146_v50 = vor.u32 %v7848_v38, %v6143_v18  ;;  %v5989_v21 = vld [vmem:[%s8450_s27 + $0x508] sm:$0xf]  ;;  %v6103_v38 = vld [vmem:[%s8450_s27 + $0x5f8] sm:$0xf0] }
 0x14a   : > { %v1398_v49 = vadd.f32 %v1397_v29, %v1379_v28  ;;  %v5930_v28 = vor.u32 %v7793_v54, %v5927_v22  ;;  %2519 = vmatpush.bf16.msrb.mxu2 %v6178_v12  ;;  %v6038_v29 = vor.u32 %v7823_v16, %v6037_v30  ;;  %v6237_v54 = vld [vmem:[%s8450_s27 + $0x700] sm:$0xf]  ;;  %v7874_v22 = vld [vmem:[%s8450_s27 + $0x70c] sm:$0xf0]  ;;  %v6114_v46 = vor.u32 %v7840_v53, %v6111_v10  ;;  %v7777_v30 = vld [vmem:[%s8450_s27 + $0x40c] sm:$0xf] }
 0x14b   : > { %v1431_v45 = vadd.f32 %v9215_v33, %v1412_v13  ;;  %v7815_v13 = vld [vmem:[%s8450_s27 + $0x534] sm:$0xf0]  ;;  %v5863_v16 = vld [vmem:[%s8450_s27 + $0x418] sm:$0xf0] }
 0x14c   : > { %vm1565_vm15 = vcmp.ge.f32.partialorder %v1398_v49, 0.0  ;;  %v1581_v4 = vmul.f32 0.2, %v1398_v49  ;;  %2575 = vmatpush.bf16.msra.mxu1 %v6070_v63  ;;  %2632 = vmatpush.bf16.msrb.mxu0 %v5946_v1  ;;  %v7844_v63 = vld [vmem:[%s8450_s27 + $0x624] sm:$0xf]  ;;  %v6006_v8 = vor.u32 %v7815_v13, %v6005_v42  ;;  %v5866_v40 = vor.u32 %v7777_v30, %v5863_v16 }
 0x14d   : > { %2463 = vmatpush.bf16.msra.mxu3 %v6286_v31  ;;  %v6127_v1 = vld [vmem:[%s8450_s27 + $0x630] sm:$0xf0] }
 0x14e   : > { %v1597_v14 = vsel %vm1565_vm15, %v1398_v49, %v1581_v4  ;;  %v7882_v49 = vld [vmem:[%s8450_s27 + $0x74c] sm:$0xf0]  ;;  %2520 = vmatpush.bf16.msrb.mxu2 %v6162_v34  ;;  %v7819_v4 = vld [vmem:[%s8450_s27 + $0x554] sm:$0xf0]  ;;  %v6130_v2 = vor.u32 %v7844_v63, %v6127_v1  ;;  %v6319_v1 = vld [vmem:[%s8450_s27 + $0x7b0] sm:$0xf0] }
 0x14f   : > { %v1613_v25 = vmul.f32 1.4142135, %v1597_v14  ;;  %v6270_v24 = vor.u32 %v7882_v49, %v6269_v48  ;;  %v6022_v60 = vor.u32 %v7819_v4, %v6021_v47  ;;  %v6253_v14 = vld [vmem:[%s8450_s27 + $0x720] sm:$0xf]  ;;  %v7811_v34 = vld [vmem:[%s8450_s27 + $0x514] sm:$0xf0] }
 0x150   : > { %v1414_v57 = vpop.f32.mrf.mxu0  ;;  %v1449_v5 = vpop.f32.mrf.mxu2  ;;  %2576 = vmatpush.bf16.msra.mxu1 %v6054_v44  ;;  %2633 = vmatpush.bf16.msrb.mxu0 %v5930_v28  ;;  %v6238_v28 = vor.u32 %v7874_v22, %v6237_v54  ;;  %v7871_v49 = vld [vmem:[%s8450_s27 + $0x6f4] sm:$0xf0]  ;;  %v7888_v22 = vld [vmem:[%s8450_s27 + $0x784] sm:$0xf] }
 0x151   : > { %v1433_v43 = vpop.f32.mrf.mxu1  ;;  %v1466_v11 = vpop.f32.mrf.mxu3  ;;  %v9243_v27 = vpack.c.bf16 %v1613_v25, %v1609_v61  ;;  %v1450_v41 = vadd.f32 %v1449_v5, %v1431_v45  ;;  %v1415_v33 = vadd.f32 %v1414_v57, %v9200_v6  ;;  %v7785_v57 = vld [vmem:[%s8450_s27 + $0x44c] sm:$0xf]  ;;  %2464 = vmatpush.bf16.msra.mxu3 %v6270_v24 }
 0x152   : > { %v1467_v26 = vadd.f32 %v1466_v11, %v1448_v62  ;;  %v5898_v9 = vor.u32 %v7785_v57, %v5895_v32  ;;  %v7878_v62 = vld [vmem:[%s8450_s27 + $0x72c] sm:$0xf0]  ;;  %2521 = vmatpush.bf16.msrb.mxu2 %v6146_v50  ;;  %v7781_v5 = vld [vmem:[%s8450_s27 + $0x42c] sm:$0xf]  ;;  %v6335_v50 = vld [vmem:[%s8450_s27 + $0x7d0] sm:$0xf0] }
 0x153   : > { %2434 = vmatmul.bf16.gmra.mxu1 %v9243_v27  ;;  %2491 = vmatmul.bf16.gmra.mxu0 %v9161_v15  ;;  %v1434_v58 = vadd.f32 %v1433_v43, %v1415_v33  ;;  %v6254_v25 = vor.u32 %v7878_v62, %v6253_v14  ;;  %v5882_v19 = vor.u32 %v7781_v5, %v5879_v51  ;;  %v6351_v33 = vld [vmem:[%s8450_s27 + $0x7f0] sm:$0xf0]  ;;  %v7837_v24 = vld [vmem:[%s8450_s27 + $0x5ec] sm:$0xf]  ;;  %v6087_v14 = vld [vmem:[%s8450_s27 + $0x5d8] sm:$0xf0] }
 0x154   : > { %vm1554_vm0 = vcmp.ge.f32.partialorder %v1467_v26, 0.0  ;;  %v1570_v39 = vmul.f32 0.2, %v1467_v26  ;;  %2577 = vmatpush.bf16.msra.mxu1 %v6038_v29  ;;  %2634 = vmatpush.bf16.msrb.mxu0 %v5914_v20  ;;  %v6229_v29 = vld [vmem:[%s8450_s27 + $0x6e8] sm:$0xf] }
 0x155   : > { %2465 = vmatpush.bf16.msra.mxu3 %v6254_v25  ;;  %v7892_v25 = vld [vmem:[%s8450_s27 + $0x7a4] sm:$0xf] }
 0x156   : > { %v1586_v61 = vsel %vm1554_vm0, %v1467_v26, %v1570_v39  ;;  %2522 = vmatpush.bf16.msrb.mxu2 %v6130_v2  ;;  %v9295_v39 = vperm.slane %v9083_v56, 3  ;;  %v6106_v56 = vor.u32 %v7837_v24, %v6103_v38  ;;  %v6197_v2 = vld [vmem:[%s8450_s27 + $0x6a8] sm:$0xf]  ;;  %v6322_v5 = vor.u32 %v7892_v25, %v6319_v1  ;;  %v7821_v24 = vld [vmem:[%s8450_s27 + $0x56c] sm:$0xf] }
 0x157   : > { %v1602_v43 = vmul.f32 1.4142135, %v1586_v61  ;;  %v6039_v38 = vld [vmem:[%s8450_s27 + $0x578] sm:$0xf0]  ;;  %v6133_v25 = vld [vmem:[%s8450_s27 + $0x628] sm:$0xf] }
 0x158   : > { %v1416_v36 = vpop.f32.mrf.mxu0  ;;  %v1452_v23 = vpop.f32.mrf.mxu2  ;;  %2578 = vmatpush.bf16.msra.mxu1 %v6022_v60  ;;  %2635 = vmatpush.bf16.msrb.mxu0 %v5898_v9  ;;  %v7847_v1 = vld [vmem:[%s8450_s27 + $0x634] sm:$0xf0] }
 0x159   : > { %v1468_v52 = vpop.f32.mrf.mxu3  ;;  %v1435_v59 = vpop.f32.mrf.mxu1  ;;  %v1453_v7 = vadd.f32 %v1452_v23, %v1434_v58  ;;  %v1417_v26 = vadd.f32 %v1416_v36, %v9200_v6  ;;  %2466 = vmatpush.bf16.msra.mxu3 %v6238_v28  ;;  %v5990_v36 = vor.u32 %v7811_v34, %v5989_v21  ;;  %v6230_v23 = vor.u32 %v7871_v49, %v6229_v29  ;;  %v7867_v58 = vld [vmem:[%s8450_s27 + $0x6d4] sm:$0xf0]  ;;  %v6181_v21 = vld [vmem:[%s8450_s27 + $0x688] sm:$0xf] }
 0x15a   : > { %v1469_v35 = vadd.f32 %v1468_v52, %v1450_v41  ;;  %v7900_v41 = vld [vmem:[%s8450_s27 + $0x7e4] sm:$0xf]  ;;  %2523 = vmatpush.bf16.msrb.mxu2 %v6114_v46  ;;  %v7825_v46 = vld [vmem:[%s8450_s27 + $0x58c] sm:$0xf]  ;;  %v6165_v29 = vld [vmem:[%s8450_s27 + $0x668] sm:$0xf] }
 0x15b   : > { %v1436_v37 = vadd.f32 %v1435_v59, %v1417_v26  ;;  %v6354_v48 = vor.u32 %v7900_v41, %v6351_v33  ;;  %v7896_v52 = vld [vmem:[%s8450_s27 + $0x7c4] sm:$0xf]  ;;  %v7833_v59 = vld [vmem:[%s8450_s27 + $0x5cc] sm:$0xf]  ;;  %v6303_v26 = vld [vmem:[%s8450_s27 + $0x790] sm:$0xf0] }
 0x15c   : > { %vm1558_vm1 = vcmp.ge.f32.partialorder %v1469_v35, 0.0  ;;  %v1574_v0 = vmul.f32 0.2, %v1469_v35  ;;  %2579 = vmatpush.bf16.msra.mxu1 %v6006_v8  ;;  %2636 = vmatpush.bf16.msrb.mxu0 %v5882_v19  ;;  %v6338_v32 = vor.u32 %v7896_v52, %v6335_v50  ;;  %v6090_v63 = vor.u32 %v7833_v59, %v6087_v14  ;;  %v6071_v8 = vld [vmem:[%s8450_s27 + $0x5b8] sm:$0xf0] }
 0x15d   : > { %2535 = vmatpush.bf16.msrb.mxu3 %v6354_v48  ;;  %v6306_v10 = vor.u32 %v7888_v22, %v6303_v26  ;;  %v7884_v41 = vld [vmem:[%s8450_s27 + $0x764] sm:$0xf]  ;;  %v6287_v33 = vld [vmem:[%s8450_s27 + $0x770] sm:$0xf0]  ;;  %v7855_v49 = vld [vmem:[%s8450_s27 + $0x674] sm:$0xf0] }
 0x15e   : > { %v1590_v17 = vsel %vm1558_vm1, %v1469_v35, %v1574_v0  ;;  %v6213_v35 = vld [vmem:[%s8450_s27 + $0x6c8] sm:$0xf]  ;;  %v6290_v48 = vor.u32 %v7884_v41, %v6287_v33  ;;  %v6271_v52 = vld [vmem:[%s8450_s27 + $0x750] sm:$0xf0] }
 0x15f   : > { %v1606_v11 = vmul.f32 1.4142135, %v1590_v17  ;;  %v6214_v61 = vor.u32 %v7867_v58, %v6213_v35  ;;  %v6149_v50 = vld [vmem:[%s8450_s27 + $0x648] sm:$0xf]  ;;  %v7817_v35 = vld [vmem:[%s8450_s27 + $0x54c] sm:$0xf] }
 0x160   : > { %v1485_v12 = vpop.f32.mrf.mxu0  ;;  %v1454_v44 = vpop.f32.mrf.mxu2  ;;  %2580 = vmatpush.bf16.msra.mxu1 %v5990_v36  ;;  %2637 = vmatpush.bf16.msrb.mxu0 %v5866_v40  ;;  %v6023_v58 = vld [vmem:[%s8450_s27 + $0x558] sm:$0xf0]  ;;  %v6255_v14 = vld [vmem:[%s8450_s27 + $0x730] sm:$0xf0] }
 0x161   : > { %v1471_v45 = vpop.f32.mrf.mxu3  ;;  %v9283_v31 = vpack.c.bf16 %v1606_v11, %v1602_v43  ;;  %v1504_v20 = vpop.f32.mrf.mxu1  ;;  %v1455_v18 = vadd.f32 %v1454_v44, %v1436_v37  ;;  %v1486_v4 = vadd.f32 %v1485_v12, %v9295_v39  ;;  %2536 = vmatpush.bf16.msrb.mxu3 %v6338_v32  ;;  %v7863_v43 = vld [vmem:[%s8450_s27 + $0x6b4] sm:$0xf0] }
 0x162   : > { %v1472_v6 = vadd.f32 %v1471_v45, %v1453_v7  ;;  %v6198_v17 = vor.u32 %v7863_v43, %v6197_v2  ;;  %v7829_v7 = vld [vmem:[%s8450_s27 + $0x5ac] sm:$0xf]  ;;  %v7859_v45 = vld [vmem:[%s8450_s27 + $0x694] sm:$0xf0] }
 0x163   : > { %2448 = vmatmul.bf16.vlgmr.msra.gmra.mxu2 %v9283_v31  ;;  %2505 = vmatmul.bf16.vlgmr.msrb.gmra.mxu1 %v9196_v3  ;;  %v1505_v13 = vadd.f32 %v1504_v20, %v1486_v4  ;;  %v6074_v19 = vor.u32 %v7829_v7, %v6071_v8  ;;  %v6182_v16 = vor.u32 %v7859_v45, %v6181_v21  ;;  %v7851_v4 = vld [vmem:[%s8450_s27 + $0x654] sm:$0xf0]  ;;  %v6239_v7 = vld [vmem:[%s8450_s27 + $0x710] sm:$0xf0] }
 0x164   : > { %2562 = vmatmul.bf16.vlgmr.msra.gmra.mxu0 %v9114_v55  ;;  %vm1562_vm2 = vcmp.ge.f32.partialorder %v1472_v6, 0.0  ;;  %v1578_v47 = vmul.f32 0.2, %v1472_v6  ;;  %2592 = vmatpush.bf16.msra.mxu2 %v6230_v23  ;;  %v6166_v23 = vor.u32 %v7855_v49, %v6165_v29  ;;  %v7903_v29 = vld [vmem:[%s8450_s27 + $0x7f4] sm:$0xf0] }
 0x165   : > { %2649 = vmatpush.bf16.msrb.mxu1 %v6106_v56  ;;  %2537 = vmatpush.bf16.msrb.mxu3 %v6322_v5  ;;  %v6007_v5 = vld [vmem:[%s8450_s27 + $0x538] sm:$0xf0] }
 0x166   : > { %v1594_v0 = vsel %vm1562_vm2, %v1472_v6, %v1578_v47  ;;  %v6055_v6 = vld [vmem:[%s8450_s27 + $0x598] sm:$0xf0]  ;;  %v6042_v47 = vor.u32 %v7821_v24, %v6039_v38  ;;  %v6341_v24 = vld [vmem:[%s8450_s27 + $0x7c8] sm:$0xf]  ;;  %v7899_v38 = vld [vmem:[%s8450_s27 + $0x7d4] sm:$0xf0] }
 0x167   : > { %v1610_v51 = vmul.f32 1.4142135, %v1594_v0  ;;  %v6058_v36 = vor.u32 %v7825_v46, %v6055_v6  ;;  %v6026_v0 = vor.u32 %v7817_v35, %v6023_v58  ;;  %v6231_v49 = vld [vmem:[%s8450_s27 + $0x6f8] sm:$0xf0] }
 0x168   : > { %v1523_v57 = vpop.f32.mrf.mxu2  ;;  %v1487_v9 = vpop.f32.mrf.mxu0  ;;  %2593 = vmatpush.bf16.msra.mxu2 %v6214_v61  ;;  %v7876_v61 = vld [vmem:[%s8450_s27 + $0x724] sm:$0xf]  ;;  %v6199_v35 = vld [vmem:[%s8450_s27 + $0x6b8] sm:$0xf0] }
 0x169   : > { %v1473_v60 = vpop.f32.mrf.mxu3  ;;  %2650 = vmatpush.bf16.msrb.mxu1 %v6090_v63  ;;  %v1506_v12 = vpop.f32.mrf.mxu1  ;;  %v1524_v44 = vadd.f32 %v1523_v57, %v1505_v13  ;;  %v1488_v28 = vadd.f32 %v1487_v9, %v9295_v39  ;;  %2538 = vmatpush.bf16.msrb.mxu3 %v6306_v10  ;;  %v6150_v9 = vor.u32 %v7851_v4, %v6149_v50  ;;  %v7813_v13 = vld [vmem:[%s8450_s27 + $0x52c] sm:$0xf]  ;;  %v6325_v4 = vld [vmem:[%s8450_s27 + $0x7a8] sm:$0xf] }
 0x16a   : > { %v1474_v62 = vadd.f32 %v1473_v60, %v1455_v18  ;;  %v7880_v18 = vld [vmem:[%s8450_s27 + $0x744] sm:$0xf] }
 0x16b   : > { %v1507_v20 = vadd.f32 %v1506_v12, %v1488_v28  ;;  %v6274_v32 = vor.u32 %v7880_v18, %v6271_v52  ;;  %v7809_v28 = vld [vmem:[%s8450_s27 + $0x50c] sm:$0xf]  ;;  %v6215_v52 = vld [vmem:[%s8450_s27 + $0x6d8] sm:$0xf0] }
 0x16c   : > { %vm1566_vm3 = vcmp.ge.f32.partialorder %v1474_v62, 0.0  ;;  %v1582_v42 = vmul.f32 0.2, %v1474_v62  ;;  %2594 = vmatpush.bf16.msra.mxu2 %v6198_v17  ;;  %v7872_v17 = vld [vmem:[%s8450_s27 + $0x704] sm:$0xf] }
 0x16d   : > { %2651 = vmatpush.bf16.msrb.mxu1 %v6074_v19  ;;  %2539 = vmatpush.bf16.msrb.mxu3 %v6290_v48  ;;  %v6010_v19 = vor.u32 %v7813_v13, %v6007_v5  ;;  %v6242_v26 = vor.u32 %v7872_v17, %v6239_v7  ;;  %v7865_v18 = vld [vmem:[%s8450_s27 + $0x6cc] sm:$0xf]  ;;  %v6183_v13 = vld [vmem:[%s8450_s27 + $0x698] sm:$0xf0]  ;;  %v6293_v17 = vld [vmem:[%s8450_s27 + $0x768] sm:$0xf] }
 0x16e   : > { %v1598_v11 = vsel %vm1566_vm3, %v1474_v62, %v1582_v42  ;;  %v6258_v42 = vor.u32 %v7876_v61, %v6255_v14  ;;  %v6309_v14 = vld [vmem:[%s8450_s27 + $0x788] sm:$0xf]  ;;  %v7887_v7 = vld [vmem:[%s8450_s27 + $0x774] sm:$0xf0] }
 0x16f   : > { %v1614_v54 = vmul.f32 1.4142135, %v1598_v11  ;;  %v6134_v11 = vor.u32 %v7847_v1, %v6133_v25 }
 0x170   : > { %v1525_v53 = vpop.f32.mrf.mxu2  ;;  %v1490_v40 = vpop.f32.mrf.mxu0  ;;  %2595 = vmatpush.bf16.msra.mxu2 %v6182_v16 }
 0x171   : > { %v1542_v34 = vpop.f32.mrf.mxu3  ;;  %v9320_v30 = vpack.c.bf16 %v1614_v54, %v1610_v51  ;;  %2652 = vmatpush.bf16.msrb.mxu1 %v6058_v36  ;;  %v1526_v56 = vadd.f32 %v1525_v53, %v1507_v20  ;;  %v1491_v57 = vadd.f32 %v1490_v40, %v9295_v39  ;;  %v1509_v60 = vpop.f32.mrf.mxu1  ;;  %2540 = vmatpush.bf16.msrb.mxu3 %v6274_v32  ;;  %v6117_v54 = vld [vmem:[%s8450_s27 + $0x608] sm:$0xf]  ;;  %v5991_v53 = vld [vmem:[%s8450_s27 + $0x518] sm:$0xf0]  ;;  %v7861_v32 = vld [vmem:[%s8450_s27 + $0x6ac] sm:$0xf] }
 0x172   : > { %v1543_v37 = vadd.f32 %v1542_v34, %v1524_v44  ;;  %v7843_v44 = vld [vmem:[%s8450_s27 + $0x614] sm:$0xf0]  ;;  %v5994_v36 = vor.u32 %v7809_v28, %v5991_v53  ;;  %v6202_v61 = vor.u32 %v7861_v32, %v6199_v35  ;;  %v6261_v53 = vld [vmem:[%s8450_s27 + $0x728] sm:$0xf]  ;;  %v7877_v32 = vld [vmem:[%s8450_s27 + $0x72c] sm:$0xf] }
 0x173   : > { %2453 = vmatmul.bf16.gmra.mxu2 %v9320_v30  ;;  %2510 = vmatmul.bf16.gmra.mxu1 %v9243_v27  ;;  %v1510_v43 = vadd.f32 %v1509_v60, %v1491_v57  ;;  %v6118_v6 = vor.u32 %v7843_v44, %v6117_v54  ;;  %v7895_v57 = vld [vmem:[%s8450_s27 + $0x7b4] sm:$0xf0]  ;;  %v6151_v44 = vld [vmem:[%s8450_s27 + $0x658] sm:$0xf0] }
 0x174   : > { %2567 = vmatmul.bf16.gmra.mxu0 %v9161_v15  ;;  %v1571_v59 = vmul.f32 0.2, %v1543_v37  ;;  %2596 = vmatpush.bf16.msra.mxu2 %v6166_v23  ;;  %vm1555_vm4 = vcmp.ge.f32.partialorder %v1543_v37, 0.0  ;;  %v6326_v60 = vor.u32 %v7895_v57, %v6325_v4  ;;  %v6279_v4 = vld [vmem:[%s8450_s27 + $0x758] sm:$0xf0] }
 0x175   : > { %2653 = vmatpush.bf16.msrb.mxu1 %v6042_v47  ;;  %2541 = vmatpush.bf16.msrb.mxu3 %v6258_v42  ;;  %v6342_v47 = vor.u32 %v7899_v38, %v6341_v24  ;;  %v7857_v42 = vld [vmem:[%s8450_s27 + $0x68c] sm:$0xf]  ;;  %v6327_v24 = vld [vmem:[%s8450_s27 + $0x7b8] sm:$0xf0] }
 0x176   : > { %v1587_v8 = vsel %vm1555_vm4, %v1543_v37, %v1571_v59  ;;  %v7869_v37 = vld [vmem:[%s8450_s27 + $0x6ec] sm:$0xf]  ;;  %v6263_v35 = vld [vmem:[%s8450_s27 + $0x738] sm:$0xf0] }
 0x177   : > { %v1603_v10 = vmul.f32 1.4142135, %v1587_v8  ;;  %v6234_v23 = vor.u32 %v7869_v37, %v6231_v49  ;;  %v7853_v8 = vld [vmem:[%s8450_s27 + $0x66c] sm:$0xf] }
 0x178   : > { %v1528_v63 = vpop.f32.mrf.mxu2  ;;  %2597 = vmatpush.bf16.msra.mxu2 %v6150_v9  ;;  %v1492_v12 = vpop.f32.mrf.mxu0  ;;  %v7897_v37 = vld [vmem:[%s8450_s27 + $0x7cc] sm:$0xf] }
 0x179   : > { %v1544_v62 = vpop.f32.mrf.mxu3  ;;  %2654 = vmatpush.bf16.msrb.mxu1 %v6026_v0  ;;  %v1529_v45 = vadd.f32 %v1528_v63, %v1510_v43  ;;  %v1493_v46 = vadd.f32 %v1492_v12, %v9295_v39  ;;  %2542 = vmatpush.bf16.msrb.mxu3 %v6242_v26  ;;  %v1511_v41 = vpop.f32.mrf.mxu1  ;;  %v6357_v39 = vld [vmem:[%s8450_s27 + $0x7e8] sm:$0xf]  ;;  %v6186_v43 = vor.u32 %v7857_v42, %v6183_v13  ;;  %v7849_v26 = vld [vmem:[%s8450_s27 + $0x64c] sm:$0xf]  ;;  %v6557_v13 = vld [vmem:[%s8450_s27 + $0x880] sm:$0xf] }
 0x17a   : > { %v1545_v2 = vadd.f32 %v1544_v62, %v1526_v56  ;;  %v6358_v48 = vor.u32 %v7903_v29, %v6357_v39  ;;  %v7891_v62 = vld [vmem:[%s8450_s27 + $0x794] sm:$0xf0]  ;;  %v6277_v12 = vld [vmem:[%s8450_s27 + $0x748] sm:$0xf]  ;;  %v6154_v28 = vor.u32 %v7849_v26, %v6151_v44  ;;  %v7901_v39 = vld [vmem:[%s8450_s27 + $0x7ec] sm:$0xf] }
 0x17b   : > { %v1512_v20 = vadd.f32 %v1511_v41, %v1493_v46  ;;  %v6310_v1 = vor.u32 %v7891_v62, %v6309_v14  ;;  %v6245_v46 = vld [vmem:[%s8450_s27 + $0x708] sm:$0xf]  ;;  %v6119_v41 = vld [vmem:[%s8450_s27 + $0x618] sm:$0xf0]  ;;  %v6589_v62 = vld [vmem:[%s8450_s27 + $0x8c0] sm:$0xf] }
 0x17c   : > { %vm1559_vm5 = vcmp.ge.f32.partialorder %v1545_v2, 0.0  ;;  %v1575_v51 = vmul.f32 0.2, %v1545_v2  ;;  %2598 = vmatpush.bf16.msra.mxu2 %v6134_v11  ;;  %v6167_v11 = vld [vmem:[%s8450_s27 + $0x678] sm:$0xf0] }
 0x17d   : > { %2655 = vmatpush.bf16.msrb.mxu1 %v6010_v19  ;;  %v7883_v19 = vld [vmem:[%s8450_s27 + $0x754] sm:$0xf0]  ;;  %v6170_v54 = vor.u32 %v7853_v8, %v6167_v11  ;;  %v6359_v29 = vld [vmem:[%s8450_s27 + $0x7f8] sm:$0xf0]  ;;  %v7918_v8 = vld [vmem:[%s8450_s27 + $0x86c] sm:$0xf0] }
 0x17e   : > { %v1591_v22 = vsel %vm1559_vm5, %v1545_v2, %v1575_v51  ;;  %v6294_v51 = vor.u32 %v7887_v7, %v6293_v17  ;;  %v6541_v7 = vld [vmem:[%s8450_s27 + $0x860] sm:$0xf]  ;;  %v7910_v44 = vld [vmem:[%s8450_s27 + $0x82c] sm:$0xf0] }
 0x17f   : > { %v1607_v21 = vmul.f32 1.4142135, %v1591_v22  ;;  %v6278_v22 = vor.u32 %v7883_v19, %v6277_v12  ;;  %v6525_v19 = vld [vmem:[%s8450_s27 + $0x840] sm:$0xf] }
 0x180   : > { %v1530_v33 = vpop.f32.mrf.mxu2  ;;  %2599 = vmatpush.bf16.msra.mxu2 %v6118_v6  ;;  %v6509_v26 = vld [vmem:[%s8450_s27 + $0x820] sm:$0xf] }
 0x181   : > { %v1547_v34 = vpop.f32.mrf.mxu3  ;;  %v9352_v16 = vpack.c.bf16 %v1607_v21, %v1603_v10  ;;  %2656 = vmatpush.bf16.msrb.mxu1 %v5994_v36  ;;  %v1531_v56 = vadd.f32 %v1530_v33, %v1512_v20  ;;  %v7845_v21 = vld [vmem:[%s8450_s27 + $0x62c] sm:$0xf]  ;;  %v6362_v20 = vor.u32 %v7901_v39, %v6359_v29  ;;  %v6717_v39 = vld [vmem:[%s8450_s27 + $0x9c0] sm:$0xf]  ;;  %v7962_v29 = vld [vmem:[%s8450_s27 + $0x9cc] sm:$0xf0] }
 0x182   : > { %v1548_v40 = vadd.f32 %v1547_v34, %v1529_v45  ;;  %v6135_v45 = vld [vmem:[%s8450_s27 + $0x638] sm:$0xf0]  ;;  %v7875_v34 = vld [vmem:[%s8450_s27 + $0x714] sm:$0xf0] }
 0x183   : > { %2467 = vmatmul.bf16.vlgmr.msra.gmra.mxu3 %v9352_v16  ;;  %2524 = vmatmul.bf16.vlgmr.msrb.gmra.mxu2 %v9283_v31  ;;  %v6138_v6 = vor.u32 %v7845_v21, %v6135_v45  ;;  %v6246_v36 = vor.u32 %v7875_v34, %v6245_v46  ;;  %v6733_v34 = vld [vmem:[%s8450_s27 + $0x9e0] sm:$0xf] }
 0x184   : > { %2581 = vmatmul.bf16.vlgmr.msra.gmra.mxu1 %v9196_v3  ;;  %2638 = vmatmul.bf16.vlgmr.msrb.gmra.mxu0 %v9114_v55  ;;  %v1579_v50 = vmul.f32 0.2, %v1548_v40  ;;  %v6218_v55 = vor.u32 %v7865_v18, %v6215_v52  ;;  %vm1563_vm6 = vcmp.ge.f32.partialorder %v1548_v40, 0.0  ;;  %v7889_v18 = vld [vmem:[%s8450_s27 + $0x78c] sm:$0xf] }
 0x185   : > { %2611 = vmatpush.bf16.msra.mxu3 %v6358_v48  ;;  %2668 = vmatpush.bf16.msrb.mxu2 %v6234_v23  ;;  %v6343_v48 = vld [vmem:[%s8450_s27 + $0x7d8] sm:$0xf0]  ;;  %v7893_v23 = vld [vmem:[%s8450_s27 + $0x7ac] sm:$0xf] }
 0x186   : > { %v1595_v9 = vsel %vm1563_vm6, %v1548_v40, %v1579_v50  ;;  %v7841_v40 = vld [vmem:[%s8450_s27 + $0x60c] sm:$0xf]  ;;  %v6346_v49 = vor.u32 %v7897_v37, %v6343_v48  ;;  %v6330_v38 = vor.u32 %v7893_v23, %v6327_v24  ;;  %v6295_v52 = vld [vmem:[%s8450_s27 + $0x778] sm:$0xf0]  ;;  %v7928_v37 = vld [vmem:[%s8450_s27 + $0x8c4] sm:$0xf] }
 0x187   : > { %v1611_v0 = vmul.f32 1.4142135, %v1595_v9  ;;  %v6122_v33 = vor.u32 %v7841_v40, %v6119_v41  ;;  %v7881_v50 = vld [vmem:[%s8450_s27 + $0x74c] sm:$0xf]  ;;  %v6591_v48 = vld [vmem:[%s8450_s27 + $0x8d0] sm:$0xf0] }
 0x188   : > { %v6282_v57 = vor.u32 %v7881_v50, %v6279_v4  ;;  %v6594_v24 = vor.u32 %v7928_v37, %v6591_v48 }
 0x189   : > { %v1549_v58 = vpop.f32.mrf.mxu3  ;;  %2612 = vmatpush.bf16.msra.mxu3 %v6342_v47  ;;  %2669 = vmatpush.bf16.msrb.mxu2 %v6218_v55 }
 0x18a   : > { %v1550_v59 = vadd.f32 %v1549_v58, %v1531_v56  ;;  %v6311_v56 = vld [vmem:[%s8450_s27 + $0x798] sm:$0xf0]  ;;  %v6266_v58 = vor.u32 %v7877_v32, %v6263_v35  ;;  %v6685_v32 = vld [vmem:[%s8450_s27 + $0x980] sm:$0xf]  ;;  %v7954_v35 = vld [vmem:[%s8450_s27 + $0x98c] sm:$0xf0] }
 0x18b   : > { %v6314_v47 = vor.u32 %v7889_v18, %v6311_v56  ;;  %v6701_v18 = vld [vmem:[%s8450_s27 + $0x9a0] sm:$0xf]  ;;  %v7958_v56 = vld [vmem:[%s8450_s27 + $0x9ac] sm:$0xf0] }
 0x18c   : > { %vm1567_vm7 = vcmp.ge.f32.partialorder %v1550_v59, 0.0  ;;  %v1583_v63 = vmul.f32 0.2, %v1550_v59 }
 0x18d   : > { %2613 = vmatpush.bf16.msra.mxu3 %v6326_v60  ;;  %2670 = vmatpush.bf16.msrb.mxu2 %v6202_v61  ;;  %v6247_v60 = vld [vmem:[%s8450_s27 + $0x718] sm:$0xf0]  ;;  %v7934_v61 = vld [vmem:[%s8450_s27 + $0x8ec] sm:$0xf0] }
 0x18e   : > { %v1599_v25 = vsel %vm1567_vm7, %v1550_v59, %v1583_v63  ;;  %v7873_v59 = vld [vmem:[%s8450_s27 + $0x70c] sm:$0xf]  ;;  %v7930_v63 = vld [vmem:[%s8450_s27 + $0x8cc] sm:$0xf0] }
 0x18f   : > { %v1615_v2 = vmul.f32 1.4142135, %v1599_v25  ;;  %v6250_v9 = vor.u32 %v7873_v59, %v6247_v60  ;;  %v6686_v59 = vor.u32 %v7954_v35, %v6685_v32  ;;  %v6559_v60 = vld [vmem:[%s8450_s27 + $0x890] sm:$0xf0]  ;;  %v7964_v32 = vld [vmem:[%s8450_s27 + $0x9e4] sm:$0xf] }
 0x191   : > { %v9374_v5 = vpack.c.bf16 %v1615_v2, %v1611_v0  ;;  %2614 = vmatpush.bf16.msra.mxu3 %v6310_v1  ;;  %2671 = vmatpush.bf16.msrb.mxu2 %v6186_v43  ;;  %v6590_v0 = vor.u32 %v7930_v63, %v6589_v62  ;;  %v6573_v1 = vld [vmem:[%s8450_s27 + $0x8a0] sm:$0xf]  ;;  %v7926_v2 = vld [vmem:[%s8450_s27 + $0x8ac] sm:$0xf0] }
 0x192   : > { %v7922_v43 = vld [vmem:[%s8450_s27 + $0x88c] sm:$0xf0]  ;;  %v6669_v63 = vld [vmem:[%s8450_s27 + $0x960] sm:$0xf] }
 0x193   : > { %2472 = vmatmul.bf16.gmra.mxu3 %v9374_v5  ;;  %2529 = vmatmul.bf16.gmra.mxu2 %v9320_v30 }
 0x194   : > { %2586 = vmatmul.bf16.gmra.mxu1 %v9243_v27  ;;  %2643 = vmatmul.bf16.gmra.mxu0 %v9161_v15  ;;  %v7879_v15 = vld [vmem:[%s8450_s27 + $0x734] sm:$0xf0] }
 0x195   : > { %2615 = vmatpush.bf16.msra.mxu3 %v6294_v51  ;;  %2672 = vmatpush.bf16.msrb.mxu2 %v6170_v54  ;;  %v6262_v10 = vor.u32 %v7879_v15, %v6261_v53  ;;  %v6542_v51 = vor.u32 %v7918_v8, %v6541_v7  ;;  %v7914_v54 = vld [vmem:[%s8450_s27 + $0x84c] sm:$0xf0]  ;;  %v6493_v15 = vld [vmem:[%s8450_s27 + $0x800] sm:$0xf] }
 0x196   : > { %v6653_v7 = vld [vmem:[%s8450_s27 + $0x940] sm:$0xf]  ;;  %v7946_v8 = vld [vmem:[%s8450_s27 + $0x94c] sm:$0xf0] }
 0x199   : > { %2616 = vmatpush.bf16.msra.mxu3 %v6278_v22  ;;  %2673 = vmatpush.bf16.msrb.mxu2 %v6154_v28  ;;  %v2411_v25 = vpop.f32.mrf.mxu0  ;;  %v6510_v28 = vor.u32 %v7910_v44, %v6509_v26 }
 0x19d   : > { %2617 = vmatpush.bf16.msra.mxu3 %v6262_v10  ;;  %2674 = vmatpush.bf16.msrb.mxu2 %v6138_v6  ;;  %v7906_v10 = vld [vmem:[%s8450_s27 + $0x80c] sm:$0xf0] }
 0x19e   : > { %v6494_v21 = vor.u32 %v7906_v10, %v6493_v15  ;;  %v7966_v6 = vld [vmem:[%s8450_s27 + $0x9ec] sm:$0xf0]  ;;  %v7908_v10 = vld [vmem:[%s8450_s27 + $0x824] sm:$0xf] }
 0x19f   : > { %v6734_v40 = vor.u32 %v7966_v6, %v6733_v34  ;;  %v7942_v15 = vld [vmem:[%s8450_s27 + $0x92c] sm:$0xf0]  ;;  %v6511_v6 = vld [vmem:[%s8450_s27 + $0x830] sm:$0xf0] }
 0x1a1   : > { %2618 = vmatpush.bf16.msra.mxu3 %v6246_v36  ;;  %2675 = vmatpush.bf16.msrb.mxu2 %v6122_v33  ;;  %v9433_v11 = vpop.f32.mrf.mxu0  ;;  %v7932_v36 = vld [vmem:[%s8450_s27 + $0x8e4] sm:$0xf] }
 0x1a2   : > { %v9457_v33 = vld [vmem:[%s8456_s5 + $0x4] sm:$0xf]  ;;  %3575 = vmatpush.bf16.msra.mxu1 %v6734_v40  ;;  %v6514_v40 = vor.u32 %v7908_v10, %v6511_v6  ;;  %v6581_v10 = vld [vmem:[%s8450_s27 + $0x8a8] sm:$0xf] }
 0x1a3   : > { %2543 = vmatmul.bf16.vlgmr.msrb.gmra.mxu3 %v9352_v16  ;;  %2600 = vmatmul.bf16.vlgmr.msra.gmra.mxu2 %v9283_v31 }
 0x1a4   : > { %2657 = vmatmul.bf16.vlgmr.msrb.gmra.mxu1 %v9196_v3  ;;  %v7885_v3 = vld [vmem:[%s8450_s27 + $0x76c] sm:$0xf] }
 0x1a5   : > { %2687 = vmatpush.bf16.msrb.mxu3 %v6362_v20  ;;  %v6298_v55 = vor.u32 %v7885_v3, %v6295_v52  ;;  %v6718_v20 = vor.u32 %v7962_v29, %v6717_v39  ;;  %v6702_v3 = vor.u32 %v7958_v56, %v6701_v18  ;;  %v6575_v52 = vld [vmem:[%s8450_s27 + $0x8b0] sm:$0xf0]  ;;  %v7904_v18 = vld [vmem:[%s8450_s27 + $0x804] sm:$0xf] }
 0x1a6   : > { %v6495_v56 = vld [vmem:[%s8450_s27 + $0x810] sm:$0xf0] }
 0x1a7   : > { %3576 = vmatpush.bf16.msra.mxu1 %v6718_v20  ;;  %v7938_v20 = vld [vmem:[%s8450_s27 + $0x90c] sm:$0xf0] }
 0x1a9   : > { %2688 = vmatpush.bf16.msrb.mxu3 %v6346_v49  ;;  %v9464_v49 = vperm.slane %v9457_v33, 0 }
 0x1ab   : > { %v2412_v50 = vadd.f32 %v2411_v25, %v9464_v49  ;;  %3577 = vmatpush.bf16.msra.mxu1 %v6702_v3  ;;  %v7916_v25 = vld [vmem:[%s8450_s27 + $0x864] sm:$0xf] }
 0x1ad   : > { %2689 = vmatpush.bf16.msrb.mxu3 %v6330_v38 }
 0x1af   : > { %3578 = vmatpush.bf16.msra.mxu1 %v6686_v59 }
 0x1b0   : > { %v9444_v53 = vpop.f32.mrf.mxu0 }
 0x1b1   : > { %2690 = vmatpush.bf16.msrb.mxu3 %v6314_v47  ;;  %v7924_v47 = vld [vmem:[%s8450_s27 + $0x8a4] sm:$0xf] }
 0x1b2   : > { %v6578_v4 = vor.u32 %v7924_v47, %v6575_v52  ;;  %v6498_v52 = vor.u32 %v7904_v18, %v6495_v56 }
 0x1b3   : > { %2548 = vmatmul.bf16.gmra.mxu3 %v9374_v5  ;;  %2605 = vmatmul.bf16.gmra.mxu2 %v9320_v30 }
 0x1b4   : > { %2662 = vmatmul.bf16.gmra.mxu1 %v9243_v27  ;;  %v6605_v27 = vld [vmem:[%s8450_s27 + $0x8e0] sm:$0xf] }
 0x1b5   : > { %2691 = vmatpush.bf16.msrb.mxu3 %v6298_v55  ;;  %v6606_v14 = vor.u32 %v7934_v61, %v6605_v27 }
 0x1b7   : > { %3556 = vmatpush.bf16.msra.mxu0 %v6606_v14 }
 0x1b8   : > { %v9466_v23 = vpop.f32.mrf.mxu0 }
 0x1b9   : > { %2692 = vmatpush.bf16.msrb.mxu3 %v6282_v57 }
 0x1bb   : > { %3557 = vmatpush.bf16.msra.mxu0 %v6590_v0  ;;  %v7950_v0 = vld [vmem:[%s8450_s27 + $0x96c] sm:$0xf0] }
 0x1bd   : > { %2693 = vmatpush.bf16.msrb.mxu3 %v6266_v58  ;;  %v7920_v58 = vld [vmem:[%s8450_s27 + $0x884] sm:$0xf] }
 0x1be   : > { %v6562_v61 = vor.u32 %v7920_v58, %v6559_v60  ;;  %v6735_v58 = vld [vmem:[%s8450_s27 + $0x9f0] sm:$0xf0]  ;;  %v6613_v60 = vld [vmem:[%s8450_s27 + $0x8e8] sm:$0xf] }
 0x1bf   : > { %v6738_v59 = vor.u32 %v7964_v32, %v6735_v58  ;;  %v7948_v32 = vld [vmem:[%s8450_s27 + $0x964] sm:$0xf]  ;;  %v6671_v58 = vld [vmem:[%s8450_s27 + $0x970] sm:$0xf0] }
 0x1c0   : > { %v2430_v42 = vpop.f32.mrf.mxu1  ;;  %v9481_v14 = vpop.f32.mrf.mxu0 }
 0x1c1   : > { %2694 = vmatpush.bf16.msrb.mxu3 %v6250_v9  ;;  %v2431_v57 = vadd.f32 %v2430_v42, %v2412_v50 }
 0x1c3   : > { %2619 = vmatmul.bf16.vlgmr.msra.gmra.mxu3 %v9352_v16  ;;  %2676 = vmatmul.bf16.vlgmr.msrb.gmra.mxu2 %v9283_v31  ;;  %v6574_v31 = vor.u32 %v7926_v2, %v6573_v1  ;;  %v2414_v1 = vadd.f32 %v9433_v11, %v9464_v49  ;;  %v6670_v2 = vor.u32 %v7950_v0, %v6669_v63  ;;  %v6845_v63 = vld [vmem:[%s8450_s27 + $0xac0] sm:$0xf]  ;;  %v7994_v0 = vld [vmem:[%s8450_s27 + $0xacc] sm:$0xf0] }
 0x1c4   : > { %v6654_v11 = vor.u32 %v7946_v8, %v6653_v7  ;;  %v7931_v7 = vld [vmem:[%s8450_s27 + $0x8d4] sm:$0xf0] }
 0x1c5   : > { %3558 = vmatpush.bf16.msra.mxu0 %v6574_v31  ;;  %v6543_v31 = vld [vmem:[%s8450_s27 + $0x870] sm:$0xf0]  ;;  %3579 = vmatpush.bf16.msra.mxu1 %v6670_v2  ;;  %v7960_v2 = vld [vmem:[%s8450_s27 + $0x9c4] sm:$0xf] }
 0x1c8   : > { %v9435_v12 = vpop.f32.mrf.mxu1 }
 0x1c9   : > { %3580 = vmatpush.bf16.msra.mxu1 %v6654_v11 }
 0x1d0   : > { %v9448_v45 = vpop.f32.mrf.mxu1 }
 0x1d3   : > { %2624 = vmatmul.bf16.gmra.mxu3 %v9374_v5  ;;  %2681 = vmatmul.bf16.gmra.mxu2 %v9320_v30  ;;  %v6558_v30 = vor.u32 %v7922_v43, %v6557_v13  ;;  %v6546_v13 = vor.u32 %v7916_v25, %v6543_v31  ;;  %v2433_v43 = vadd.f32 %v9435_v12, %v2414_v1  ;;  %v6719_v31 = vld [vmem:[%s8450_s27 + $0x9d0] sm:$0xf0] }
 0x1d4   : > { %v6846_v1 = vor.u32 %v7994_v0, %v6845_v63  ;;  %v7978_v0 = vld [vmem:[%s8450_s27 + $0xa4c] sm:$0xf0] }
 0x1d5   : > { %3559 = vmatpush.bf16.msra.mxu0 %v6558_v30 }
 0x1d8   : > { %v9468_v38 = vpop.f32.mrf.mxu1 }
 0x1d9   : > { %3560 = vmatpush.bf16.msra.mxu0 %v6542_v51 }
 0x1e0   : > { %v9489_v42 = vpop.f32.mrf.mxu1 }
 0x1e3   : > { %2695 = vmatmul.bf16.vlgmr.msrb.gmra.mxu3 %v9352_v16  ;;  %v6526_v16 = vor.u32 %v7914_v54, %v6525_v19  ;;  %v7912_v19 = vld [vmem:[%s8450_s27 + $0x844] sm:$0xf]  ;;  %v6527_v54 = vld [vmem:[%s8450_s27 + $0x850] sm:$0xf0] }
 0x1e4   : > { %v6530_v26 = vor.u32 %v7912_v19, %v6527_v54  ;;  %v6829_v19 = vld [vmem:[%s8450_s27 + $0xaa0] sm:$0xf]  ;;  %v7990_v54 = vld [vmem:[%s8450_s27 + $0xaac] sm:$0xf0] }
 0x1e5   : > { %3561 = vmatpush.bf16.msra.mxu0 %v6526_v16 }
 0x1e6   : > { %v2449_v17 = vpop.f32.mrf.mxu2 }
 0x1e7   : > { %v2450_v9 = vadd.f32 %v2449_v17, %v2431_v57  ;;  %v7998_v57 = vld [vmem:[%s8450_s27 + $0xaec] sm:$0xf0] }
 0x1e8   : > { %v9508_v29 = vpop.f32.mrf.mxu1 }
 0x1e9   : > { %3562 = vmatpush.bf16.msra.mxu0 %v6510_v28  ;;  %v6637_v28 = vld [vmem:[%s8450_s27 + $0x920] sm:$0xf] }
 0x1ea   : > { %v6638_v34 = vor.u32 %v7942_v15, %v6637_v28  ;;  %v6703_v28 = vld [vmem:[%s8450_s27 + $0x9b0] sm:$0xf0] }
 0x1ec   : > { %3581 = vmatpush.bf16.msra.mxu1 %v6638_v34 }
 0x1ed   : > { %3563 = vmatpush.bf16.msra.mxu0 %v6494_v21  ;;  %v2417_v21 = vadd.f32 %v9444_v53, %v9464_v49  ;;  %v6621_v53 = vld [vmem:[%s8450_s27 + $0x900] sm:$0xf] }
 0x1ee   : > { %v9439_v22 = vpop.f32.mrf.mxu2 }
 0x1ef   : > { %v2452_v51 = vadd.f32 %v9439_v22, %v2433_v43 }
 0x1f3   : > { %2700 = vmatmul.bf16.gmra.mxu3 %v9374_v5  ;;  %v6607_v5 = vld [vmem:[%s8450_s27 + $0x8f0] sm:$0xf0] }
 0x1f4   : > { %v6610_v41 = vor.u32 %v7932_v36, %v6607_v5  ;;  %v9505_v36 = vpop.f32.mrf.mxu0  ;;  %v2436_v5 = vadd.f32 %v9448_v45, %v2417_v21  ;;  %v7927_v21 = vld [vmem:[%s8450_s27 + $0x8b4] sm:$0xf0] }
 0x1f6   : > { %v9450_v46 = vpop.f32.mrf.mxu2  ;;  %3632 = vmatpush.bf16.msrb.mxu0 %v6610_v41 }
 0x1f7   : > { %v2455_v48 = vadd.f32 %v9450_v46, %v2436_v5  ;;  %v2419_v46 = vadd.f32 %v9466_v23, %v9464_v49  ;;  %v6813_v5 = vld [vmem:[%s8450_s27 + $0xa80] sm:$0xf] }
 0x1fa   : > { %3633 = vmatpush.bf16.msrb.mxu0 %v6594_v24  ;;  %v6622_v24 = vor.u32 %v7938_v20, %v6621_v53  ;;  %v7952_v53 = vld [vmem:[%s8450_s27 + $0x984] sm:$0xf]  ;;  %v6687_v20 = vld [vmem:[%s8450_s27 + $0x990] sm:$0xf0] }
 0x1fb   : > { %v6690_v56 = vor.u32 %v7952_v53, %v6687_v20  ;;  %v7936_v53 = vld [vmem:[%s8450_s27 + $0x904] sm:$0xf]  ;;  %v6501_v20 = vld [vmem:[%s8450_s27 + $0x808] sm:$0xf] }
 0x1fc   : > { %3582 = vmatpush.bf16.msra.mxu1 %v6622_v24  ;;  %v9532_v49 = vpop.f32.mrf.mxu0 }
 0x1fe   : > { %v9475_v55 = vpop.f32.mrf.mxu2  ;;  %3634 = vmatpush.bf16.msrb.mxu0 %v6578_v4  ;;  %v6861_v4 = vld [vmem:[%s8450_s27 + $0xae0] sm:$0xf] }
 0x1ff   : > { %v6862_v35 = vor.u32 %v7998_v57, %v6861_v4  ;;  %v6797_v4 = vld [vmem:[%s8450_s27 + $0xa60] sm:$0xf]  ;;  %v7982_v57 = vld [vmem:[%s8450_s27 + $0xa6c] sm:$0xf0] }
 0x200   : > { %3651 = vmatpush.bf16.msrb.mxu1 %v6738_v59 }
 0x201   : > { %3594 = vmatpush.bf16.msra.mxu2 %v6862_v35  ;;  %v6798_v35 = vor.u32 %v7982_v57, %v6797_v4  ;;  %v8030_v4 = vld [vmem:[%s8450_s27 + $0xbec] sm:$0xf0]  ;;  %v7996_v57 = vld [vmem:[%s8450_s27 + $0xae4] sm:$0xf] }
 0x202   : > { %3635 = vmatpush.bf16.msrb.mxu0 %v6562_v61  ;;  %v2438_v61 = vadd.f32 %v9468_v38, %v2419_v46  ;;  %v6597_v38 = vld [vmem:[%s8450_s27 + $0x8c8] sm:$0xf] }
 0x204   : > { %v2457_v25 = vadd.f32 %v9475_v55, %v2438_v61  ;;  %v7919_v61 = vld [vmem:[%s8450_s27 + $0x874] sm:$0xf0] }
 0x205   : > { %3595 = vmatpush.bf16.msra.mxu2 %v6846_v1 }
 0x206   : > { %v2468_v27 = vpop.f32.mrf.mxu3  ;;  %v9492_v17 = vpop.f32.mrf.mxu2  ;;  %3636 = vmatpush.bf16.msrb.mxu0 %v6546_v13 }
 0x207   : > { %v2469_v62 = vadd.f32 %v2468_v27, %v2450_v9  ;;  %v7935_v9 = vld [vmem:[%s8450_s27 + $0x8f4] sm:$0xf0]  ;;  %v9529_v27 = vperm.slane %v9457_v33, 1  ;;  %v9540_v13 = vpop.f32.mrf.mxu1 }
 0x209   : > { %v2722_v30 = vmul.f32 0.2, %v2469_v62  ;;  %vm2706_vm8 = vcmp.ge.f32.partialorder %v2469_v62, 0.0  ;;  %v2490_v46 = vadd.f32 %v9505_v36, %v9529_v27  ;;  %v6781_v36 = vld [vmem:[%s8450_s27 + $0xa40] sm:$0xf] }
 0x20a   : > { %3637 = vmatpush.bf16.msrb.mxu0 %v6530_v26  ;;  %v2488_v26 = vadd.f32 %v9481_v14, %v9529_v27  ;;  %v6582_v14 = vor.u32 %v7927_v21, %v6581_v10  ;;  %v6782_v1 = vor.u32 %v7978_v0, %v6781_v36  ;;  %v6517_v10 = vld [vmem:[%s8450_s27 + $0x828] sm:$0xf]  ;;  %v7911_v21 = vld [vmem:[%s8450_s27 + $0x834] sm:$0xf0] }
 0x20b   : > { %v2738_v44 = vsel %vm2706_vm8, %v2469_v62, %v2722_v30  ;;  %v6614_v62 = vor.u32 %v7935_v9, %v6613_v60  ;;  %v6722_v30 = vor.u32 %v7960_v2, %v6719_v31  ;;  %v6674_v60 = vor.u32 %v7948_v32, %v6671_v58  ;;  %v6549_v9 = vld [vmem:[%s8450_s27 + $0x868] sm:$0xf]  ;;  %v7944_v2 = vld [vmem:[%s8450_s27 + $0x944] sm:$0xf]  ;;  %v6655_v31 = vld [vmem:[%s8450_s27 + $0x950] sm:$0xf0] }
 0x20c   : > { %v2754_v41 = vmul.f32 1.4142135, %v2738_v44  ;;  %v6830_v44 = vor.u32 %v7990_v54, %v6829_v19  ;;  %v7974_v19 = vld [vmem:[%s8450_s27 + $0xa2c] sm:$0xf0]  ;;  %v7940_v54 = vld [vmem:[%s8450_s27 + $0x924] sm:$0xf] }
 0x20d   : > { %3652 = vmatpush.bf16.msrb.mxu1 %v6722_v30  ;;  %v7915_v30 = vld [vmem:[%s8450_s27 + $0x854] sm:$0xf0] }
 0x20e   : > { %v2470_v16 = vpop.f32.mrf.mxu3  ;;  %3638 = vmatpush.bf16.msrb.mxu0 %v6514_v40  ;;  %v9517_v47 = vpop.f32.mrf.mxu2  ;;  %3596 = vmatpush.bf16.msra.mxu2 %v6830_v44  ;;  %v6639_v44 = vld [vmem:[%s8450_s27 + $0x930] sm:$0xf0] }
 0x20f   : > { %v2471_v12 = vadd.f32 %v2470_v16, %v2452_v51  ;;  %v6598_v51 = vor.u32 %v7931_v7, %v6597_v38  ;;  %v7956_v16 = vld [vmem:[%s8450_s27 + $0x9a4] sm:$0xf]  ;;  %v6533_v38 = vld [vmem:[%s8450_s27 + $0x848] sm:$0xf] }
 0x210   : > { %v6706_v15 = vor.u32 %v7956_v16, %v6703_v28  ;;  %v2493_v16 = vadd.f32 %v9532_v49, %v9529_v27  ;;  %v6518_v49 = vor.u32 %v7911_v21, %v6517_v10 }
 0x211   : > { %vm2710_vm9 = vcmp.ge.f32.partialorder %v2471_v12, 0.0  ;;  %v2726_v22 = vmul.f32 0.2, %v2471_v12 }
 0x212   : > { %3639 = vmatpush.bf16.msrb.mxu0 %v6498_v52  ;;  %3653 = vmatpush.bf16.msrb.mxu1 %v6706_v15  ;;  %v6642_v15 = vor.u32 %v7940_v54, %v6639_v44  ;;  %v8022_v44 = vld [vmem:[%s8450_s27 + $0xbac] sm:$0xf0] }
 0x213   : > { %v2742_v39 = vsel %vm2710_vm9, %v2471_v12, %v2726_v22  ;;  %v2507_v22 = vadd.f32 %v9489_v42, %v2488_v26  ;;  %v9561_v42 = vpop.f32.mrf.mxu0 }
 0x214   : > { %v2758_v37 = vmul.f32 1.4142135, %v2742_v39  ;;  %v2495_v32 = vadd.f32 %v9561_v42, %v9529_v27  ;;  %v6615_v42 = vld [vmem:[%s8450_s27 + $0x8f8] sm:$0xf0] }
 0x215   : > { %v2526_v39 = vadd.f32 %v9492_v17, %v2507_v22  ;;  %v2512_v22 = vadd.f32 %v9540_v13, %v2493_v16  ;;  %v6623_v13 = vld [vmem:[%s8450_s27 + $0x910] sm:$0xf0] }
 0x216   : > { %v9515_v45 = vpack.c.bf16 %v2758_v37, %v2754_v41  ;;  %v2473_v3 = vpop.f32.mrf.mxu3  ;;  %v9544_v11 = vpop.f32.mrf.mxu2  ;;  %v7986_v41 = vld [vmem:[%s8450_s27 + $0xa8c] sm:$0xf0]  ;;  %3654 = vmatpush.bf16.msrb.mxu1 %v6690_v56  ;;  %v6626_v56 = vor.u32 %v7936_v53, %v6623_v13  ;;  %v6583_v53 = vld [vmem:[%s8450_s27 + $0x8b8] sm:$0xf0] }
 0x217   : > { %v2474_v50 = vadd.f32 %v2473_v3, %v2455_v48  ;;  %v6814_v37 = vor.u32 %v7986_v41, %v6813_v5  ;;  %v6565_v48 = vld [vmem:[%s8450_s27 + $0x888] sm:$0xf]  ;;  %v7923_v3 = vld [vmem:[%s8450_s27 + $0x894] sm:$0xf0]  ;;  %v6749_v5 = vld [vmem:[%s8450_s27 + $0xa00] sm:$0xf] }
 0x218   : > { %3564 = vmatmul.bf16.vlgmr.msra.gmra.mxu0 %v9515_v45  ;;  %v6566_v17 = vor.u32 %v7923_v3, %v6565_v48  ;;  %v7970_v41 = vld [vmem:[%s8450_s27 + $0xa0c] sm:$0xf0]  ;;  %v7907_v3 = vld [vmem:[%s8450_s27 + $0x814] sm:$0xf0] }
 0x219   : > { %vm2714_vm10 = vcmp.ge.f32.partialorder %v2474_v50, 0.0  ;;  %v2730_v23 = vmul.f32 0.2, %v2474_v50  ;;  %3708 = vmatpush.bf16.msra.mxu0 %v6614_v62  ;;  %3597 = vmatpush.bf16.msra.mxu2 %v6814_v37  ;;  %v2509_v62 = vadd.f32 %v9508_v29, %v2490_v46  ;;  %v6658_v29 = vor.u32 %v7944_v2, %v6655_v31  ;;  %v8026_v2 = vld [vmem:[%s8450_s27 + $0xbcc] sm:$0xf0] }
 0x21a   : > { %3655 = vmatpush.bf16.msrb.mxu1 %v6674_v60  ;;  %v6750_v37 = vor.u32 %v7970_v41, %v6749_v5  ;;  %v7925_v5 = vld [vmem:[%s8450_s27 + $0x8ac] sm:$0xf] }
 0x21b   : > { %v2746_v55 = vsel %vm2714_vm10, %v2474_v50, %v2730_v23  ;;  %v9566_v50 = vpop.f32.mrf.mxu1  ;;  %v6550_v23 = vor.u32 %v7919_v61, %v6549_v9  ;;  %v6741_v9 = vld [vmem:[%s8450_s27 + $0x9e8] sm:$0xf]  ;;  %v7967_v61 = vld [vmem:[%s8450_s27 + $0x9f4] sm:$0xf0] }
 0x21c   : > { %v2762_v34 = vmul.f32 1.4142135, %v2746_v55  ;;  %v6765_v55 = vld [vmem:[%s8450_s27 + $0xa20] sm:$0xf]  ;;  %v6742_v27 = vor.u32 %v7967_v61, %v6741_v9  ;;  %v7921_v9 = vld [vmem:[%s8450_s27 + $0x88c] sm:$0xf] }
 0x21d   : > { %3709 = vmatpush.bf16.msra.mxu0 %v6598_v51  ;;  %3598 = vmatpush.bf16.msra.mxu2 %v6798_v35  ;;  %v9587_v51 = vpop.f32.mrf.mxu0  ;;  %v6863_v35 = vld [vmem:[%s8450_s27 + $0xaf0] sm:$0xf0]  ;;  %v6567_v61 = vld [vmem:[%s8450_s27 + $0x898] sm:$0xf0] }
 0x21e   : > { %v2475_v43 = vpop.f32.mrf.mxu3  ;;  %v9575_v59 = vpop.f32.mrf.mxu2  ;;  %3656 = vmatpush.bf16.msrb.mxu1 %v6658_v29  ;;  %v6866_v60 = vor.u32 %v7996_v57, %v6863_v35  ;;  %v6725_v29 = vld [vmem:[%s8450_s27 + $0x9c8] sm:$0xf] }
 0x21f   : > { %v2476_v8 = vadd.f32 %v2475_v43, %v2457_v25  ;;  %v2528_v25 = vadd.f32 %v9517_v47, %v2509_v62  ;;  %v7933_v62 = vld [vmem:[%s8450_s27 + $0x8ec] sm:$0xf] }
 0x221   : > { %vm2718_vm11 = vcmp.ge.f32.partialorder %v2476_v8, 0.0  ;;  %v2734_v12 = vmul.f32 0.2, %v2476_v8  ;;  %3710 = vmatpush.bf16.msra.mxu0 %v6582_v14  ;;  %3599 = vmatpush.bf16.msra.mxu2 %v6782_v1  ;;  %v6973_v1 = vld [vmem:[%s8450_s27 + $0xbc0] sm:$0xf] }
 0x222   : > { %3657 = vmatpush.bf16.msrb.mxu1 %v6642_v15  ;;  %v7988_v15 = vld [vmem:[%s8450_s27 + $0xaa4] sm:$0xf] }
 0x223   : > { %v2750_v6 = vsel %vm2718_vm11, %v2476_v8, %v2734_v12  ;;  %v6534_v8 = vor.u32 %v7915_v30, %v6533_v38  ;;  %v6766_v12 = vor.u32 %v7974_v19, %v6765_v55  ;;  %v9596_v28 = vpop.f32.mrf.mxu1  ;;  %v6974_v38 = vor.u32 %v8026_v2, %v6973_v1  ;;  %v7929_v55 = vld [vmem:[%s8450_s27 + $0x8cc] sm:$0xf]  ;;  %v6599_v19 = vld [vmem:[%s8450_s27 + $0x8d8] sm:$0xf0] }
 0x224   : > { %v2766_v40 = vmul.f32 1.4142135, %v2750_v6  ;;  %v6602_v16 = vor.u32 %v7929_v55, %v6599_v19  ;;  %v6909_v19 = vld [vmem:[%s8450_s27 + $0xb40] sm:$0xf] }
 0x225   : > { %3711 = vmatpush.bf16.msra.mxu0 %v6566_v17  ;;  %3600 = vmatpush.bf16.msra.mxu2 %v6766_v12  ;;  %v6502_v17 = vor.u32 %v7907_v3, %v6501_v20  ;;  %v9620_v58 = vpop.f32.mrf.mxu0  ;;  %v6957_v12 = vld [vmem:[%s8450_s27 + $0xba0] sm:$0xf]  ;;  %v8018_v3 = vld [vmem:[%s8450_s27 + $0xb8c] sm:$0xf0] }
 0x226   : > { %v2544_v24 = vpop.f32.mrf.mxu3  ;;  %v9563_v18 = vpack.c.bf16 %v2766_v40, %v2762_v34  ;;  %v9601_v14 = vpop.f32.mrf.mxu2  ;;  %3658 = vmatpush.bf16.msrb.mxu1 %v6626_v56  ;;  %v6941_v56 = vld [vmem:[%s8450_s27 + $0xb80] sm:$0xf] }
 0x227   : > { %v2545_v52 = vadd.f32 %v2544_v24, %v2526_v39  ;;  %v2531_v39 = vadd.f32 %v9544_v11, %v2512_v22  ;;  %v6989_v11 = vld [vmem:[%s8450_s27 + $0xbe0] sm:$0xf]  ;;  %v6958_v22 = vor.u32 %v8022_v44, %v6957_v12  ;;  %v6783_v12 = vld [vmem:[%s8450_s27 + $0xa50] sm:$0xf0] }
 0x228   : > { %3569 = vmatmul.bf16.gmra.mxu0 %v9563_v18  ;;  %v6990_v46 = vor.u32 %v8030_v4, %v6989_v11  ;;  %v6815_v11 = vld [vmem:[%s8450_s27 + $0xa90] sm:$0xf0]  ;;  %v6693_v4 = vld [vmem:[%s8450_s27 + $0x988] sm:$0xf] }
 0x229   : > { %vm2707_vm12 = vcmp.ge.f32.partialorder %v2545_v52, 0.0  ;;  %v2723_v63 = vmul.f32 0.2, %v2545_v52  ;;  %3712 = vmatpush.bf16.msra.mxu0 %v6550_v23  ;;  %3601 = vmatpush.bf16.msra.mxu2 %v6750_v37  ;;  %v9626_v23 = vperm.slane %v9457_v33, 2 }
 0x22a   : > { %3613 = vmatpush.bf16.msra.mxu3 %v6990_v46 }
 0x22b   : > { %v2739_v47 = vsel %vm2707_vm12, %v2545_v52, %v2723_v63  ;;  %v2514_v63 = vadd.f32 %v9566_v50, %v2495_v32  ;;  %v9630_v36 = vpop.f32.mrf.mxu1  ;;  %v7992_v50 = vld [vmem:[%s8450_s27 + $0xac4] sm:$0xf]  ;;  %v2564_v10 = vadd.f32 %v9587_v51, %v9626_v23  ;;  %v2566_v1 = vadd.f32 %v9620_v58, %v9626_v23  ;;  %v6551_v58 = vld [vmem:[%s8450_s27 + $0x878] sm:$0xf0] }
 0x22c   : > { %v2755_v34 = vmul.f32 1.4142135, %v2739_v47  ;;  %v7963_v47 = vld [vmem:[%s8450_s27 + $0x9d4] sm:$0xf0] }
 0x22d   : > { %3713 = vmatpush.bf16.msra.mxu0 %v6534_v8  ;;  %3670 = vmatpush.bf16.msrb.mxu2 %v6866_v60  ;;  %v2533_v31 = vadd.f32 %v9575_v59, %v2514_v63  ;;  %v6726_v59 = vor.u32 %v7963_v47, %v6725_v29  ;;  %v2583_v41 = vadd.f32 %v9596_v28, %v2564_v10  ;;  %v9655_v13 = vpop.f32.mrf.mxu0  ;;  %v7955_v60 = vld [vmem:[%s8450_s27 + $0x994] sm:$0xf0]  ;;  %v7917_v29 = vld [vmem:[%s8450_s27 + $0x86c] sm:$0xf] }
 0x22e   : > { %v2546_v43 = vpop.f32.mrf.mxu3  ;;  %v9638_v30 = vpop.f32.mrf.mxu2  ;;  %3614 = vmatpush.bf16.msra.mxu3 %v6974_v38  ;;  %v6942_v28 = vor.u32 %v8018_v3, %v6941_v56  ;;  %v6570_v63 = vor.u32 %v7921_v9, %v6567_v61  ;;  %v6554_v55 = vor.u32 %v7917_v29, %v6551_v58  ;;  %v6877_v61 = vld [vmem:[%s8450_s27 + $0xb00] sm:$0xf]  ;;  %v6991_v58 = vld [vmem:[%s8450_s27 + $0xbf0] sm:$0xf0] }
 0x22f   : > { %v2547_v7 = vadd.f32 %v2546_v43, %v2528_v25  ;;  %v6618_v25 = vor.u32 %v7933_v62, %v6615_v42  ;;  %v6847_v43 = vld [vmem:[%s8450_s27 + $0xad0] sm:$0xf0]  ;;  %v6694_v62 = vor.u32 %v7955_v60, %v6693_v4  ;;  %v6925_v42 = vld [vmem:[%s8450_s27 + $0xb60] sm:$0xf] }
 0x230   : > { %v6850_v8 = vor.u32 %v7992_v50, %v6847_v43  ;;  %v6677_v50 = vld [vmem:[%s8450_s27 + $0x968] sm:$0xf]  ;;  %v7951_v43 = vld [vmem:[%s8450_s27 + $0x974] sm:$0xf0] }
 0x231   : > { %vm2711_vm13 = vcmp.ge.f32.partialorder %v2547_v7, 0.0  ;;  %v2727_v26 = vmul.f32 0.2, %v2547_v7  ;;  %3714 = vmatpush.bf16.msra.mxu0 %v6518_v49  ;;  %v6709_v49 = vld [vmem:[%s8450_s27 + $0x9a8] sm:$0xf] }
 0x232   : > { %3671 = vmatpush.bf16.msrb.mxu2 %v6850_v8  ;;  %3615 = vmatpush.bf16.msra.mxu3 %v6958_v22  ;;  %v6678_v8 = vor.u32 %v7951_v43, %v6677_v50  ;;  %v7913_v22 = vld [vmem:[%s8450_s27 + $0x84c] sm:$0xf]  ;;  %v6503_v50 = vld [vmem:[%s8450_s27 + $0x818] sm:$0xf0] }
 0x233   : > { %v2743_v6 = vsel %vm2711_vm13, %v2547_v7, %v2727_v26  ;;  %v9663_v57 = vpop.f32.mrf.mxu1 }
 0x234   : > { %v2759_v40 = vmul.f32 1.4142135, %v2743_v6 }
 0x235   : > { %3715 = vmatpush.bf16.msra.mxu0 %v6502_v17  ;;  %v7984_v17 = vld [vmem:[%s8450_s27 + $0xa84] sm:$0xf]  ;;  %v9691_v44 = vpop.f32.mrf.mxu0 }
 0x236   : > { %v9609_v48 = vpack.c.bf16 %v2759_v40, %v2755_v34  ;;  %v2549_v24 = vpop.f32.mrf.mxu3  ;;  %v6831_v34 = vld [vmem:[%s8450_s27 + $0xab0] sm:$0xf0]  ;;  %v7959_v40 = vld [vmem:[%s8450_s27 + $0x9b4] sm:$0xf0]  ;;  %v6818_v35 = vor.u32 %v7984_v17, %v6815_v11  ;;  %3616 = vmatpush.bf16.msra.mxu3 %v6942_v28  ;;  %v7909_v17 = vld [vmem:[%s8450_s27 + $0x82c] sm:$0xf] }
 0x237   : > { %v2550_v52 = vadd.f32 %v2549_v24, %v2531_v39  ;;  %v6834_v6 = vor.u32 %v7988_v15, %v6831_v34  ;;  %v6710_v37 = vor.u32 %v7959_v40, %v6709_v49  ;;  %v6586_v24 = vor.u32 %v7925_v5, %v6583_v53  ;;  %v6535_v34 = vld [vmem:[%s8450_s27 + $0x858] sm:$0xf0]  ;;  %v7943_v28 = vld [vmem:[%s8450_s27 + $0x934] sm:$0xf0] }
 0x238   : > { %3583 = vmatmul.bf16.vlgmr.msra.gmra.mxu1 %v9609_v48  ;;  %3640 = vmatmul.bf16.vlgmr.msrb.gmra.mxu0 %v9515_v45  ;;  %v6538_v49 = vor.u32 %v7913_v22, %v6535_v34 }
 0x239   : > { %vm2715_vm14 = vcmp.ge.f32.partialorder %v2550_v52, 0.0  ;;  %v2731_v0 = vmul.f32 0.2, %v2550_v52  ;;  %3727 = vmatpush.bf16.msra.mxu1 %v6742_v27  ;;  %3784 = vmatpush.bf16.msrb.mxu0 %v6618_v25  ;;  %v9670_v27 = vpop.f32.mrf.mxu2  ;;  %v7980_v25 = vld [vmem:[%s8450_s27 + $0xa64] sm:$0xf] }
 0x23a   : > { %3672 = vmatpush.bf16.msrb.mxu2 %v6834_v6 }
 0x23b   : > { %v2747_v26 = vsel %vm2715_vm14, %v2550_v52, %v2731_v0  ;;  %v2602_v52 = vadd.f32 %v9601_v14, %v2583_v41  ;;  %v8014_v0 = vld [vmem:[%s8450_s27 + $0xb6c] sm:$0xf0]  ;;  %v9696_v40 = vpop.f32.mrf.mxu1  ;;  %v6893_v41 = vld [vmem:[%s8450_s27 + $0xb20] sm:$0xf] }
 0x23c   : > { %v2763_v39 = vmul.f32 1.4142135, %v2747_v26  ;;  %v6926_v2 = vor.u32 %v8014_v0, %v6925_v42  ;;  %v7976_v26 = vld [vmem:[%s8450_s27 + $0xa44] sm:$0xf]  ;;  %v6629_v0 = vld [vmem:[%s8450_s27 + $0x908] sm:$0xf] }
 0x23d   : > { %3728 = vmatpush.bf16.msra.mxu1 %v6726_v59  ;;  %3785 = vmatpush.bf16.msrb.mxu0 %v6602_v16  ;;  %v6786_v10 = vor.u32 %v7976_v26, %v6783_v12  ;;  %v7968_v42 = vld [vmem:[%s8450_s27 + $0xa04] sm:$0xf]  ;;  %v7965_v26 = vld [vmem:[%s8450_s27 + $0x9ec] sm:$0xf]  ;;  %v6743_v12 = vld [vmem:[%s8450_s27 + $0x9f8] sm:$0xf0] }
 0x23e   : > { %v2551_v7 = vpop.f32.mrf.mxu3  ;;  %3673 = vmatpush.bf16.msrb.mxu2 %v6818_v35  ;;  %3617 = vmatpush.bf16.msra.mxu3 %v6926_v2  ;;  %v6519_v35 = vld [vmem:[%s8450_s27 + $0x838] sm:$0xf0] }
 0x23f   : > { %v2552_v54 = vadd.f32 %v2551_v7, %v2533_v31  ;;  %v6799_v31 = vld [vmem:[%s8450_s27 + $0xa70] sm:$0xf0]  ;;  %v2585_v7 = vadd.f32 %v9630_v36, %v2566_v1  ;;  %v6661_v36 = vld [vmem:[%s8450_s27 + $0x948] sm:$0xf]  ;;  %v6522_v9 = vor.u32 %v7909_v17, %v6519_v35 }
 0x240   : > { %v6802_v38 = vor.u32 %v7980_v25, %v6799_v31  ;;  %v7939_v31 = vld [vmem:[%s8450_s27 + $0x914] sm:$0xf0] }
 0x241   : > { %vm2719_vm15 = vcmp.ge.f32.partialorder %v2552_v54, 0.0  ;;  %v2735_v21 = vmul.f32 0.2, %v2552_v54  ;;  %3729 = vmatpush.bf16.msra.mxu1 %v6710_v37  ;;  %3786 = vmatpush.bf16.msrb.mxu0 %v6586_v24  ;;  %v2604_v59 = vadd.f32 %v9638_v30, %v2585_v7  ;;  %v2569_v37 = vadd.f32 %v9655_v13, %v9626_v23  ;;  %v6767_v24 = vld [vmem:[%s8450_s27 + $0xa30] sm:$0xf0]  ;;  %v2608_v56 = vpop.f32.mrf.mxu2  ;;  %v2639_v7 = vpop.f32.mrf.mxu0 }
 0x242   : > { %3674 = vmatpush.bf16.msrb.mxu2 %v6802_v38  ;;  %v7905_v38 = vld [vmem:[%s8450_s27 + $0x80c] sm:$0xf] }
 0x243   : > { %v2751_v51 = vsel %vm2719_vm15, %v2552_v54, %v2735_v21  ;;  %v8010_v54 = vld [vmem:[%s8450_s27 + $0xb4c] sm:$0xf0]  ;;  %v7947_v21 = vld [vmem:[%s8450_s27 + $0x954] sm:$0xf0]  ;;  %v2588_v11 = vadd.f32 %v9663_v57, %v2569_v37  ;;  %v6751_v57 = vld [vmem:[%s8450_s27 + $0xa10] sm:$0xf0]  ;;  %v6506_v29 = vor.u32 %v7905_v38, %v6503_v50 }
 0x244   : > { %v2767_v20 = vmul.f32 1.4142135, %v2751_v51  ;;  %v6910_v16 = vor.u32 %v8010_v54, %v6909_v19  ;;  %v6662_v30 = vor.u32 %v7947_v21, %v6661_v36  ;;  %v7972_v51 = vld [vmem:[%s8450_s27 + $0xa24] sm:$0xf]  ;;  %v6754_v2 = vor.u32 %v7968_v42, %v6751_v57  ;;  %v7999_v54 = vld [vmem:[%s8450_s27 + $0xaf4] sm:$0xf0] }
 0x245   : > { %3730 = vmatpush.bf16.msra.mxu1 %v6694_v62  ;;  %3787 = vmatpush.bf16.msrb.mxu0 %v6570_v63  ;;  %v6770_v3 = vor.u32 %v7972_v51, %v6767_v24  ;;  %v2607_v62 = vadd.f32 %v9670_v27, %v2588_v11  ;;  %v6630_v27 = vor.u32 %v7939_v31, %v6629_v0  ;;  %v6975_v21 = vld [vmem:[%s8450_s27 + $0xbd0] sm:$0xf0]  ;;  %v6821_v57 = vld [vmem:[%s8450_s27 + $0xa88] sm:$0xf]  ;;  %v7987_v0 = vld [vmem:[%s8450_s27 + $0xa94] sm:$0xf0] }
 0x246   : > { %v2620_v32 = vpop.f32.mrf.mxu3  ;;  %v9665_v46 = vpack.c.bf16 %v2767_v20, %v2763_v39  ;;  %3618 = vmatpush.bf16.msra.mxu3 %v6910_v16  ;;  %v8006_v39 = vld [vmem:[%s8450_s27 + $0xb2c] sm:$0xf0]  ;;  %3675 = vmatpush.bf16.msrb.mxu2 %v6786_v10  ;;  %v8024_v10 = vld [vmem:[%s8450_s27 + $0xbc4] sm:$0xf]  ;;  %v6959_v24 = vld [vmem:[%s8450_s27 + $0xbb0] sm:$0xf0] }
 0x247   : > { %v2621_v14 = vadd.f32 %v2620_v32, %v2602_v52  ;;  %v6894_v20 = vor.u32 %v8006_v39, %v6893_v41  ;;  %v6645_v52 = vld [vmem:[%s8450_s27 + $0x928] sm:$0xf]  ;;  %v6978_v34 = vor.u32 %v8024_v10, %v6975_v21  ;;  %v6727_v39 = vld [vmem:[%s8450_s27 + $0x9d8] sm:$0xf0]  ;;  %v7979_v10 = vld [vmem:[%s8450_s27 + $0xa54] sm:$0xf0] }
 0x248   : > { %3588 = vmatmul.bf16.gmra.mxu1 %v9665_v46  ;;  %3645 = vmatmul.bf16.gmra.mxu0 %v9563_v18  ;;  %v6646_v32 = vor.u32 %v7943_v28, %v6645_v52  ;;  %v7991_v52 = vld [vmem:[%s8450_s27 + $0xab4] sm:$0xf0] }
 0x249   : > { %vm2708_vm0 = vcmp.ge.f32.partialorder %v2621_v14, 0.0  ;;  %v2724_v47 = vmul.f32 0.2, %v2621_v14  ;;  %3731 = vmatpush.bf16.msra.mxu1 %v6678_v8  ;;  %3788 = vmatpush.bf16.msrb.mxu0 %v6554_v55  ;;  %v8028_v8 = vld [vmem:[%s8450_s27 + $0xbe4] sm:$0xf]  ;;  %v2571_v55 = vadd.f32 %v9691_v44, %v9626_v23  ;;  %v6746_v23 = vor.u32 %v7965_v26, %v6743_v12  ;;  %v2677_v44 = vpop.f32.mrf.mxu2  ;;  %v2641_v17 = vpop.f32.mrf.mxu0 }
 0x24a   : > { %3619 = vmatpush.bf16.msra.mxu3 %v6894_v20  ;;  %3676 = vmatpush.bf16.msrb.mxu2 %v6770_v3  ;;  %v6994_v19 = vor.u32 %v8028_v8, %v6991_v58  ;;  %v8020_v20 = vld [vmem:[%s8450_s27 + $0xba4] sm:$0xf]  ;;  %v6927_v58 = vld [vmem:[%s8450_s27 + $0xb70] sm:$0xf0]  ;;  %v6679_v26 = vld [vmem:[%s8450_s27 + $0x978] sm:$0xf0] }
 0x24b   : > { %v2740_v5 = vsel %vm2708_vm0, %v2621_v14, %v2724_v47  ;;  %v8002_v14 = vld [vmem:[%s8450_s27 + $0xb0c] sm:$0xf0]  ;;  %v6869_v47 = vld [vmem:[%s8450_s27 + $0xae8] sm:$0xf]  ;;  %v2590_v36 = vadd.f32 %v9696_v40, %v2571_v55  ;;  %v9739_v40 = vperm.slane %v9457_v33, 3  ;;  %v6962_v33 = vor.u32 %v8020_v20, %v6959_v24 }
 0x24c   : > { %v2756_v13 = vmul.f32 1.4142135, %v2740_v5  ;;  %v6878_v63 = vor.u32 %v8002_v14, %v6877_v61  ;;  %v6870_v16 = vor.u32 %v7999_v54, %v6869_v47  ;;  %v8012_v8 = vld [vmem:[%s8450_s27 + $0xb64] sm:$0xf]  ;;  %v6805_v47 = vld [vmem:[%s8450_s27 + $0xa68] sm:$0xf] }
 0x24d   : > { %3732 = vmatpush.bf16.msra.mxu1 %v6662_v30  ;;  %3789 = vmatpush.bf16.msrb.mxu0 %v6538_v49  ;;  %v2609_v22 = vadd.f32 %v2608_v56, %v2590_v36  ;;  %v7995_v30 = vld [vmem:[%s8450_s27 + $0xad4] sm:$0xf0]  ;;  %v7961_v49 = vld [vmem:[%s8450_s27 + $0x9cc] sm:$0xf]  ;;  %v6837_v56 = vld [vmem:[%s8450_s27 + $0xaa8] sm:$0xf]  ;;  %v2640_v28 = vadd.f32 %v2639_v7, %v9739_v40  ;;  %v2642_v55 = vadd.f32 %v2641_v17, %v9739_v40 }
 0x24e   : > { %v2622_v15 = vpop.f32.mrf.mxu3  ;;  %3620 = vmatpush.bf16.msra.mxu3 %v6878_v63  ;;  %3677 = vmatpush.bf16.msrb.mxu2 %v6754_v2  ;;  %v6730_v37 = vor.u32 %v7961_v49, %v6727_v39  ;;  %v6838_v11 = vor.u32 %v7991_v52, %v6837_v56  ;;  %v6943_v63 = vld [vmem:[%s8450_s27 + $0xb90] sm:$0xf0]  ;;  %v7983_v54 = vld [vmem:[%s8450_s27 + $0xa74] sm:$0xf0]  ;;  %v8008_v12 = vld [vmem:[%s8450_s27 + $0xb44] sm:$0xf] }
 0x24f   : > { %v2623_v6 = vadd.f32 %v2622_v15, %v2604_v59  ;;  %v2658_v59 = vpop.f32.mrf.mxu1  ;;  %v6895_v39 = vld [vmem:[%s8450_s27 + $0xb30] sm:$0xf0]  ;;  %v6773_v20 = vld [vmem:[%s8450_s27 + $0xa28] sm:$0xf]  ;;  %v7975_v24 = vld [vmem:[%s8450_s27 + $0xa34] sm:$0xf0] }
 0x250   : > { %v6647_v52 = vld [vmem:[%s8450_s27 + $0x938] sm:$0xf0] }
 0x251   : > { %vm2712_vm1 = vcmp.ge.f32.partialorder %v2623_v6, 0.0  ;;  %v2728_v53 = vmul.f32 0.2, %v2623_v6  ;;  %3733 = vmatpush.bf16.msra.mxu1 %v6646_v32  ;;  %3790 = vmatpush.bf16.msrb.mxu0 %v6522_v9  ;;  %v2659_v9 = vadd.f32 %v2658_v59, %v2640_v28  ;;  %v2679_v31 = vpop.f32.mrf.mxu2  ;;  %v6806_v59 = vor.u32 %v7983_v54, %v6805_v47  ;;  %v2644_v21 = vpop.f32.mrf.mxu0  ;;  %v8031_v47 = vld [vmem:[%s8450_s27 + $0xbf4] sm:$0xf0] }
 0x252   : > { %3689 = vmatpush.bf16.msrb.mxu3 %v6994_v19  ;;  %v6930_v19 = vor.u32 %v8012_v8, %v6927_v58  ;;  %v6997_v58 = vld [vmem:[%s8450_s27 + $0xbe8] sm:$0xf] }
 0x253   : > { %v2744_v4 = vsel %vm2712_vm1, %v2623_v6, %v2728_v53  ;;  %v6853_v6 = vld [vmem:[%s8450_s27 + $0xac8] sm:$0xf]  ;;  %v2678_v2 = vadd.f32 %v2677_v44, %v2659_v9  ;;  %v6911_v44 = vld [vmem:[%s8450_s27 + $0xb50] sm:$0xf0]  ;;  %v6998_v54 = vor.u32 %v8031_v47, %v6997_v58  ;;  %v6759_v58 = vld [vmem:[%s8450_s27 + $0xa18] sm:$0xf0] }
 0x254   : > { %v2760_v60 = vmul.f32 1.4142135, %v2744_v4  ;;  %v6854_v41 = vor.u32 %v7995_v30, %v6853_v6  ;;  %v6711_v4 = vld [vmem:[%s8450_s27 + $0x9b8] sm:$0xf0]  ;;  %v7945_v6 = vld [vmem:[%s8450_s27 + $0x94c] sm:$0xf] }
 0x255   : > { %3734 = vmatpush.bf16.msra.mxu1 %v6630_v27  ;;  %3791 = vmatpush.bf16.msrb.mxu0 %v6506_v29  ;;  %v6695_v27 = vld [vmem:[%s8450_s27 + $0x998] sm:$0xf0] }
 0x256   : > { %v9716_v25 = vpack.c.bf16 %v2760_v60, %v2756_v13  ;;  %v2625_v1 = vpop.f32.mrf.mxu3  ;;  %3690 = vmatpush.bf16.msrb.mxu3 %v6978_v34  ;;  %v7957_v13 = vld [vmem:[%s8450_s27 + $0x9ac] sm:$0xf]  ;;  %v6914_v34 = vor.u32 %v8008_v12, %v6911_v44  ;;  %v6663_v30 = vld [vmem:[%s8450_s27 + $0x958] sm:$0xf0]  ;;  %v6981_v12 = vld [vmem:[%s8450_s27 + $0xbc8] sm:$0xf] }
 0x257   : > { %v2626_v43 = vadd.f32 %v2625_v1, %v2607_v62  ;;  %v6714_v60 = vor.u32 %v7957_v13, %v6711_v4  ;;  %v2660_v61 = vpop.f32.mrf.mxu1  ;;  %v8016_v62 = vld [vmem:[%s8450_s27 + $0xb84] sm:$0xf]  ;;  %v7953_v1 = vld [vmem:[%s8450_s27 + $0x98c] sm:$0xf]  ;;  %v6879_v13 = vld [vmem:[%s8450_s27 + $0xb10] sm:$0xf0] }
 0x258   : > { %3602 = vmatmul.bf16.vlgmr.msra.gmra.mxu2 %v9716_v25  ;;  %3659 = vmatmul.bf16.vlgmr.msrb.gmra.mxu1 %v9609_v48  ;;  %v6946_v42 = vor.u32 %v8016_v62, %v6943_v63  ;;  %v6698_v29 = vor.u32 %v7953_v1, %v6695_v27  ;;  %v2661_v36 = vadd.f32 %v2660_v61, %v2642_v55  ;;  %v6631_v1 = vld [vmem:[%s8450_s27 + $0x918] sm:$0xf0]  ;;  %v7997_v55 = vld [vmem:[%s8450_s27 + $0xaec] sm:$0xf] }
 0x259   : > { %3716 = vmatmul.bf16.vlgmr.msra.gmra.mxu0 %v9515_v45  ;;  %vm2716_vm2 = vcmp.ge.f32.partialorder %v2626_v43, 0.0  ;;  %v2732_v15 = vmul.f32 0.2, %v2626_v43  ;;  %3746 = vmatpush.bf16.msra.mxu2 %v6870_v16  ;;  %v7949_v16 = vld [vmem:[%s8450_s27 + $0x96c] sm:$0xf]  ;;  %v2682_v28 = vpop.f32.mrf.mxu2 }
 0x25a   : > { %3803 = vmatpush.bf16.msrb.mxu1 %v6746_v23  ;;  %3691 = vmatpush.bf16.msrb.mxu3 %v6962_v33  ;;  %v6682_v23 = vor.u32 %v7949_v16, %v6679_v26  ;;  %v2680_v49 = vadd.f32 %v2679_v31, %v2661_v36  ;;  %v7941_v33 = vld [vmem:[%s8450_s27 + $0x92c] sm:$0xf]  ;;  %v8027_v36 = vld [vmem:[%s8450_s27 + $0xbd4] sm:$0xf0] }
 0x25b   : > { %v2748_v53 = vsel %vm2716_vm2, %v2626_v43, %v2732_v15  ;;  %v6822_v43 = vor.u32 %v7987_v0, %v6821_v57  ;;  %v6789_v15 = vld [vmem:[%s8450_s27 + $0xa48] sm:$0xf]  ;;  %v7971_v57 = vld [vmem:[%s8450_s27 + $0xa14] sm:$0xf0]  ;;  %v7937_v0 = vld [vmem:[%s8450_s27 + $0x90c] sm:$0xf] }
 0x25c   : > { %v2764_v32 = vmul.f32 1.4142135, %v2748_v53  ;;  %v6666_v53 = vor.u32 %v7945_v6, %v6663_v30  ;;  %v8023_v6 = vld [vmem:[%s8450_s27 + $0xbb4] sm:$0xf0]  ;;  %v7989_v30 = vld [vmem:[%s8450_s27 + $0xaac] sm:$0xf] }
 0x25d   : > { %3747 = vmatpush.bf16.msra.mxu2 %v6854_v41  ;;  %v8004_v41 = vld [vmem:[%s8450_s27 + $0xb24] sm:$0xf] }
 0x25e   : > { %v2627_v5 = vpop.f32.mrf.mxu3  ;;  %3804 = vmatpush.bf16.msrb.mxu1 %v6730_v37  ;;  %3692 = vmatpush.bf16.msrb.mxu3 %v6946_v42  ;;  %v6757_v42 = vld [vmem:[%s8450_s27 + $0xa08] sm:$0xf] }
 0x25f   : > { %v2628_v51 = vadd.f32 %v2627_v5, %v2609_v22  ;;  %v6790_v5 = vor.u32 %v7979_v10, %v6789_v15  ;;  %v6758_v27 = vor.u32 %v7971_v57, %v6757_v42  ;;  %v7993_v15 = vld [vmem:[%s8450_s27 + $0xacc] sm:$0xf]  ;;  %v6791_v42 = vld [vmem:[%s8450_s27 + $0xa58] sm:$0xf0] }
 0x261   : > { %vm2720_vm3 = vcmp.ge.f32.partialorder %v2628_v51, 0.0  ;;  %v2736_v3 = vmul.f32 0.2, %v2628_v51  ;;  %3748 = vmatpush.bf16.msra.mxu2 %v6838_v11  ;;  %v8000_v11 = vld [vmem:[%s8450_s27 + $0xb04] sm:$0xf]  ;;  %v2684_v16 = vpop.f32.mrf.mxu2 }
 0x262   : > { %3805 = vmatpush.bf16.msrb.mxu1 %v6714_v60  ;;  %3693 = vmatpush.bf16.msrb.mxu3 %v6930_v19  ;;  %v6650_v60 = vor.u32 %v7941_v33, %v6647_v52  ;;  %v7985_v52 = vld [vmem:[%s8450_s27 + $0xa8c] sm:$0xf] }
 0x263   : > { %v2752_v35 = vsel %vm2720_vm3, %v2628_v51, %v2736_v3  ;;  %v2663_v51 = vpop.f32.mrf.mxu1  ;;  %v6898_v3 = vor.u32 %v8004_v41, %v6895_v39  ;;  %v6839_v41 = vld [vmem:[%s8450_s27 + $0xab8] sm:$0xf0] }
 0x264   : > { %v2768_v14 = vmul.f32 1.4142135, %v2752_v35  ;;  %v2645_v35 = vadd.f32 %v2644_v21, %v9739_v40 }
 0x265   : > { %3749 = vmatpush.bf16.msra.mxu2 %v6822_v43 }
 0x266   : > { %v2696_v38 = vpop.f32.mrf.mxu3  ;;  %v9755_v50 = vpack.c.bf16 %v2768_v14, %v2764_v32  ;;  %3806 = vmatpush.bf16.msrb.mxu1 %v6698_v29  ;;  %3694 = vmatpush.bf16.msrb.mxu3 %v6914_v34  ;;  %v6774_v32 = vor.u32 %v7975_v24, %v6773_v20  ;;  %v6882_v14 = vor.u32 %v8000_v11, %v6879_v13  ;;  %v6965_v34 = vld [vmem:[%s8450_s27 + $0xba8] sm:$0xf] }
 0x267   : > { %v2697_v7 = vadd.f32 %v2696_v38, %v2678_v2  ;;  %v2664_v62 = vadd.f32 %v2663_v51, %v2645_v35  ;;  %v2646_v2 = vpop.f32.mrf.mxu0  ;;  %v6634_v29 = vor.u32 %v7937_v0, %v6631_v1  ;;  %v6842_v51 = vor.u32 %v7989_v30, %v6839_v41  ;;  %v6933_v13 = vld [vmem:[%s8450_s27 + $0xb68] sm:$0xf]  ;;  %v6903_v30 = vld [vmem:[%s8450_s27 + $0xb38] sm:$0xf0] }
 0x268   : > { %3607 = vmatmul.bf16.gmra.mxu2 %v9755_v50  ;;  %3664 = vmatmul.bf16.gmra.mxu1 %v9665_v46  ;;  %v2647_v19 = vadd.f32 %v2646_v2, %v9739_v40  ;;  %v6982_v40 = vor.u32 %v8027_v36, %v6981_v12  ;;  %v6901_v0 = vld [vmem:[%s8450_s27 + $0xb28] sm:$0xf]  ;;  %v7973_v2 = vld [vmem:[%s8450_s27 + $0xa2c] sm:$0xf]  ;;  %v6967_v36 = vld [vmem:[%s8450_s27 + $0xbb8] sm:$0xf0] }
 0x269   : > { %3721 = vmatmul.bf16.gmra.mxu0 %v9563_v18  ;;  %v2725_v22 = vmul.f32 0.2, %v2697_v7  ;;  %vm2709_vm4 = vcmp.ge.f32.partialorder %v2697_v7, 0.0  ;;  %3750 = vmatpush.bf16.msra.mxu2 %v6806_v59  ;;  %v2683_v31 = vadd.f32 %v2682_v28, %v2664_v62  ;;  %v6871_v59 = vld [vmem:[%s8450_s27 + $0xaf8] sm:$0xf0] }
 0x26a   : > { %3807 = vmatpush.bf16.msrb.mxu1 %v6682_v23  ;;  %3695 = vmatpush.bf16.msrb.mxu3 %v6898_v3  ;;  %v6874_v26 = vor.u32 %v7997_v55, %v6871_v59  ;;  %v6823_v28 = vld [vmem:[%s8450_s27 + $0xa98] sm:$0xf0]  ;;  %v8029_v55 = vld [vmem:[%s8450_s27 + $0xbec] sm:$0xf] }
 0x26b   : > { %v2741_v17 = vsel %vm2709_vm4, %v2697_v7, %v2725_v22  ;;  %v2665_v7 = vpop.f32.mrf.mxu1  ;;  %v6826_v11 = vor.u32 %v7985_v52, %v6823_v28  ;;  %v8021_v12 = vld [vmem:[%s8450_s27 + $0xbac] sm:$0xf]  ;;  %v6887_v41 = vld [vmem:[%s8450_s27 + $0xb18] sm:$0xf0]  ;;  %v7197_v28 = vld [vmem:[%s8450_s27 + $0xc80] sm:$0xf] }
 0x26c   : > { %v2757_v9 = vmul.f32 1.4142135, %v2741_v17  ;;  %v2666_v23 = vadd.f32 %v2665_v7, %v2647_v19  ;;  %v6999_v19 = vld [vmem:[%s8450_s27 + $0xbf8] sm:$0xf0] }
 0x26d   : > { %3751 = vmatpush.bf16.msra.mxu2 %v6790_v5  ;;  %v6966_v5 = vor.u32 %v8023_v6, %v6965_v34  ;;  %v7002_v59 = vor.u32 %v8029_v55, %v6999_v19  ;;  %v8005_v6 = vld [vmem:[%s8450_s27 + $0xb2c] sm:$0xf]  ;;  %v7357_v55 = vld [vmem:[%s8450_s27 + $0xdc0] sm:$0xf]  ;;  %v8090_v19 = vld [vmem:[%s8450_s27 + $0xdcc] sm:$0xf0] }
 0x26e   : > { %v2698_v37 = vpop.f32.mrf.mxu3  ;;  %3808 = vmatpush.bf16.msrb.mxu1 %v6666_v53  ;;  %3696 = vmatpush.bf16.msrb.mxu3 %v6882_v14  ;;  %v2685_v10 = vadd.f32 %v2684_v16, %v2666_v23  ;;  %v8019_v53 = vld [vmem:[%s8450_s27 + $0xb94] sm:$0xf0]  ;;  %v6983_v16 = vld [vmem:[%s8450_s27 + $0xbd8] sm:$0xf0]  ;;  %v6970_v23 = vor.u32 %v8021_v12, %v6967_v36 }
 0x26f   : > { %v2699_v56 = vadd.f32 %v2698_v37, %v2680_v49  ;;  %v6949_v37 = vld [vmem:[%s8450_s27 + $0xb88] sm:$0xf] }
 0x270   : > { %v6950_v3 = vor.u32 %v8019_v53, %v6949_v37  ;;  %v7229_v53 = vld [vmem:[%s8450_s27 + $0xcc0] sm:$0xf] }
 0x271   : > { %vm2713_vm5 = vcmp.ge.f32.partialorder %v2699_v56, 0.0  ;;  %v2729_v4 = vmul.f32 0.2, %v2699_v56  ;;  %3752 = vmatpush.bf16.msra.mxu2 %v6774_v32  ;;  %v7981_v32 = vld [vmem:[%s8450_s27 + $0xa6c] sm:$0xf] }
 0x272   : > { %3809 = vmatpush.bf16.msrb.mxu1 %v6650_v60  ;;  %v6807_v60 = vld [vmem:[%s8450_s27 + $0xa78] sm:$0xf0] }
 0x273   : > { %v2745_v61 = vsel %vm2713_vm5, %v2699_v56, %v2729_v4  ;;  %v8015_v4 = vld [vmem:[%s8450_s27 + $0xb74] sm:$0xf0]  ;;  %v6810_v14 = vor.u32 %v7981_v32, %v6807_v60  ;;  %v8046_v32 = vld [vmem:[%s8450_s27 + $0xc6c] sm:$0xf0] }
 0x274   : > { %v2761_v63 = vmul.f32 1.4142135, %v2745_v61  ;;  %v6934_v35 = vor.u32 %v8015_v4, %v6933_v13  ;;  %v8011_v61 = vld [vmem:[%s8450_s27 + $0xb54] sm:$0xf0]  ;;  %v7181_v4 = vld [vmem:[%s8450_s27 + $0xc60] sm:$0xf] }
 0x275   : > { %3753 = vmatpush.bf16.msra.mxu2 %v6758_v27  ;;  %v8003_v27 = vld [vmem:[%s8450_s27 + $0xb14] sm:$0xf0] }
 0x276   : > { %v9788_v38 = vpack.c.bf16 %v2761_v63, %v2757_v9  ;;  %v2701_v43 = vpop.f32.mrf.mxu3  ;;  %3810 = vmatpush.bf16.msrb.mxu1 %v6634_v29  ;;  %v6917_v9 = vld [vmem:[%s8450_s27 + $0xb48] sm:$0xf]  ;;  %v7977_v63 = vld [vmem:[%s8450_s27 + $0xa4c] sm:$0xf] }
 0x277   : > { %v2702_v8 = vadd.f32 %v2701_v43, %v2683_v31  ;;  %v6918_v62 = vor.u32 %v8011_v61, %v6917_v9  ;;  %v6794_v57 = vor.u32 %v7977_v63, %v6791_v42  ;;  %v6775_v31 = vld [vmem:[%s8450_s27 + $0xa38] sm:$0xf0]  ;;  %v6885_v43 = vld [vmem:[%s8450_s27 + $0xb08] sm:$0xf]  ;;  %v7165_v61 = vld [vmem:[%s8450_s27 + $0xc40] sm:$0xf] }
 0x278   : > { %3621 = vmatmul.bf16.vlgmr.msra.gmra.mxu3 %v9788_v38  ;;  %3678 = vmatmul.bf16.vlgmr.msrb.gmra.mxu2 %v9716_v25  ;;  %v6778_v29 = vor.u32 %v7973_v2, %v6775_v31  ;;  %v6886_v7 = vor.u32 %v8003_v27, %v6885_v43  ;;  %v7149_v63 = vld [vmem:[%s8450_s27 + $0xc20] sm:$0xf]  ;;  %v8038_v42 = vld [vmem:[%s8450_s27 + $0xc2c] sm:$0xf0] }
 0x279   : > { %3735 = vmatmul.bf16.vlgmr.msra.gmra.mxu1 %v9609_v48  ;;  %3792 = vmatmul.bf16.vlgmr.msrb.gmra.mxu0 %v9515_v45  ;;  %v2733_v44 = vmul.f32 0.2, %v2702_v8  ;;  %v6855_v45 = vld [vmem:[%s8450_s27 + $0xad8] sm:$0xf0]  ;;  %vm2717_vm6 = vcmp.ge.f32.partialorder %v2702_v8, 0.0 }
 0x27a   : > { %3765 = vmatpush.bf16.msra.mxu3 %v6998_v54  ;;  %3822 = vmatpush.bf16.msrb.mxu2 %v6874_v26  ;;  %v6858_v21 = vor.u32 %v7993_v15, %v6855_v45  ;;  %v8025_v54 = vld [vmem:[%s8450_s27 + $0xbcc] sm:$0xf]  ;;  %v6935_v45 = vld [vmem:[%s8450_s27 + $0xb78] sm:$0xf0]  ;;  %v7373_v27 = vld [vmem:[%s8450_s27 + $0xde0] sm:$0xf] }
 0x27b   : > { %v2749_v39 = vsel %vm2717_vm6, %v2702_v8, %v2733_v44  ;;  %v7969_v8 = vld [vmem:[%s8450_s27 + $0xa0c] sm:$0xf]  ;;  %v6986_v26 = vor.u32 %v8025_v54, %v6983_v16  ;;  %v6951_v44 = vld [vmem:[%s8450_s27 + $0xb98] sm:$0xf0]  ;;  %v8056_v54 = vld [vmem:[%s8450_s27 + $0xcc4] sm:$0xf] }
 0x27c   : > { %v2765_v24 = vmul.f32 1.4142135, %v2749_v39  ;;  %v6762_v47 = vor.u32 %v7969_v8, %v6759_v58  ;;  %v7231_v16 = vld [vmem:[%s8450_s27 + $0xcd0] sm:$0xf0] }
 0x27d   : > { %v7234_v36 = vor.u32 %v8056_v54, %v7231_v16 }
 0x27e   : > { %v2703_v22 = vpop.f32.mrf.mxu3  ;;  %3766 = vmatpush.bf16.msra.mxu3 %v6982_v40  ;;  %3823 = vmatpush.bf16.msrb.mxu2 %v6858_v21  ;;  %v8017_v40 = vld [vmem:[%s8450_s27 + $0xb8c] sm:$0xf] }
 0x27f   : > { %v2704_v49 = vadd.f32 %v2703_v22, %v2685_v10  ;;  %v6954_v15 = vor.u32 %v8017_v40, %v6951_v44  ;;  %v8009_v10 = vld [vmem:[%s8450_s27 + $0xb4c] sm:$0xf]  ;;  %v6919_v22 = vld [vmem:[%s8450_s27 + $0xb58] sm:$0xf0]  ;;  %v7341_v40 = vld [vmem:[%s8450_s27 + $0xda0] sm:$0xf] }
 0x280   : > { %v6922_v34 = vor.u32 %v8009_v10, %v6919_v22  ;;  %v8086_v44 = vld [vmem:[%s8450_s27 + $0xdac] sm:$0xf0] }
 0x281   : > { %vm2721_vm7 = vcmp.ge.f32.partialorder %v2704_v49, 0.0  ;;  %v2737_v20 = vmul.f32 0.2, %v2704_v49 }
 0x282   : > { %3767 = vmatpush.bf16.msra.mxu3 %v6966_v5  ;;  %3824 = vmatpush.bf16.msrb.mxu2 %v6842_v51  ;;  %v8001_v5 = vld [vmem:[%s8450_s27 + $0xb0c] sm:$0xf]  ;;  %v8062_v51 = vld [vmem:[%s8450_s27 + $0xcec] sm:$0xf0] }
 0x283   : > { %v2753_v56 = vsel %vm2721_vm7, %v2704_v49, %v2737_v20  ;;  %v6906_v49 = vor.u32 %v8005_v6, %v6903_v30  ;;  %v6890_v39 = vor.u32 %v8001_v5, %v6887_v41  ;;  %v8058_v20 = vld [vmem:[%s8450_s27 + $0xccc] sm:$0xf0]  ;;  %v7325_v6 = vld [vmem:[%s8450_s27 + $0xd80] sm:$0xf]  ;;  %v7199_v41 = vld [vmem:[%s8450_s27 + $0xc90] sm:$0xf0] }
 0x284   : > { %v2769_v33 = vmul.f32 1.4142135, %v2753_v56  ;;  %v8082_v30 = vld [vmem:[%s8450_s27 + $0xd8c] sm:$0xf0] }
 0x285   : > { %v7326_v5 = vor.u32 %v8082_v30, %v7325_v6  ;;  %v8092_v6 = vld [vmem:[%s8450_s27 + $0xde4] sm:$0xf] }
 0x286   : > { %v9811_v17 = vpack.c.bf16 %v2769_v33, %v2765_v24  ;;  %3768 = vmatpush.bf16.msra.mxu3 %v6950_v3  ;;  %3825 = vmatpush.bf16.msrb.mxu2 %v6826_v11  ;;  %v7230_v24 = vor.u32 %v8058_v20, %v7229_v53  ;;  %v7213_v3 = vld [vmem:[%s8450_s27 + $0xca0] sm:$0xf]  ;;  %v8054_v33 = vld [vmem:[%s8450_s27 + $0xcac] sm:$0xf0] }
 0x287   : > { %v8050_v11 = vld [vmem:[%s8450_s27 + $0xc8c] sm:$0xf0]  ;;  %v7309_v20 = vld [vmem:[%s8450_s27 + $0xd60] sm:$0xf] }
 0x288   : > { %3626 = vmatmul.bf16.gmra.mxu3 %v9811_v17  ;;  %3683 = vmatmul.bf16.gmra.mxu2 %v9755_v50 }
 0x289   : > { %3740 = vmatmul.bf16.gmra.mxu1 %v9665_v46  ;;  %3797 = vmatmul.bf16.gmra.mxu0 %v9563_v18  ;;  %v8007_v18 = vld [vmem:[%s8450_s27 + $0xb34] sm:$0xf0] }
 0x28a   : > { %3769 = vmatpush.bf16.msra.mxu3 %v6934_v35  ;;  %3826 = vmatpush.bf16.msrb.mxu2 %v6810_v14  ;;  %v6902_v1 = vor.u32 %v8007_v18, %v6901_v0  ;;  %v7182_v35 = vor.u32 %v8046_v32, %v7181_v4  ;;  %v8042_v14 = vld [vmem:[%s8450_s27 + $0xc4c] sm:$0xf0]  ;;  %v7133_v18 = vld [vmem:[%s8450_s27 + $0xc00] sm:$0xf] }
 0x28b   : > { %v7293_v4 = vld [vmem:[%s8450_s27 + $0xd40] sm:$0xf]  ;;  %v8074_v32 = vld [vmem:[%s8450_s27 + $0xd4c] sm:$0xf0] }
 0x28e   : > { %3770 = vmatpush.bf16.msra.mxu3 %v6918_v62  ;;  %3827 = vmatpush.bf16.msrb.mxu2 %v6794_v57  ;;  %v7150_v57 = vor.u32 %v8038_v42, %v7149_v63 }
 0x292   : > { %3771 = vmatpush.bf16.msra.mxu3 %v6902_v1  ;;  %3828 = vmatpush.bf16.msrb.mxu2 %v6778_v29  ;;  %v8034_v1 = vld [vmem:[%s8450_s27 + $0xc0c] sm:$0xf0] }
 0x293   : > { %v7134_v2 = vor.u32 %v8034_v1, %v7133_v18  ;;  %v8094_v29 = vld [vmem:[%s8450_s27 + $0xdec] sm:$0xf0]  ;;  %v8036_v1 = vld [vmem:[%s8450_s27 + $0xc24] sm:$0xf] }
 0x294   : > { %v7374_v8 = vor.u32 %v8094_v29, %v7373_v27  ;;  %v8070_v18 = vld [vmem:[%s8450_s27 + $0xd2c] sm:$0xf0]  ;;  %v7151_v29 = vld [vmem:[%s8450_s27 + $0xc30] sm:$0xf0] }
 0x295   : > { %v3565_v56 = vpop.f32.mrf.mxu0 }
 0x296   : > { %3772 = vmatpush.bf16.msra.mxu3 %v6886_v7  ;;  %3829 = vmatpush.bf16.msrb.mxu2 %v6762_v47  ;;  %v8060_v7 = vld [vmem:[%s8450_s27 + $0xce4] sm:$0xf]  ;;  %v9894_v47 = vld [vmem:[%s8456_s5 + $0x8] sm:$0xf] }
 0x297   : > { %4729 = vmatpush.bf16.msra.mxu1 %v7374_v8  ;;  %v7154_v8 = vor.u32 %v8036_v1, %v7151_v29  ;;  %v7221_v1 = vld [vmem:[%s8450_s27 + $0xca8] sm:$0xf] }
 0x298   : > { %3697 = vmatmul.bf16.vlgmr.msrb.gmra.mxu3 %v9788_v38  ;;  %3754 = vmatmul.bf16.vlgmr.msra.gmra.mxu2 %v9716_v25 }
 0x299   : > { %3811 = vmatmul.bf16.vlgmr.msrb.gmra.mxu1 %v9609_v48  ;;  %v8013_v48 = vld [vmem:[%s8450_s27 + $0xb6c] sm:$0xf] }
 0x29a   : > { %3841 = vmatpush.bf16.msrb.mxu3 %v7002_v59  ;;  %v6938_v21 = vor.u32 %v8013_v48, %v6935_v45  ;;  %v7358_v59 = vor.u32 %v8090_v19, %v7357_v55  ;;  %v7342_v48 = vor.u32 %v8086_v44, %v7341_v40  ;;  %v7215_v45 = vld [vmem:[%s8450_s27 + $0xcb0] sm:$0xf0]  ;;  %v8032_v40 = vld [vmem:[%s8450_s27 + $0xc04] sm:$0xf] }
 0x29b   : > { %v7135_v44 = vld [vmem:[%s8450_s27 + $0xc10] sm:$0xf0] }
 0x29c   : > { %4730 = vmatpush.bf16.msra.mxu1 %v7358_v59  ;;  %v8066_v59 = vld [vmem:[%s8450_s27 + $0xd0c] sm:$0xf0] }
 0x29d   : > { %v9870_v60 = vpop.f32.mrf.mxu0 }
 0x29e   : > { %3842 = vmatpush.bf16.msrb.mxu3 %v6986_v26  ;;  %v9901_v26 = vperm.slane %v9894_v47, 0 }
 0x2a0   : > { %v3566_v10 = vadd.f32 %v3565_v56, %v9901_v26  ;;  %4731 = vmatpush.bf16.msra.mxu1 %v7342_v48  ;;  %v8044_v56 = vld [vmem:[%s8450_s27 + $0xc64] sm:$0xf] }
 0x2a2   : > { %3843 = vmatpush.bf16.msrb.mxu3 %v6970_v23 }
 0x2a4   : > { %4732 = vmatpush.bf16.msra.mxu1 %v7326_v5 }
 0x2a5   : > { %v9881_v0 = vpop.f32.mrf.mxu0 }
 0x2a6   : > { %3844 = vmatpush.bf16.msrb.mxu3 %v6954_v15  ;;  %v8052_v15 = vld [vmem:[%s8450_s27 + $0xca4] sm:$0xf] }
 0x2a7   : > { %v7218_v22 = vor.u32 %v8052_v15, %v7215_v45  ;;  %v7138_v45 = vor.u32 %v8032_v40, %v7135_v44 }
 0x2a8   : > { %3702 = vmatmul.bf16.gmra.mxu3 %v9811_v17  ;;  %3759 = vmatmul.bf16.gmra.mxu2 %v9755_v50 }
 0x2a9   : > { %3816 = vmatmul.bf16.gmra.mxu1 %v9665_v46  ;;  %v7245_v46 = vld [vmem:[%s8450_s27 + $0xce0] sm:$0xf] }
 0x2aa   : > { %3845 = vmatpush.bf16.msrb.mxu3 %v6938_v21  ;;  %v7246_v37 = vor.u32 %v8062_v51, %v7245_v46 }
 0x2ac   : > { %4710 = vmatpush.bf16.msra.mxu0 %v7246_v37 }
 0x2ad   : > { %v9903_v12 = vpop.f32.mrf.mxu0 }
 0x2ae   : > { %3846 = vmatpush.bf16.msrb.mxu3 %v6922_v34 }
 0x2b0   : > { %4711 = vmatpush.bf16.msra.mxu0 %v7230_v24  ;;  %v8078_v24 = vld [vmem:[%s8450_s27 + $0xd6c] sm:$0xf0] }
 0x2b2   : > { %3847 = vmatpush.bf16.msrb.mxu3 %v6906_v49  ;;  %v8048_v49 = vld [vmem:[%s8450_s27 + $0xc84] sm:$0xf] }
 0x2b3   : > { %v7202_v51 = vor.u32 %v8048_v49, %v7199_v41  ;;  %v7375_v49 = vld [vmem:[%s8450_s27 + $0xdf0] sm:$0xf0]  ;;  %v7253_v41 = vld [vmem:[%s8450_s27 + $0xce8] sm:$0xf] }
 0x2b4   : > { %v7378_v5 = vor.u32 %v8092_v6, %v7375_v49  ;;  %v8076_v6 = vld [vmem:[%s8450_s27 + $0xd64] sm:$0xf]  ;;  %v7311_v49 = vld [vmem:[%s8450_s27 + $0xd70] sm:$0xf0] }
 0x2b5   : > { %v3584_v52 = vpop.f32.mrf.mxu1  ;;  %v9918_v37 = vpop.f32.mrf.mxu0 }
 0x2b6   : > { %3848 = vmatpush.bf16.msrb.mxu3 %v6890_v39  ;;  %v3585_v34 = vadd.f32 %v3584_v52, %v3566_v10 }
 0x2b8   : > { %3773 = vmatmul.bf16.vlgmr.msra.gmra.mxu3 %v9788_v38  ;;  %3830 = vmatmul.bf16.vlgmr.msrb.gmra.mxu2 %v9716_v25  ;;  %v7214_v25 = vor.u32 %v8054_v33, %v7213_v3  ;;  %v3568_v3 = vadd.f32 %v9870_v60, %v9901_v26  ;;  %v7310_v33 = vor.u32 %v8078_v24, %v7309_v20  ;;  %v7485_v20 = vld [vmem:[%s8450_s27 + $0xec0] sm:$0xf]  ;;  %v8122_v24 = vld [vmem:[%s8450_s27 + $0xecc] sm:$0xf0] }
 0x2b9   : > { %v7294_v60 = vor.u32 %v8074_v32, %v7293_v4  ;;  %v8059_v4 = vld [vmem:[%s8450_s27 + $0xcd4] sm:$0xf0] }
 0x2ba   : > { %4712 = vmatpush.bf16.msra.mxu0 %v7214_v25  ;;  %v7183_v25 = vld [vmem:[%s8450_s27 + $0xc70] sm:$0xf0]  ;;  %4733 = vmatpush.bf16.msra.mxu1 %v7310_v33  ;;  %v8088_v33 = vld [vmem:[%s8450_s27 + $0xdc4] sm:$0xf] }
 0x2bd   : > { %v9872_v9 = vpop.f32.mrf.mxu1 }
 0x2be   : > { %4734 = vmatpush.bf16.msra.mxu1 %v7294_v60 }
 0x2c5   : > { %v9885_v31 = vpop.f32.mrf.mxu1 }
 0x2c8   : > { %3778 = vmatmul.bf16.gmra.mxu3 %v9811_v17  ;;  %3835 = vmatmul.bf16.gmra.mxu2 %v9755_v50  ;;  %v7198_v50 = vor.u32 %v8050_v11, %v7197_v28  ;;  %v7186_v28 = vor.u32 %v8044_v56, %v7183_v25  ;;  %v3587_v11 = vadd.f32 %v9872_v9, %v3568_v3  ;;  %v7359_v25 = vld [vmem:[%s8450_s27 + $0xdd0] sm:$0xf0] }
 0x2c9   : > { %v7486_v3 = vor.u32 %v8122_v24, %v7485_v20  ;;  %v8106_v24 = vld [vmem:[%s8450_s27 + $0xe4c] sm:$0xf0] }
 0x2ca   : > { %4713 = vmatpush.bf16.msra.mxu0 %v7198_v50 }
 0x2cd   : > { %v9905_v23 = vpop.f32.mrf.mxu1 }
 0x2ce   : > { %4714 = vmatpush.bf16.msra.mxu0 %v7182_v35 }
 0x2d5   : > { %v9926_v52 = vpop.f32.mrf.mxu1 }
 0x2d8   : > { %3849 = vmatmul.bf16.vlgmr.msrb.gmra.mxu3 %v9788_v38  ;;  %v7166_v38 = vor.u32 %v8042_v14, %v7165_v61  ;;  %v8040_v61 = vld [vmem:[%s8450_s27 + $0xc44] sm:$0xf]  ;;  %v7167_v14 = vld [vmem:[%s8450_s27 + $0xc50] sm:$0xf0] }
 0x2d9   : > { %v7170_v63 = vor.u32 %v8040_v61, %v7167_v14  ;;  %v7469_v61 = vld [vmem:[%s8450_s27 + $0xea0] sm:$0xf]  ;;  %v8118_v14 = vld [vmem:[%s8450_s27 + $0xeac] sm:$0xf0] }
 0x2da   : > { %4715 = vmatpush.bf16.msra.mxu0 %v7166_v38 }
 0x2db   : > { %v3603_v13 = vpop.f32.mrf.mxu2 }
 0x2dc   : > { %v3604_v39 = vadd.f32 %v3603_v13, %v3585_v34  ;;  %v8126_v34 = vld [vmem:[%s8450_s27 + $0xeec] sm:$0xf0] }
 0x2dd   : > { %v9945_v19 = vpop.f32.mrf.mxu1 }
 0x2de   : > { %4716 = vmatpush.bf16.msra.mxu0 %v7150_v57  ;;  %v7277_v57 = vld [vmem:[%s8450_s27 + $0xd20] sm:$0xf] }
 0x2df   : > { %v7278_v27 = vor.u32 %v8070_v18, %v7277_v57  ;;  %v7343_v57 = vld [vmem:[%s8450_s27 + $0xdb0] sm:$0xf0] }
 0x2e1   : > { %4735 = vmatpush.bf16.msra.mxu1 %v7278_v27 }
 0x2e2   : > { %4717 = vmatpush.bf16.msra.mxu0 %v7134_v2  ;;  %v3571_v2 = vadd.f32 %v9881_v0, %v9901_v26  ;;  %v7261_v0 = vld [vmem:[%s8450_s27 + $0xd00] sm:$0xf] }
 0x2e3   : > { %v9876_v62 = vpop.f32.mrf.mxu2 }
 0x2e4   : > { %v3606_v35 = vadd.f32 %v9876_v62, %v3587_v11 }
 0x2e8   : > { %3854 = vmatmul.bf16.gmra.mxu3 %v9811_v17  ;;  %v7247_v17 = vld [vmem:[%s8450_s27 + $0xcf0] sm:$0xf0] }
 0x2e9   : > { %v7250_v58 = vor.u32 %v8060_v7, %v7247_v17  ;;  %v9942_v7 = vpop.f32.mrf.mxu0  ;;  %v3590_v17 = vadd.f32 %v9885_v31, %v3571_v2  ;;  %v8055_v2 = vld [vmem:[%s8450_s27 + $0xcb4] sm:$0xf0] }
 0x2eb   : > { %v9887_v43 = vpop.f32.mrf.mxu2  ;;  %4786 = vmatpush.bf16.msrb.mxu0 %v7250_v58 }
 0x2ec   : > { %v3609_v16 = vadd.f32 %v9887_v43, %v3590_v17  ;;  %v3573_v43 = vadd.f32 %v9903_v12, %v9901_v26  ;;  %v7453_v17 = vld [vmem:[%s8450_s27 + $0xe80] sm:$0xf] }
 0x2ef   : > { %4787 = vmatpush.bf16.msrb.mxu0 %v7234_v36  ;;  %v7262_v36 = vor.u32 %v8066_v59, %v7261_v0  ;;  %v8080_v0 = vld [vmem:[%s8450_s27 + $0xd84] sm:$0xf]  ;;  %v7327_v59 = vld [vmem:[%s8450_s27 + $0xd90] sm:$0xf0] }
 0x2f0   : > { %v7330_v44 = vor.u32 %v8080_v0, %v7327_v59  ;;  %v8064_v0 = vld [vmem:[%s8450_s27 + $0xd04] sm:$0xf]  ;;  %v7141_v59 = vld [vmem:[%s8450_s27 + $0xc08] sm:$0xf] }
 0x2f1   : > { %4736 = vmatpush.bf16.msra.mxu1 %v7262_v36  ;;  %v9969_v26 = vpop.f32.mrf.mxu0 }
 0x2f3   : > { %v9912_v21 = vpop.f32.mrf.mxu2  ;;  %4788 = vmatpush.bf16.msrb.mxu0 %v7218_v22  ;;  %v7501_v22 = vld [vmem:[%s8450_s27 + $0xee0] sm:$0xf] }
 0x2f4   : > { %v7502_v30 = vor.u32 %v8126_v34, %v7501_v22  ;;  %v7437_v22 = vld [vmem:[%s8450_s27 + $0xe60] sm:$0xf]  ;;  %v8110_v34 = vld [vmem:[%s8450_s27 + $0xe6c] sm:$0xf0] }
 0x2f5   : > { %4805 = vmatpush.bf16.msrb.mxu1 %v7378_v5 }
 0x2f6   : > { %4748 = vmatpush.bf16.msra.mxu2 %v7502_v30  ;;  %v7438_v30 = vor.u32 %v8110_v34, %v7437_v22  ;;  %v8158_v22 = vld [vmem:[%s8450_s27 + $0xfec] sm:$0xf0]  ;;  %v8124_v34 = vld [vmem:[%s8450_s27 + $0xee4] sm:$0xf] }
 0x2f7   : > { %4789 = vmatpush.bf16.msrb.mxu0 %v7202_v51  ;;  %v3592_v51 = vadd.f32 %v9905_v23, %v3573_v43  ;;  %v7237_v23 = vld [vmem:[%s8450_s27 + $0xcc8] sm:$0xf] }
 0x2f9   : > { %v3611_v56 = vadd.f32 %v9912_v21, %v3592_v51  ;;  %v8047_v51 = vld [vmem:[%s8450_s27 + $0xc74] sm:$0xf0] }
 0x2fa   : > { %4749 = vmatpush.bf16.msra.mxu2 %v7486_v3 }
 0x2fb   : > { %v3622_v46 = vpop.f32.mrf.mxu3  ;;  %v9929_v13 = vpop.f32.mrf.mxu2  ;;  %4790 = vmatpush.bf16.msrb.mxu0 %v7186_v28 }
 0x2fc   : > { %v3623_v53 = vadd.f32 %v3622_v46, %v3604_v39  ;;  %v8063_v39 = vld [vmem:[%s8450_s27 + $0xcf4] sm:$0xf0]  ;;  %v9966_v46 = vperm.slane %v9894_v47, 1  ;;  %v9977_v28 = vpop.f32.mrf.mxu1 }
 0x2fe   : > { %v3876_v50 = vmul.f32 0.2, %v3623_v53  ;;  %vm3860_vm8 = vcmp.ge.f32.partialorder %v3623_v53, 0.0  ;;  %v3644_v43 = vadd.f32 %v9942_v7, %v9966_v46  ;;  %v7421_v7 = vld [vmem:[%s8450_s27 + $0xe40] sm:$0xf] }
 0x2ff   : > { %4791 = vmatpush.bf16.msrb.mxu0 %v7170_v63  ;;  %v3642_v63 = vadd.f32 %v9918_v37, %v9966_v46  ;;  %v7222_v37 = vor.u32 %v8055_v2, %v7221_v1  ;;  %v7422_v3 = vor.u32 %v8106_v24, %v7421_v7  ;;  %v7157_v1 = vld [vmem:[%s8450_s27 + $0xc28] sm:$0xf]  ;;  %v8039_v2 = vld [vmem:[%s8450_s27 + $0xc34] sm:$0xf0] }
 0x300   : > { %v3892_v42 = vsel %vm3860_vm8, %v3623_v53, %v3876_v50  ;;  %v7254_v53 = vor.u32 %v8063_v39, %v7253_v41  ;;  %v7362_v50 = vor.u32 %v8088_v33, %v7359_v25  ;;  %v7314_v41 = vor.u32 %v8076_v6, %v7311_v49  ;;  %v7189_v39 = vld [vmem:[%s8450_s27 + $0xc68] sm:$0xf]  ;;  %v8072_v33 = vld [vmem:[%s8450_s27 + $0xd44] sm:$0xf]  ;;  %v7295_v25 = vld [vmem:[%s8450_s27 + $0xd50] sm:$0xf0] }
 0x301   : > { %v3908_v58 = vmul.f32 1.4142135, %v3892_v42  ;;  %v7470_v42 = vor.u32 %v8118_v14, %v7469_v61  ;;  %v8102_v61 = vld [vmem:[%s8450_s27 + $0xe2c] sm:$0xf0]  ;;  %v8068_v14 = vld [vmem:[%s8450_s27 + $0xd24] sm:$0xf] }
 0x302   : > { %4806 = vmatpush.bf16.msrb.mxu1 %v7362_v50  ;;  %v8043_v50 = vld [vmem:[%s8450_s27 + $0xc54] sm:$0xf0] }
 0x303   : > { %v3624_v38 = vpop.f32.mrf.mxu3  ;;  %4792 = vmatpush.bf16.msrb.mxu0 %v7154_v8  ;;  %v9954_v15 = vpop.f32.mrf.mxu2  ;;  %4750 = vmatpush.bf16.msra.mxu2 %v7470_v42  ;;  %v7279_v42 = vld [vmem:[%s8450_s27 + $0xd30] sm:$0xf0] }
 0x304   : > { %v3625_v9 = vadd.f32 %v3624_v38, %v3606_v35  ;;  %v7238_v35 = vor.u32 %v8059_v4, %v7237_v23  ;;  %v8084_v38 = vld [vmem:[%s8450_s27 + $0xda4] sm:$0xf]  ;;  %v7173_v23 = vld [vmem:[%s8450_s27 + $0xc48] sm:$0xf] }
 0x305   : > { %v7346_v18 = vor.u32 %v8084_v38, %v7343_v57  ;;  %v3647_v38 = vadd.f32 %v9969_v26, %v9966_v46  ;;  %v7158_v26 = vor.u32 %v8039_v2, %v7157_v1 }
 0x306   : > { %vm3864_vm9 = vcmp.ge.f32.partialorder %v3625_v9, 0.0  ;;  %v3880_v62 = vmul.f32 0.2, %v3625_v9 }
 0x307   : > { %4793 = vmatpush.bf16.msrb.mxu0 %v7138_v45  ;;  %4807 = vmatpush.bf16.msrb.mxu1 %v7346_v18  ;;  %v7282_v18 = vor.u32 %v8068_v14, %v7279_v42  ;;  %v8150_v42 = vld [vmem:[%s8450_s27 + $0xfac] sm:$0xf0] }
 0x308   : > { %v3896_v55 = vsel %vm3864_vm9, %v3625_v9, %v3880_v62  ;;  %v3661_v62 = vadd.f32 %v9926_v52, %v3642_v63  ;;  %v9998_v52 = vpop.f32.mrf.mxu0 }
 0x309   : > { %v3912_v54 = vmul.f32 1.4142135, %v3896_v55  ;;  %v3649_v6 = vadd.f32 %v9998_v52, %v9966_v46  ;;  %v7255_v52 = vld [vmem:[%s8450_s27 + $0xcf8] sm:$0xf0] }
 0x30a   : > { %v3680_v55 = vadd.f32 %v9929_v13, %v3661_v62  ;;  %v3666_v62 = vadd.f32 %v9977_v28, %v3647_v38  ;;  %v7263_v28 = vld [vmem:[%s8450_s27 + $0xd10] sm:$0xf0] }
 0x30b   : > { %v9952_v31 = vpack.c.bf16 %v3912_v54, %v3908_v58  ;;  %v3627_v48 = vpop.f32.mrf.mxu3  ;;  %v9981_v60 = vpop.f32.mrf.mxu2  ;;  %v8114_v58 = vld [vmem:[%s8450_s27 + $0xe8c] sm:$0xf0]  ;;  %4808 = vmatpush.bf16.msrb.mxu1 %v7330_v44  ;;  %v7266_v44 = vor.u32 %v8064_v0, %v7263_v28  ;;  %v7223_v0 = vld [vmem:[%s8450_s27 + $0xcb8] sm:$0xf0] }
 0x30c   : > { %v3628_v10 = vadd.f32 %v3627_v48, %v3609_v16  ;;  %v7454_v54 = vor.u32 %v8114_v58, %v7453_v17  ;;  %v7205_v16 = vld [vmem:[%s8450_s27 + $0xc88] sm:$0xf]  ;;  %v8051_v48 = vld [vmem:[%s8450_s27 + $0xc94] sm:$0xf0]  ;;  %v7389_v17 = vld [vmem:[%s8450_s27 + $0xe00] sm:$0xf] }
 0x30d   : > { %4718 = vmatmul.bf16.vlgmr.msra.gmra.mxu0 %v9952_v31  ;;  %v7206_v13 = vor.u32 %v8051_v48, %v7205_v16  ;;  %v8098_v58 = vld [vmem:[%s8450_s27 + $0xe0c] sm:$0xf0]  ;;  %v8035_v48 = vld [vmem:[%s8450_s27 + $0xc14] sm:$0xf0] }
 0x30e   : > { %vm3868_vm10 = vcmp.ge.f32.partialorder %v3628_v10, 0.0  ;;  %v3884_v12 = vmul.f32 0.2, %v3628_v10  ;;  %4862 = vmatpush.bf16.msra.mxu0 %v7254_v53  ;;  %4751 = vmatpush.bf16.msra.mxu2 %v7454_v54  ;;  %v3663_v53 = vadd.f32 %v9945_v19, %v3644_v43  ;;  %v7298_v19 = vor.u32 %v8072_v33, %v7295_v25  ;;  %v8154_v33 = vld [vmem:[%s8450_s27 + $0xfcc] sm:$0xf0] }
 0x30f   : > { %4809 = vmatpush.bf16.msrb.mxu1 %v7314_v41  ;;  %v7390_v54 = vor.u32 %v8098_v58, %v7389_v17  ;;  %v8053_v17 = vld [vmem:[%s8450_s27 + $0xcac] sm:$0xf] }
 0x310   : > { %v3900_v21 = vsel %vm3868_vm10, %v3628_v10, %v3884_v12  ;;  %v10003_v10 = vpop.f32.mrf.mxu1  ;;  %v7190_v12 = vor.u32 %v8047_v51, %v7189_v39  ;;  %v7381_v39 = vld [vmem:[%s8450_s27 + $0xde8] sm:$0xf]  ;;  %v8095_v51 = vld [vmem:[%s8450_s27 + $0xdf4] sm:$0xf0] }
 0x311   : > { %v3916_v27 = vmul.f32 1.4142135, %v3900_v21  ;;  %v7405_v21 = vld [vmem:[%s8450_s27 + $0xe20] sm:$0xf]  ;;  %v7382_v46 = vor.u32 %v8095_v51, %v7381_v39  ;;  %v8049_v39 = vld [vmem:[%s8450_s27 + $0xc8c] sm:$0xf] }
 0x312   : > { %4863 = vmatpush.bf16.msra.mxu0 %v7238_v35  ;;  %4752 = vmatpush.bf16.msra.mxu2 %v7438_v30  ;;  %v10024_v35 = vpop.f32.mrf.mxu0  ;;  %v7503_v30 = vld [vmem:[%s8450_s27 + $0xef0] sm:$0xf0]  ;;  %v7207_v51 = vld [vmem:[%s8450_s27 + $0xc98] sm:$0xf0] }
 0x313   : > { %v3629_v11 = vpop.f32.mrf.mxu3  ;;  %v10012_v5 = vpop.f32.mrf.mxu2  ;;  %4810 = vmatpush.bf16.msrb.mxu1 %v7298_v19  ;;  %v7506_v41 = vor.u32 %v8124_v34, %v7503_v30  ;;  %v7365_v19 = vld [vmem:[%s8450_s27 + $0xdc8] sm:$0xf] }
 0x314   : > { %v3630_v32 = vadd.f32 %v3629_v11, %v3611_v56  ;;  %v3682_v56 = vadd.f32 %v9954_v15, %v3663_v53  ;;  %v8061_v53 = vld [vmem:[%s8450_s27 + $0xcec] sm:$0xf] }
 0x316   : > { %vm3872_vm11 = vcmp.ge.f32.partialorder %v3630_v32, 0.0  ;;  %v3888_v9 = vmul.f32 0.2, %v3630_v32  ;;  %4864 = vmatpush.bf16.msra.mxu0 %v7222_v37  ;;  %4753 = vmatpush.bf16.msra.mxu2 %v7422_v3  ;;  %v7613_v3 = vld [vmem:[%s8450_s27 + $0xfc0] sm:$0xf] }
 0x317   : > { %4811 = vmatpush.bf16.msrb.mxu1 %v7282_v18  ;;  %v8116_v18 = vld [vmem:[%s8450_s27 + $0xea4] sm:$0xf] }
 0x318   : > { %v3904_v29 = vsel %vm3872_vm11, %v3630_v32, %v3888_v9  ;;  %v7174_v32 = vor.u32 %v8043_v50, %v7173_v23  ;;  %v7406_v9 = vor.u32 %v8102_v61, %v7405_v21  ;;  %v10033_v57 = vpop.f32.mrf.mxu1  ;;  %v7614_v23 = vor.u32 %v8154_v33, %v7613_v3  ;;  %v8057_v21 = vld [vmem:[%s8450_s27 + $0xccc] sm:$0xf]  ;;  %v7239_v61 = vld [vmem:[%s8450_s27 + $0xcd8] sm:$0xf0] }
 0x319   : > { %v3920_v8 = vmul.f32 1.4142135, %v3904_v29  ;;  %v7242_v38 = vor.u32 %v8057_v21, %v7239_v61  ;;  %v7549_v61 = vld [vmem:[%s8450_s27 + $0xf40] sm:$0xf] }
 0x31a   : > { %4865 = vmatpush.bf16.msra.mxu0 %v7206_v13  ;;  %4754 = vmatpush.bf16.msra.mxu2 %v7406_v9  ;;  %v7142_v13 = vor.u32 %v8035_v48, %v7141_v59  ;;  %v10057_v49 = vpop.f32.mrf.mxu0  ;;  %v7597_v9 = vld [vmem:[%s8450_s27 + $0xfa0] sm:$0xf]  ;;  %v8146_v48 = vld [vmem:[%s8450_s27 + $0xf8c] sm:$0xf0] }
 0x31b   : > { %v3698_v36 = vpop.f32.mrf.mxu3  ;;  %v10000_v40 = vpack.c.bf16 %v3920_v8, %v3916_v27  ;;  %v10038_v37 = vpop.f32.mrf.mxu2  ;;  %4812 = vmatpush.bf16.msrb.mxu1 %v7266_v44  ;;  %v7581_v44 = vld [vmem:[%s8450_s27 + $0xf80] sm:$0xf] }
 0x31c   : > { %v3699_v45 = vadd.f32 %v3698_v36, %v3680_v55  ;;  %v3685_v55 = vadd.f32 %v9981_v60, %v3666_v62  ;;  %v7629_v60 = vld [vmem:[%s8450_s27 + $0xfe0] sm:$0xf]  ;;  %v7598_v62 = vor.u32 %v8150_v42, %v7597_v9  ;;  %v7423_v9 = vld [vmem:[%s8450_s27 + $0xe50] sm:$0xf0] }
 0x31d   : > { %4723 = vmatmul.bf16.gmra.mxu0 %v10000_v40  ;;  %v7630_v43 = vor.u32 %v8158_v22, %v7629_v60  ;;  %v7455_v60 = vld [vmem:[%s8450_s27 + $0xe90] sm:$0xf0]  ;;  %v7333_v22 = vld [vmem:[%s8450_s27 + $0xd88] sm:$0xf] }
 0x31e   : > { %vm3861_vm12 = vcmp.ge.f32.partialorder %v3699_v45, 0.0  ;;  %v3877_v20 = vmul.f32 0.2, %v3699_v45  ;;  %4866 = vmatpush.bf16.msra.mxu0 %v7190_v12  ;;  %4755 = vmatpush.bf16.msra.mxu2 %v7390_v54  ;;  %v10063_v12 = vperm.slane %v9894_v47, 2 }
 0x31f   : > { %4767 = vmatpush.bf16.msra.mxu3 %v7630_v43 }
 0x320   : > { %v3893_v15 = vsel %vm3861_vm12, %v3699_v45, %v3877_v20  ;;  %v3668_v20 = vadd.f32 %v10003_v10, %v3649_v6  ;;  %v10067_v7 = vpop.f32.mrf.mxu1  ;;  %v8120_v10 = vld [vmem:[%s8450_s27 + $0xec4] sm:$0xf]  ;;  %v3718_v1 = vadd.f32 %v10024_v35, %v10063_v12  ;;  %v3720_v3 = vadd.f32 %v10057_v49, %v10063_v12  ;;  %v7191_v49 = vld [vmem:[%s8450_s27 + $0xc78] sm:$0xf0] }
 0x321   : > { %v3909_v27 = vmul.f32 1.4142135, %v3893_v15  ;;  %v8091_v15 = vld [vmem:[%s8450_s27 + $0xdd4] sm:$0xf0] }
 0x322   : > { %4867 = vmatpush.bf16.msra.mxu0 %v7174_v32  ;;  %4824 = vmatpush.bf16.msrb.mxu2 %v7506_v41  ;;  %v3687_v25 = vadd.f32 %v10012_v5, %v3668_v20  ;;  %v7366_v5 = vor.u32 %v8091_v15, %v7365_v19  ;;  %v3737_v58 = vadd.f32 %v10033_v57, %v3718_v1  ;;  %v10092_v28 = vpop.f32.mrf.mxu0  ;;  %v8083_v41 = vld [vmem:[%s8450_s27 + $0xd94] sm:$0xf0]  ;;  %v8045_v19 = vld [vmem:[%s8450_s27 + $0xc6c] sm:$0xf] }
 0x323   : > { %v3700_v11 = vpop.f32.mrf.mxu3  ;;  %v10075_v50 = vpop.f32.mrf.mxu2  ;;  %4768 = vmatpush.bf16.msra.mxu3 %v7614_v23  ;;  %v7582_v57 = vor.u32 %v8146_v48, %v7581_v44  ;;  %v7210_v20 = vor.u32 %v8049_v39, %v7207_v51  ;;  %v7194_v21 = vor.u32 %v8045_v19, %v7191_v49  ;;  %v7517_v51 = vld [vmem:[%s8450_s27 + $0xf00] sm:$0xf]  ;;  %v7631_v49 = vld [vmem:[%s8450_s27 + $0xff0] sm:$0xf0] }
 0x324   : > { %v3701_v4 = vadd.f32 %v3700_v11, %v3682_v56  ;;  %v7258_v56 = vor.u32 %v8061_v53, %v7255_v52  ;;  %v7487_v11 = vld [vmem:[%s8450_s27 + $0xed0] sm:$0xf0]  ;;  %v7334_v53 = vor.u32 %v8083_v41, %v7333_v22  ;;  %v7565_v52 = vld [vmem:[%s8450_s27 + $0xf60] sm:$0xf] }
 0x325   : > { %v7490_v32 = vor.u32 %v8120_v10, %v7487_v11  ;;  %v7317_v10 = vld [vmem:[%s8450_s27 + $0xd68] sm:$0xf]  ;;  %v8079_v11 = vld [vmem:[%s8450_s27 + $0xd74] sm:$0xf0] }
 0x326   : > { %vm3865_vm13 = vcmp.ge.f32.partialorder %v3701_v4, 0.0  ;;  %v3881_v63 = vmul.f32 0.2, %v3701_v4  ;;  %4868 = vmatpush.bf16.msra.mxu0 %v7158_v26  ;;  %v7349_v26 = vld [vmem:[%s8450_s27 + $0xda8] sm:$0xf] }
 0x327   : > { %4825 = vmatpush.bf16.msrb.mxu2 %v7490_v32  ;;  %4769 = vmatpush.bf16.msra.mxu3 %v7598_v62  ;;  %v7318_v32 = vor.u32 %v8079_v11, %v7317_v10  ;;  %v8041_v62 = vld [vmem:[%s8450_s27 + $0xc4c] sm:$0xf]  ;;  %v7143_v10 = vld [vmem:[%s8450_s27 + $0xc18] sm:$0xf0] }
 0x328   : > { %v3897_v29 = vsel %vm3865_vm13, %v3701_v4, %v3881_v63  ;;  %v10100_v34 = vpop.f32.mrf.mxu1 }
 0x329   : > { %v3913_v8 = vmul.f32 1.4142135, %v3897_v29 }
 0x32a   : > { %4869 = vmatpush.bf16.msra.mxu0 %v7142_v13  ;;  %v8112_v13 = vld [vmem:[%s8450_s27 + $0xe84] sm:$0xf]  ;;  %v10128_v42 = vpop.f32.mrf.mxu0 }
 0x32b   : > { %v10046_v16 = vpack.c.bf16 %v3913_v8, %v3909_v27  ;;  %v3703_v36 = vpop.f32.mrf.mxu3  ;;  %v7471_v27 = vld [vmem:[%s8450_s27 + $0xeb0] sm:$0xf0]  ;;  %v8087_v8 = vld [vmem:[%s8450_s27 + $0xdb4] sm:$0xf0]  ;;  %v7458_v30 = vor.u32 %v8112_v13, %v7455_v60  ;;  %4770 = vmatpush.bf16.msra.mxu3 %v7582_v57  ;;  %v8037_v13 = vld [vmem:[%s8450_s27 + $0xc2c] sm:$0xf] }
 0x32c   : > { %v3704_v45 = vadd.f32 %v3703_v36, %v3685_v55  ;;  %v7474_v29 = vor.u32 %v8116_v18, %v7471_v27  ;;  %v7350_v54 = vor.u32 %v8087_v8, %v7349_v26  ;;  %v7226_v36 = vor.u32 %v8053_v17, %v7223_v0  ;;  %v7175_v27 = vld [vmem:[%s8450_s27 + $0xc58] sm:$0xf0]  ;;  %v8071_v57 = vld [vmem:[%s8450_s27 + $0xd34] sm:$0xf0] }
 0x32d   : > { %4737 = vmatmul.bf16.vlgmr.msra.gmra.mxu1 %v10046_v16  ;;  %4794 = vmatmul.bf16.vlgmr.msrb.gmra.mxu0 %v9952_v31  ;;  %v7178_v26 = vor.u32 %v8041_v62, %v7175_v27 }
 0x32e   : > { %vm3869_vm14 = vcmp.ge.f32.partialorder %v3704_v45, 0.0  ;;  %v3885_v24 = vmul.f32 0.2, %v3704_v45  ;;  %4881 = vmatpush.bf16.msra.mxu1 %v7382_v46  ;;  %4938 = vmatpush.bf16.msrb.mxu0 %v7258_v56  ;;  %v10107_v46 = vpop.f32.mrf.mxu2  ;;  %v8108_v56 = vld [vmem:[%s8450_s27 + $0xe64] sm:$0xf] }
 0x32f   : > { %4826 = vmatpush.bf16.msrb.mxu2 %v7474_v29 }
 0x330   : > { %v3901_v63 = vsel %vm3869_vm14, %v3704_v45, %v3885_v24  ;;  %v3756_v45 = vadd.f32 %v10038_v37, %v3737_v58  ;;  %v8142_v24 = vld [vmem:[%s8450_s27 + $0xf6c] sm:$0xf0]  ;;  %v10133_v8 = vpop.f32.mrf.mxu1  ;;  %v7533_v58 = vld [vmem:[%s8450_s27 + $0xf20] sm:$0xf] }
 0x331   : > { %v3917_v55 = vmul.f32 1.4142135, %v3901_v63  ;;  %v7566_v33 = vor.u32 %v8142_v24, %v7565_v52  ;;  %v8104_v63 = vld [vmem:[%s8450_s27 + $0xe44] sm:$0xf]  ;;  %v7269_v24 = vld [vmem:[%s8450_s27 + $0xd08] sm:$0xf] }
 0x332   : > { %4882 = vmatpush.bf16.msra.mxu1 %v7366_v5  ;;  %4939 = vmatpush.bf16.msrb.mxu0 %v7242_v38  ;;  %v7426_v1 = vor.u32 %v8104_v63, %v7423_v9  ;;  %v8096_v52 = vld [vmem:[%s8450_s27 + $0xe04] sm:$0xf]  ;;  %v8093_v63 = vld [vmem:[%s8450_s27 + $0xdec] sm:$0xf]  ;;  %v7383_v9 = vld [vmem:[%s8450_s27 + $0xdf8] sm:$0xf0] }
 0x333   : > { %v3705_v4 = vpop.f32.mrf.mxu3  ;;  %4827 = vmatpush.bf16.msrb.mxu2 %v7458_v30  ;;  %4771 = vmatpush.bf16.msra.mxu3 %v7566_v33  ;;  %v7159_v30 = vld [vmem:[%s8450_s27 + $0xc38] sm:$0xf0] }
 0x334   : > { %v3706_v14 = vadd.f32 %v3705_v4, %v3687_v25  ;;  %v7439_v25 = vld [vmem:[%s8450_s27 + $0xe70] sm:$0xf0]  ;;  %v3739_v4 = vadd.f32 %v10067_v7, %v3720_v3  ;;  %v7301_v7 = vld [vmem:[%s8450_s27 + $0xd48] sm:$0xf]  ;;  %v7162_v39 = vor.u32 %v8037_v13, %v7159_v30 }
 0x335   : > { %v7442_v23 = vor.u32 %v8108_v56, %v7439_v25  ;;  %v8067_v25 = vld [vmem:[%s8450_s27 + $0xd14] sm:$0xf0] }
 0x336   : > { %vm3873_vm15 = vcmp.ge.f32.partialorder %v3706_v14, 0.0  ;;  %v3889_v2 = vmul.f32 0.2, %v3706_v14  ;;  %4883 = vmatpush.bf16.msra.mxu1 %v7350_v54  ;;  %4940 = vmatpush.bf16.msrb.mxu0 %v7226_v36  ;;  %v3758_v5 = vadd.f32 %v10075_v50, %v3739_v4  ;;  %v3723_v54 = vadd.f32 %v10092_v28, %v10063_v12  ;;  %v7407_v36 = vld [vmem:[%s8450_s27 + $0xe30] sm:$0xf0]  ;;  %v3762_v44 = vpop.f32.mrf.mxu2  ;;  %v3793_v4 = vpop.f32.mrf.mxu0 }
 0x337   : > { %4828 = vmatpush.bf16.msrb.mxu2 %v7442_v23  ;;  %v8033_v23 = vld [vmem:[%s8450_s27 + $0xc0c] sm:$0xf] }
 0x338   : > { %v3905_v35 = vsel %vm3873_vm15, %v3706_v14, %v3889_v2  ;;  %v8138_v14 = vld [vmem:[%s8450_s27 + $0xf4c] sm:$0xf0]  ;;  %v8075_v2 = vld [vmem:[%s8450_s27 + $0xd54] sm:$0xf0]  ;;  %v3742_v60 = vadd.f32 %v10100_v34, %v3723_v54  ;;  %v7391_v34 = vld [vmem:[%s8450_s27 + $0xe10] sm:$0xf0]  ;;  %v7146_v19 = vor.u32 %v8033_v23, %v7143_v10 }
 0x339   : > { %v3921_v59 = vmul.f32 1.4142135, %v3905_v35  ;;  %v7550_v38 = vor.u32 %v8138_v14, %v7549_v61  ;;  %v7302_v50 = vor.u32 %v8075_v2, %v7301_v7  ;;  %v8100_v35 = vld [vmem:[%s8450_s27 + $0xe24] sm:$0xf]  ;;  %v7394_v33 = vor.u32 %v8096_v52, %v7391_v34  ;;  %v8127_v14 = vld [vmem:[%s8450_s27 + $0xef4] sm:$0xf0] }
 0x33a   : > { %4884 = vmatpush.bf16.msra.mxu1 %v7334_v53  ;;  %4941 = vmatpush.bf16.msrb.mxu0 %v7210_v20  ;;  %v7410_v48 = vor.u32 %v8100_v35, %v7407_v36  ;;  %v3761_v53 = vadd.f32 %v10107_v46, %v3742_v60  ;;  %v7270_v46 = vor.u32 %v8067_v25, %v7269_v24  ;;  %v7615_v2 = vld [vmem:[%s8450_s27 + $0xfd0] sm:$0xf0]  ;;  %v7461_v34 = vld [vmem:[%s8450_s27 + $0xe88] sm:$0xf]  ;;  %v8115_v24 = vld [vmem:[%s8450_s27 + $0xe94] sm:$0xf0] }
 0x33b   : > { %v3774_v6 = vpop.f32.mrf.mxu3  ;;  %v10102_v43 = vpack.c.bf16 %v3921_v59, %v3917_v55  ;;  %4772 = vmatpush.bf16.msra.mxu3 %v7550_v38  ;;  %v8134_v55 = vld [vmem:[%s8450_s27 + $0xf2c] sm:$0xf0]  ;;  %4829 = vmatpush.bf16.msrb.mxu2 %v7426_v1  ;;  %v8152_v1 = vld [vmem:[%s8450_s27 + $0xfc4] sm:$0xf]  ;;  %v7599_v36 = vld [vmem:[%s8450_s27 + $0xfb0] sm:$0xf0] }
 0x33c   : > { %v3775_v37 = vadd.f32 %v3774_v6, %v3756_v45  ;;  %v7534_v59 = vor.u32 %v8134_v55, %v7533_v58  ;;  %v7285_v45 = vld [vmem:[%s8450_s27 + $0xd28] sm:$0xf]  ;;  %v7618_v27 = vor.u32 %v8152_v1, %v7615_v2  ;;  %v7367_v55 = vld [vmem:[%s8450_s27 + $0xdd8] sm:$0xf0]  ;;  %v8107_v1 = vld [vmem:[%s8450_s27 + $0xe54] sm:$0xf0] }
 0x33d   : > { %4742 = vmatmul.bf16.gmra.mxu1 %v10102_v43  ;;  %4799 = vmatmul.bf16.gmra.mxu0 %v10000_v40  ;;  %v7286_v6 = vor.u32 %v8071_v57, %v7285_v45  ;;  %v8119_v45 = vld [vmem:[%s8450_s27 + $0xeb4] sm:$0xf0] }
 0x33e   : > { %vm3862_vm0 = vcmp.ge.f32.partialorder %v3775_v37, 0.0  ;;  %v3878_v15 = vmul.f32 0.2, %v3775_v37  ;;  %4885 = vmatpush.bf16.msra.mxu1 %v7318_v32  ;;  %4942 = vmatpush.bf16.msrb.mxu0 %v7194_v21  ;;  %v8156_v32 = vld [vmem:[%s8450_s27 + $0xfe4] sm:$0xf]  ;;  %v3725_v21 = vadd.f32 %v10128_v42, %v10063_v12  ;;  %v7386_v12 = vor.u32 %v8093_v63, %v7383_v9  ;;  %v3831_v42 = vpop.f32.mrf.mxu2  ;;  %v3795_v13 = vpop.f32.mrf.mxu0 }
 0x33f   : > { %4773 = vmatpush.bf16.msra.mxu3 %v7534_v59  ;;  %4830 = vmatpush.bf16.msrb.mxu2 %v7410_v48  ;;  %v7634_v61 = vor.u32 %v8156_v32, %v7631_v49  ;;  %v8148_v59 = vld [vmem:[%s8450_s27 + $0xfa4] sm:$0xf]  ;;  %v7567_v49 = vld [vmem:[%s8450_s27 + $0xf70] sm:$0xf0]  ;;  %v7319_v63 = vld [vmem:[%s8450_s27 + $0xd78] sm:$0xf0] }
 0x340   : > { %v3894_v17 = vsel %vm3862_vm0, %v3775_v37, %v3878_v15  ;;  %v8130_v37 = vld [vmem:[%s8450_s27 + $0xf0c] sm:$0xf0]  ;;  %v7509_v15 = vld [vmem:[%s8450_s27 + $0xee8] sm:$0xf]  ;;  %v3744_v7 = vadd.f32 %v10133_v8, %v3725_v21  ;;  %v10176_v8 = vperm.slane %v9894_v47, 3  ;;  %v7602_v47 = vor.u32 %v8148_v59, %v7599_v36 }
 0x341   : > { %v3910_v28 = vmul.f32 1.4142135, %v3894_v17  ;;  %v7518_v20 = vor.u32 %v8130_v37, %v7517_v51  ;;  %v7510_v38 = vor.u32 %v8127_v14, %v7509_v15  ;;  %v8140_v32 = vld [vmem:[%s8450_s27 + $0xf64] sm:$0xf]  ;;  %v7445_v15 = vld [vmem:[%s8450_s27 + $0xe68] sm:$0xf] }
 0x342   : > { %4886 = vmatpush.bf16.msra.mxu1 %v7302_v50  ;;  %4943 = vmatpush.bf16.msrb.mxu0 %v7178_v26  ;;  %v3763_v62 = vadd.f32 %v3762_v44, %v3744_v7  ;;  %v8123_v50 = vld [vmem:[%s8450_s27 + $0xed4] sm:$0xf0]  ;;  %v8089_v26 = vld [vmem:[%s8450_s27 + $0xdcc] sm:$0xf]  ;;  %v7477_v44 = vld [vmem:[%s8450_s27 + $0xea8] sm:$0xf]  ;;  %v3794_v57 = vadd.f32 %v3793_v4, %v10176_v8  ;;  %v3796_v21 = vadd.f32 %v3795_v13, %v10176_v8 }
 0x343   : > { %v3776_v18 = vpop.f32.mrf.mxu3  ;;  %4774 = vmatpush.bf16.msra.mxu3 %v7518_v20  ;;  %4831 = vmatpush.bf16.msrb.mxu2 %v7394_v33  ;;  %v7370_v54 = vor.u32 %v8089_v26, %v7367_v55  ;;  %v7478_v60 = vor.u32 %v8119_v45, %v7477_v44  ;;  %v7583_v20 = vld [vmem:[%s8450_s27 + $0xf90] sm:$0xf0]  ;;  %v8111_v14 = vld [vmem:[%s8450_s27 + $0xe74] sm:$0xf0]  ;;  %v8136_v9 = vld [vmem:[%s8450_s27 + $0xf44] sm:$0xf] }
 0x344   : > { %v3777_v29 = vadd.f32 %v3776_v18, %v3758_v5  ;;  %v3812_v5 = vpop.f32.mrf.mxu1  ;;  %v7535_v55 = vld [vmem:[%s8450_s27 + $0xf30] sm:$0xf0]  ;;  %v7413_v59 = vld [vmem:[%s8450_s27 + $0xe28] sm:$0xf]  ;;  %v8103_v36 = vld [vmem:[%s8450_s27 + $0xe34] sm:$0xf0] }
 0x345   : > { %v7287_v45 = vld [vmem:[%s8450_s27 + $0xd38] sm:$0xf0] }
 0x346   : > { %vm3866_vm1 = vcmp.ge.f32.partialorder %v3777_v29, 0.0  ;;  %v3882_v0 = vmul.f32 0.2, %v3777_v29  ;;  %4887 = vmatpush.bf16.msra.mxu1 %v7286_v6  ;;  %4944 = vmatpush.bf16.msrb.mxu0 %v7162_v39  ;;  %v3813_v39 = vadd.f32 %v3812_v5, %v3794_v57  ;;  %v3833_v25 = vpop.f32.mrf.mxu2  ;;  %v7446_v5 = vor.u32 %v8111_v14, %v7445_v15  ;;  %v3798_v2 = vpop.f32.mrf.mxu0  ;;  %v8159_v15 = vld [vmem:[%s8450_s27 + $0xff4] sm:$0xf0] }
 0x347   : > { %4843 = vmatpush.bf16.msrb.mxu3 %v7634_v61  ;;  %v7570_v61 = vor.u32 %v8140_v32, %v7567_v49  ;;  %v7637_v49 = vld [vmem:[%s8450_s27 + $0xfe8] sm:$0xf] }
 0x348   : > { %v3898_v22 = vsel %vm3866_vm1, %v3777_v29, %v3882_v0  ;;  %v7493_v29 = vld [vmem:[%s8450_s27 + $0xec8] sm:$0xf]  ;;  %v3832_v33 = vadd.f32 %v3831_v42, %v3813_v39  ;;  %v7551_v42 = vld [vmem:[%s8450_s27 + $0xf50] sm:$0xf0]  ;;  %v7638_v14 = vor.u32 %v8159_v15, %v7637_v49  ;;  %v7399_v49 = vld [vmem:[%s8450_s27 + $0xe18] sm:$0xf0] }
 0x349   : > { %v3914_v41 = vmul.f32 1.4142135, %v3898_v22  ;;  %v7494_v58 = vor.u32 %v8123_v50, %v7493_v29  ;;  %v7351_v22 = vld [vmem:[%s8450_s27 + $0xdb8] sm:$0xf0]  ;;  %v8073_v29 = vld [vmem:[%s8450_s27 + $0xd4c] sm:$0xf] }
 0x34a   : > { %4888 = vmatpush.bf16.msra.mxu1 %v7270_v46  ;;  %4945 = vmatpush.bf16.msrb.mxu0 %v7146_v19  ;;  %v7335_v46 = vld [vmem:[%s8450_s27 + $0xd98] sm:$0xf0] }
 0x34b   : > { %v10153_v56 = vpack.c.bf16 %v3914_v41, %v3910_v28  ;;  %v3779_v3 = vpop.f32.mrf.mxu3  ;;  %4844 = vmatpush.bf16.msrb.mxu3 %v7618_v27  ;;  %v8085_v28 = vld [vmem:[%s8450_s27 + $0xdac] sm:$0xf]  ;;  %v7554_v27 = vor.u32 %v8136_v9, %v7551_v42  ;;  %v7303_v50 = vld [vmem:[%s8450_s27 + $0xd58] sm:$0xf0]  ;;  %v7621_v9 = vld [vmem:[%s8450_s27 + $0xfc8] sm:$0xf] }
 0x34c   : > { %v3780_v11 = vadd.f32 %v3779_v3, %v3761_v53  ;;  %v7354_v41 = vor.u32 %v8085_v28, %v7351_v22  ;;  %v3814_v51 = vpop.f32.mrf.mxu1  ;;  %v8144_v53 = vld [vmem:[%s8450_s27 + $0xf84] sm:$0xf]  ;;  %v8081_v3 = vld [vmem:[%s8450_s27 + $0xd8c] sm:$0xf]  ;;  %v7519_v28 = vld [vmem:[%s8450_s27 + $0xf10] sm:$0xf0] }
 0x34d   : > { %4756 = vmatmul.bf16.vlgmr.msra.gmra.mxu2 %v10153_v56  ;;  %4813 = vmatmul.bf16.vlgmr.msrb.gmra.mxu1 %v10046_v16  ;;  %v7586_v52 = vor.u32 %v8144_v53, %v7583_v20  ;;  %v7338_v19 = vor.u32 %v8081_v3, %v7335_v46  ;;  %v3815_v7 = vadd.f32 %v3814_v51, %v3796_v21  ;;  %v7271_v3 = vld [vmem:[%s8450_s27 + $0xd18] sm:$0xf0]  ;;  %v8125_v21 = vld [vmem:[%s8450_s27 + $0xeec] sm:$0xf] }
 0x34e   : > { %4870 = vmatmul.bf16.vlgmr.msra.gmra.mxu0 %v9952_v31  ;;  %vm3870_vm2 = vcmp.ge.f32.partialorder %v3780_v11, 0.0  ;;  %v3886_v18 = vmul.f32 0.2, %v3780_v11  ;;  %4900 = vmatpush.bf16.msra.mxu2 %v7510_v38  ;;  %v8077_v38 = vld [vmem:[%s8450_s27 + $0xd6c] sm:$0xf]  ;;  %v3836_v57 = vpop.f32.mrf.mxu2 }
 0x34f   : > { %4957 = vmatpush.bf16.msrb.mxu1 %v7386_v12  ;;  %4845 = vmatpush.bf16.msrb.mxu3 %v7602_v47  ;;  %v7322_v12 = vor.u32 %v8077_v38, %v7319_v63  ;;  %v3834_v26 = vadd.f32 %v3833_v25, %v3815_v7  ;;  %v8069_v47 = vld [vmem:[%s8450_s27 + $0xd2c] sm:$0xf]  ;;  %v8155_v7 = vld [vmem:[%s8450_s27 + $0xfd4] sm:$0xf0] }
 0x350   : > { %v3902_v0 = vsel %vm3870_vm2, %v3780_v11, %v3886_v18  ;;  %v7462_v11 = vor.u32 %v8115_v24, %v7461_v34  ;;  %v7429_v18 = vld [vmem:[%s8450_s27 + $0xe48] sm:$0xf]  ;;  %v8099_v34 = vld [vmem:[%s8450_s27 + $0xe14] sm:$0xf0]  ;;  %v8065_v24 = vld [vmem:[%s8450_s27 + $0xd0c] sm:$0xf] }
 0x351   : > { %v3918_v6 = vmul.f32 1.4142135, %v3902_v0  ;;  %v7306_v0 = vor.u32 %v8073_v29, %v7303_v50  ;;  %v8151_v29 = vld [vmem:[%s8450_s27 + $0xfb4] sm:$0xf0]  ;;  %v8117_v50 = vld [vmem:[%s8450_s27 + $0xeac] sm:$0xf] }
 0x352   : > { %4901 = vmatpush.bf16.msra.mxu2 %v7494_v58  ;;  %v8132_v58 = vld [vmem:[%s8450_s27 + $0xf24] sm:$0xf] }
 0x353   : > { %v3781_v17 = vpop.f32.mrf.mxu3  ;;  %4958 = vmatpush.bf16.msrb.mxu1 %v7370_v54  ;;  %4846 = vmatpush.bf16.msrb.mxu3 %v7586_v52  ;;  %v7397_v52 = vld [vmem:[%s8450_s27 + $0xe08] sm:$0xf] }
 0x354   : > { %v3782_v35 = vadd.f32 %v3781_v17, %v3763_v62  ;;  %v7430_v17 = vor.u32 %v8107_v1, %v7429_v18  ;;  %v7398_v46 = vor.u32 %v8099_v34, %v7397_v52  ;;  %v8121_v18 = vld [vmem:[%s8450_s27 + $0xecc] sm:$0xf]  ;;  %v7431_v52 = vld [vmem:[%s8450_s27 + $0xe58] sm:$0xf0] }
 0x356   : > { %vm3874_vm3 = vcmp.ge.f32.partialorder %v3782_v35, 0.0  ;;  %v3890_v48 = vmul.f32 0.2, %v3782_v35  ;;  %4902 = vmatpush.bf16.msra.mxu2 %v7478_v60  ;;  %v8128_v60 = vld [vmem:[%s8450_s27 + $0xf04] sm:$0xf]  ;;  %v3838_v38 = vpop.f32.mrf.mxu2 }
 0x357   : > { %4959 = vmatpush.bf16.msrb.mxu1 %v7354_v41  ;;  %4847 = vmatpush.bf16.msrb.mxu3 %v7570_v61  ;;  %v7290_v41 = vor.u32 %v8069_v47, %v7287_v45  ;;  %v8113_v45 = vld [vmem:[%s8450_s27 + $0xe8c] sm:$0xf] }
 0x358   : > { %v3906_v30 = vsel %vm3874_vm3, %v3782_v35, %v3890_v48  ;;  %v3817_v35 = vpop.f32.mrf.mxu1  ;;  %v7538_v48 = vor.u32 %v8132_v58, %v7535_v55  ;;  %v7479_v58 = vld [vmem:[%s8450_s27 + $0xeb8] sm:$0xf0] }
 0x359   : > { %v3922_v37 = vmul.f32 1.4142135, %v3906_v30  ;;  %v3799_v30 = vadd.f32 %v3798_v2, %v10176_v8 }
 0x35a   : > { %4903 = vmatpush.bf16.msra.mxu2 %v7462_v11 }
 0x35b   : > { %v10192_v23 = vpack.c.bf16 %v3922_v37, %v3918_v6  ;;  %v3850_v10 = vpop.f32.mrf.mxu3  ;;  %4960 = vmatpush.bf16.msrb.mxu1 %v7338_v19  ;;  %4848 = vmatpush.bf16.msrb.mxu3 %v7554_v27  ;;  %v7414_v6 = vor.u32 %v8103_v36, %v7413_v59  ;;  %v7522_v37 = vor.u32 %v8128_v60, %v7519_v28  ;;  %v7605_v27 = vld [vmem:[%s8450_s27 + $0xfa8] sm:$0xf] }
 0x35c   : > { %v3851_v4 = vadd.f32 %v3850_v10, %v3832_v33  ;;  %v3818_v53 = vadd.f32 %v3817_v35, %v3799_v30  ;;  %v3800_v33 = vpop.f32.mrf.mxu0  ;;  %v7274_v19 = vor.u32 %v8065_v24, %v7271_v3  ;;  %v7482_v35 = vor.u32 %v8117_v50, %v7479_v58  ;;  %v7573_v28 = vld [vmem:[%s8450_s27 + $0xf68] sm:$0xf]  ;;  %v7543_v50 = vld [vmem:[%s8450_s27 + $0xf38] sm:$0xf0] }
 0x35d   : > { %4761 = vmatmul.bf16.gmra.mxu2 %v10192_v23  ;;  %4818 = vmatmul.bf16.gmra.mxu1 %v10102_v43  ;;  %v3801_v61 = vadd.f32 %v3800_v33, %v10176_v8  ;;  %v7622_v8 = vor.u32 %v8155_v7, %v7621_v9  ;;  %v7541_v24 = vld [vmem:[%s8450_s27 + $0xf28] sm:$0xf]  ;;  %v8101_v33 = vld [vmem:[%s8450_s27 + $0xe2c] sm:$0xf]  ;;  %v7607_v7 = vld [vmem:[%s8450_s27 + $0xfb8] sm:$0xf0] }
 0x35e   : > { %4875 = vmatmul.bf16.gmra.mxu0 %v10000_v40  ;;  %v3879_v62 = vmul.f32 0.2, %v3851_v4  ;;  %vm3863_vm4 = vcmp.ge.f32.partialorder %v3851_v4, 0.0  ;;  %4904 = vmatpush.bf16.msra.mxu2 %v7446_v5  ;;  %v3837_v25 = vadd.f32 %v3836_v57, %v3818_v53  ;;  %v7511_v5 = vld [vmem:[%s8450_s27 + $0xef8] sm:$0xf0] }
 0x35f   : > { %4961 = vmatpush.bf16.msrb.mxu1 %v7322_v12  ;;  %4849 = vmatpush.bf16.msrb.mxu3 %v7538_v48  ;;  %v7514_v63 = vor.u32 %v8125_v21, %v7511_v5  ;;  %v7463_v57 = vld [vmem:[%s8450_s27 + $0xe98] sm:$0xf0]  ;;  %v8157_v21 = vld [vmem:[%s8450_s27 + $0xfec] sm:$0xf] }
 0x360   : > { %v3895_v13 = vsel %vm3863_vm4, %v3851_v4, %v3879_v62  ;;  %v3819_v4 = vpop.f32.mrf.mxu1  ;;  %v7466_v60 = vor.u32 %v8113_v45, %v7463_v57  ;;  %v8149_v9 = vld [vmem:[%s8450_s27 + $0xfac] sm:$0xf]  ;;  %v7527_v58 = vld [vmem:[%s8450_s27 + $0xf18] sm:$0xf0] }
 0x361   : > { %v3911_v39 = vmul.f32 1.4142135, %v3895_v13  ;;  %v3820_v12 = vadd.f32 %v3819_v4, %v3801_v61  ;;  %v7639_v61 = vld [vmem:[%s8450_s27 + $0xff8] sm:$0xf0] }
 0x362   : > { %4905 = vmatpush.bf16.msra.mxu2 %v7430_v17  ;;  %v7606_v17 = vor.u32 %v8151_v29, %v7605_v27  ;;  %v7642_v5 = vor.u32 %v8157_v21, %v7639_v61  ;;  %v8133_v29 = vld [vmem:[%s8450_s27 + $0xf2c] sm:$0xf] }
 0x363   : > { %v3852_v54 = vpop.f32.mrf.mxu3  ;;  %4962 = vmatpush.bf16.msrb.mxu1 %v7306_v0  ;;  %4850 = vmatpush.bf16.msrb.mxu3 %v7522_v37  ;;  %v3839_v1 = vadd.f32 %v3838_v38, %v3820_v12  ;;  %v8147_v0 = vld [vmem:[%s8450_s27 + $0xf94] sm:$0xf0]  ;;  %v7623_v38 = vld [vmem:[%s8450_s27 + $0xfd8] sm:$0xf0]  ;;  %v7610_v12 = vor.u32 %v8149_v9, %v7607_v7 }
 0x364   : > { %v3853_v44 = vadd.f32 %v3852_v54, %v3834_v26  ;;  %v7589_v54 = vld [vmem:[%s8450_s27 + $0xf88] sm:$0xf]  ;;  %v10299_v45 = vld [vmem:[%s8456_s5 + $0xc] sm:$0xf] }
 0x365   : > { %v7590_v48 = vor.u32 %v8147_v0, %v7589_v54  ;;  %v4063_v7 = vperm.slane %v10299_v45, 1 }
 0x366   : > { %vm3867_vm5 = vcmp.ge.f32.partialorder %v3853_v44, 0.0  ;;  %v3883_v22 = vmul.f32 0.2, %v3853_v44  ;;  %4906 = vmatpush.bf16.msra.mxu2 %v7414_v6  ;;  %v8109_v6 = vld [vmem:[%s8450_s27 + $0xe6c] sm:$0xf] }
 0x367   : > { %4963 = vmatpush.bf16.msrb.mxu1 %v7290_v41  ;;  %v7447_v41 = vld [vmem:[%s8450_s27 + $0xe78] sm:$0xf0] }
 0x368   : > { %v3899_v51 = vsel %vm3867_vm5, %v3853_v44, %v3883_v22  ;;  %v8143_v22 = vld [vmem:[%s8450_s27 + $0xf74] sm:$0xf0]  ;;  %v7450_v37 = vor.u32 %v8109_v6, %v7447_v41 }
 0x369   : > { %v3915_v20 = vmul.f32 1.4142135, %v3899_v51  ;;  %v7574_v30 = vor.u32 %v8143_v22, %v7573_v28  ;;  %v8139_v51 = vld [vmem:[%s8450_s27 + $0xf54] sm:$0xf0] }
 0x36a   : > { %4907 = vmatpush.bf16.msra.mxu2 %v7398_v46  ;;  %v8131_v46 = vld [vmem:[%s8450_s27 + $0xf14] sm:$0xf0] }
 0x36b   : > { %v10225_v10 = vpack.c.bf16 %v3915_v20, %v3911_v39  ;;  %v3855_v11 = vpop.f32.mrf.mxu3  ;;  %4964 = vmatpush.bf16.msrb.mxu1 %v7274_v19  ;;  %v7557_v39 = vld [vmem:[%s8450_s27 + $0xf48] sm:$0xf]  ;;  %v8105_v20 = vld [vmem:[%s8450_s27 + $0xe4c] sm:$0xf] }
 0x36c   : > { %v3856_v32 = vadd.f32 %v3855_v11, %v3837_v25  ;;  %v7558_v53 = vor.u32 %v8139_v51, %v7557_v39  ;;  %v7434_v34 = vor.u32 %v8105_v20, %v7431_v52  ;;  %v7415_v25 = vld [vmem:[%s8450_s27 + $0xe38] sm:$0xf0]  ;;  %v7525_v11 = vld [vmem:[%s8450_s27 + $0xf08] sm:$0xf] }
 0x36d   : > { %4775 = vmatmul.bf16.vlgmr.msra.gmra.mxu3 %v10225_v10  ;;  %4832 = vmatmul.bf16.vlgmr.msrb.gmra.mxu2 %v10153_v56  ;;  %v7418_v19 = vor.u32 %v8101_v33, %v7415_v25  ;;  %v7526_v4 = vor.u32 %v8131_v46, %v7525_v11 }
 0x36e   : > { %4889 = vmatmul.bf16.vlgmr.msra.gmra.mxu1 %v10046_v16  ;;  %4946 = vmatmul.bf16.vlgmr.msrb.gmra.mxu0 %v9952_v31  ;;  %v3887_v42 = vmul.f32 0.2, %v3856_v32  ;;  %v7495_v31 = vld [vmem:[%s8450_s27 + $0xed8] sm:$0xf0]  ;;  %vm3871_vm6 = vcmp.ge.f32.partialorder %v3856_v32, 0.0 }
 0x36f   : > { %4919 = vmatpush.bf16.msra.mxu3 %v7638_v14  ;;  %4976 = vmatpush.bf16.msrb.mxu2 %v7514_v63  ;;  %v7498_v2 = vor.u32 %v8121_v18, %v7495_v31  ;;  %v8153_v14 = vld [vmem:[%s8450_s27 + $0xfcc] sm:$0xf]  ;;  %v7575_v31 = vld [vmem:[%s8450_s27 + $0xf78] sm:$0xf0] }
 0x370   : > { %v3903_v55 = vsel %vm3871_vm6, %v3856_v32, %v3887_v42  ;;  %v8097_v32 = vld [vmem:[%s8450_s27 + $0xe0c] sm:$0xf]  ;;  %v7626_v63 = vor.u32 %v8153_v14, %v7623_v38  ;;  %v7591_v42 = vld [vmem:[%s8450_s27 + $0xf98] sm:$0xf0] }
 0x371   : > { %v3919_v36 = vmul.f32 1.4142135, %v3903_v55  ;;  %v7402_v15 = vor.u32 %v8097_v32, %v7399_v49 }
 0x373   : > { %v3857_v62 = vpop.f32.mrf.mxu3  ;;  %4920 = vmatpush.bf16.msra.mxu3 %v7622_v8  ;;  %4977 = vmatpush.bf16.msrb.mxu2 %v7498_v2  ;;  %v8145_v8 = vld [vmem:[%s8450_s27 + $0xf8c] sm:$0xf] }
 0x374   : > { %v3858_v26 = vadd.f32 %v3857_v62, %v3839_v1  ;;  %v7594_v18 = vor.u32 %v8145_v8, %v7591_v42  ;;  %v8137_v1 = vld [vmem:[%s8450_s27 + $0xf4c] sm:$0xf]  ;;  %v7559_v62 = vld [vmem:[%s8450_s27 + $0xf58] sm:$0xf0] }
 0x375   : > { %v7562_v27 = vor.u32 %v8137_v1, %v7559_v62 }
 0x376   : > { %vm3875_vm7 = vcmp.ge.f32.partialorder %v3858_v26, 0.0  ;;  %v3891_v59 = vmul.f32 0.2, %v3858_v26 }
 0x377   : > { %4921 = vmatpush.bf16.msra.mxu3 %v7606_v17  ;;  %4978 = vmatpush.bf16.msrb.mxu2 %v7482_v35  ;;  %v8129_v17 = vld [vmem:[%s8450_s27 + $0xf0c] sm:$0xf] }
 0x378   : > { %v3907_v44 = vsel %vm3875_vm7, %v3858_v26, %v3891_v59  ;;  %v7546_v26 = vor.u32 %v8133_v29, %v7543_v50  ;;  %v7530_v55 = vor.u32 %v8129_v17, %v7527_v58 }
 0x379   : > { %v3923_v47 = vmul.f32 1.4142135, %v3907_v44 }
 0x37b   : > { %v10248_v13 = vpack.c.bf16 %v3923_v47, %v3919_v36  ;;  %4922 = vmatpush.bf16.msra.mxu3 %v7590_v48  ;;  %4979 = vmatpush.bf16.msrb.mxu2 %v7466_v60 }
 0x37d   : > { %4780 = vmatmul.bf16.gmra.mxu3 %v10248_v13  ;;  %4837 = vmatmul.bf16.gmra.mxu2 %v10192_v23 }
 0x37e   : > { %4894 = vmatmul.bf16.gmra.mxu1 %v10102_v43  ;;  %4951 = vmatmul.bf16.gmra.mxu0 %v10000_v40  ;;  %v8135_v40 = vld [vmem:[%s8450_s27 + $0xf34] sm:$0xf0] }
 0x37f   : > { %4923 = vmatpush.bf16.msra.mxu3 %v7574_v30  ;;  %4980 = vmatpush.bf16.msrb.mxu2 %v7450_v37  ;;  %v7542_v3 = vor.u32 %v8135_v40, %v7541_v24 }
 0x383   : > { %4924 = vmatpush.bf16.msra.mxu3 %v7558_v53  ;;  %4981 = vmatpush.bf16.msrb.mxu2 %v7434_v34 }
 0x387   : > { %4925 = vmatpush.bf16.msra.mxu3 %v7542_v3  ;;  %4982 = vmatpush.bf16.msrb.mxu2 %v7418_v19 }
 0x38b   : > { %4926 = vmatpush.bf16.msra.mxu3 %v7526_v4  ;;  %4983 = vmatpush.bf16.msrb.mxu2 %v7402_v15 }
 0x38d   : > { %4851 = vmatmul.bf16.vlgmr.msrb.gmra.mxu3 %v10225_v10  ;;  %4908 = vmatmul.bf16.vlgmr.msra.gmra.mxu2 %v10153_v56 }
 0x38e   : > { %4965 = vmatmul.bf16.vlgmr.msrb.gmra.mxu1 %v10046_v16  ;;  %v8141_v16 = vld [vmem:[%s8450_s27 + $0xf6c] sm:$0xf] }
 0x38f   : > { %4995 = vmatpush.bf16.msrb.mxu3 %v7642_v5  ;;  %v7578_v2 = vor.u32 %v8141_v16, %v7575_v31 }
 0x393   : > { %4996 = vmatpush.bf16.msrb.mxu3 %v7626_v63 }
 0x397   : > { %4997 = vmatpush.bf16.msrb.mxu3 %v7610_v12 }
 0x39b   : > { %4998 = vmatpush.bf16.msrb.mxu3 %v7594_v18 }
 0x39d   : > { %4856 = vmatmul.bf16.gmra.mxu3 %v10248_v13  ;;  %4913 = vmatmul.bf16.gmra.mxu2 %v10192_v23 }
 0x39e   : > { %4970 = vmatmul.bf16.gmra.mxu1 %v10102_v43  ;;  %v4719_v43 = vpop.f32.mrf.mxu0 }
 0x39f   : > { %4999 = vmatpush.bf16.msrb.mxu3 %v7578_v2 }
 0x3a3   : > { %5000 = vmatpush.bf16.msrb.mxu3 %v7562_v27 }
 0x3a6   : > { %v4721_v0 = vpop.f32.mrf.mxu0 }
 0x3a7   : > { %5001 = vmatpush.bf16.msrb.mxu3 %v7546_v26 }
 0x3aa   : > { %v4738_v35 = vpop.f32.mrf.mxu1 }
 0x3ab   : > { %5002 = vmatpush.bf16.msrb.mxu3 %v7530_v55 }
 0x3ad   : > { %4927 = vmatmul.bf16.vlgmr.msra.gmra.mxu3 %v10225_v10  ;;  %4984 = vmatmul.bf16.vlgmr.msrb.gmra.mxu2 %v10153_v56  ;;  %v4062_v56 = vperm.slane %v10299_v45, 0 }
 0x3ae   : > { %v4724_v44 = vpop.f32.mrf.mxu0 }
 0x3af   : > { %v4720_v60 = vadd.f32 %v4719_v43, %v4062_v56  ;;  %v4722_v39 = vadd.f32 %v4721_v0, %v4062_v56  ;;  %v4725_v3 = vadd.f32 %v4724_v44, %v4062_v56 }
 0x3b1   : > { %v4739_v22 = vadd.f32 %v4738_v35, %v4720_v60 }
 0x3b2   : > { %v4740_v59 = vpop.f32.mrf.mxu1 }
 0x3b3   : > { %v4741_v37 = vadd.f32 %v4740_v59, %v4722_v39 }
 0x3b6   : > { %v4726_v57 = vpop.f32.mrf.mxu0 }
 0x3b7   : > { %v4727_v61 = vadd.f32 %v4726_v57, %v4062_v56 }
 0x3ba   : > { %v4743_v48 = vpop.f32.mrf.mxu1 }
 0x3bb   : > { %v4744_v11 = vadd.f32 %v4743_v48, %v4725_v3 }
 0x3bd   : > { %4932 = vmatmul.bf16.gmra.mxu3 %v10248_v13  ;;  %4989 = vmatmul.bf16.gmra.mxu2 %v10192_v23 }
 0x3be   : > { %v4795_v41 = vpop.f32.mrf.mxu0 }
 0x3bf   : > { %v4796_v31 = vadd.f32 %v4795_v41, %v4063_v7 }
 0x3c2   : > { %v4745_v23 = vpop.f32.mrf.mxu1 }
 0x3c3   : > { %v4746_v5 = vadd.f32 %v4745_v23, %v4727_v61 }
 0x3c6   : > { %v4797_v25 = vpop.f32.mrf.mxu0 }
 0x3c7   : > { %v4798_v55 = vadd.f32 %v4797_v25, %v4063_v7 }
 0x3ca   : > { %v4814_v51 = vpop.f32.mrf.mxu1 }
 0x3cb   : > { %v4815_v2 = vadd.f32 %v4814_v51, %v4796_v31 }
 0x3cd   : > { %5003 = vmatmul.bf16.vlgmr.msrb.gmra.mxu3 %v10225_v10 }
 0x3ce   : > { %v4800_v63 = vpop.f32.mrf.mxu0 }
 0x3cf   : > { %v4801_v56 = vadd.f32 %v4800_v63, %v4063_v7 }
 0x3d0   : > { %v4757_v54 = vpop.f32.mrf.mxu2 }
 0x3d1   : > { %v4758_v10 = vadd.f32 %v4757_v54, %v4739_v22 }
 0x3d2   : > { %v4816_v19 = vpop.f32.mrf.mxu1 }
 0x3d3   : > { %v4817_v54 = vadd.f32 %v4816_v19, %v4798_v55 }
 0x3d6   : > { %v4802_v50 = vpop.f32.mrf.mxu0 }
 0x3d7   : > { %v4803_v39 = vadd.f32 %v4802_v50, %v4063_v7 }
 0x3d8   : > { %v4759_v36 = vpop.f32.mrf.mxu2 }
 0x3d9   : > { %v4760_v34 = vadd.f32 %v4759_v36, %v4741_v37 }
 0x3da   : > { %v4819_v8 = vpop.f32.mrf.mxu1 }
 0x3db   : > { %v4820_v60 = vadd.f32 %v4819_v8, %v4801_v56 }
 0x3dd   : > { %5008 = vmatmul.bf16.gmra.mxu3 %v10248_v13 }
 0x3e0   : > { %v4762_v47 = vpop.f32.mrf.mxu2 }
 0x3e1   : > { %v4763_v32 = vadd.f32 %v4762_v47, %v4744_v11  ;;  %v4871_v47 = vpop.f32.mrf.mxu0 }
 0x3e2   : > { %v4821_v58 = vpop.f32.mrf.mxu1 }
 0x3e3   : > { %v4822_v37 = vadd.f32 %v4821_v58, %v4803_v39 }
 0x3e8   : > { %v4764_v28 = vpop.f32.mrf.mxu2 }
 0x3e9   : > { %v4765_v12 = vadd.f32 %v4764_v28, %v4746_v5  ;;  %v4873_v51 = vpop.f32.mrf.mxu0 }
 0x3eb   : > { %v4890_v23 = vpop.f32.mrf.mxu1 }
 0x3f0   : > { %v4776_v6 = vpop.f32.mrf.mxu3  ;;  %v4833_v52 = vpop.f32.mrf.mxu2 }
 0x3f1   : > { %v4777_v30 = vadd.f32 %v4776_v6, %v4758_v10  ;;  %v4834_v29 = vadd.f32 %v4833_v52, %v4815_v2 }
 0x3f3   : > { %vm5014_vm8 = vcmp.ge.f32.partialorder %v4777_v30, 0.0  ;;  %v5030_v13 = vmul.f32 0.2, %v4777_v30 }
 0x3f5   : > { %v5046_v53 = vsel %vm5014_vm8, %v4777_v30, %v5030_v13 }
 0x3f6   : > { %v5062_v20 = vmul.f32 1.4142135, %v5046_v53 }
 0x3f8   : > { %5078 = vst [vmem:[%s10307_s4] sm:$0xff] %v5062_v20  ;;  %v4778_v24 = vpop.f32.mrf.mxu3  ;;  %v4835_v49 = vpop.f32.mrf.mxu2 }
 0x3f9   : > { %v4779_v40 = vadd.f32 %v4778_v24, %v4760_v34  ;;  %v4836_v36 = vadd.f32 %v4835_v49, %v4817_v54  ;;  %v4892_v20 = vpop.f32.mrf.mxu1  ;;  %v4064_v34 = vperm.slane %v10299_v45, 2 }
 0x3fb   : > { %vm5018_vm9 = vcmp.ge.f32.partialorder %v4779_v40, 0.0  ;;  %v5034_v33 = vmul.f32 0.2, %v4779_v40  ;;  %v4872_v25 = vadd.f32 %v4871_v47, %v4064_v34  ;;  %v4874_v5 = vadd.f32 %v4873_v51, %v4064_v34 }
 0x3fd   : > { %v5050_v46 = vsel %vm5018_vm9, %v4779_v40, %v5034_v33  ;;  %v4893_v63 = vadd.f32 %v4892_v20, %v4874_v5 }
 0x3fe   : > { %v5066_v4 = vmul.f32 1.4142135, %v5050_v46  ;;  %v4891_v46 = vadd.f32 %v4890_v23, %v4872_v25 }
 0x400   : > { %5082 = vst [vmem:[%s10307_s4 + $0x20] sm:$0xff] %v5066_v4  ;;  %v4781_v15 = vpop.f32.mrf.mxu3  ;;  %v4838_v16 = vpop.f32.mrf.mxu2 }
 0x401   : > { %v4782_v21 = vadd.f32 %v4781_v15, %v4763_v32  ;;  %v4839_v6 = vadd.f32 %v4838_v16, %v4820_v60  ;;  %v4876_v4 = vpop.f32.mrf.mxu0  ;;  %v4895_v15 = vpop.f32.mrf.mxu1 }
 0x402   : > { %v4877_v31 = vadd.f32 %v4876_v4, %v4064_v34 }
 0x403   : > { %vm5022_vm10 = vcmp.ge.f32.partialorder %v4782_v21, 0.0  ;;  %v5038_v14 = vmul.f32 0.2, %v4782_v21 }
 0x405   : > { %v5054_v38 = vsel %vm5022_vm10, %v4782_v21, %v5038_v14 }
 0x406   : > { %v5070_v9 = vmul.f32 1.4142135, %v5054_v38 }
 0x408   : > { %5086 = vst [vmem:[%s10307_s4 + $0x40] sm:$0xff] %v5070_v9  ;;  %v4783_v42 = vpop.f32.mrf.mxu3  ;;  %v4840_v35 = vpop.f32.mrf.mxu2 }
 0x409   : > { %v4784_v18 = vadd.f32 %v4783_v42, %v4765_v12  ;;  %v4841_v24 = vadd.f32 %v4840_v35, %v4822_v37  ;;  %v4878_v8 = vpop.f32.mrf.mxu0  ;;  %v4897_v16 = vpop.f32.mrf.mxu1 }
 0x40a   : > { %v4879_v55 = vadd.f32 %v4878_v8, %v4064_v34 }
 0x40b   : > { %vm5026_vm11 = vcmp.ge.f32.partialorder %v4784_v18, 0.0  ;;  %v5042_v1 = vmul.f32 0.2, %v4784_v18 }
 0x40c   : > { %v4898_v54 = vadd.f32 %v4897_v16, %v4879_v55 }
 0x40d   : > { %v5058_v62 = vsel %vm5026_vm11, %v4784_v18, %v5042_v1 }
 0x40e   : > { %v5074_v27 = vmul.f32 1.4142135, %v5058_v62  ;;  %v4896_v62 = vadd.f32 %v4895_v15, %v4877_v31 }
 0x410   : > { %5090 = vst [vmem:[%s10307_s4 + $0x60] sm:$0xff] %v5074_v27  ;;  %v4852_v26 = vpop.f32.mrf.mxu3  ;;  %v4909_v22 = vpop.f32.mrf.mxu2 }
 0x411   : > { %v4853_v17 = vadd.f32 %v4852_v26, %v4834_v29  ;;  %v4910_v49 = vadd.f32 %v4909_v22, %v4891_v46  ;;  %v4947_v58 = vpop.f32.mrf.mxu0  ;;  %v4966_v35 = vpop.f32.mrf.mxu1 }
 0x413   : > { %vm5015_vm12 = vcmp.ge.f32.partialorder %v4853_v17, 0.0  ;;  %v5031_v43 = vmul.f32 0.2, %v4853_v17 }
 0x415   : > { %v5047_v0 = vsel %vm5015_vm12, %v4853_v17, %v5031_v43 }
 0x416   : > { %v5063_v59 = vmul.f32 1.4142135, %v5047_v0 }
 0x418   : > { %5079 = vst [vmem:[%s10307_s4 + $0x8] sm:$0xff] %v5063_v59  ;;  %v4854_v44 = vpop.f32.mrf.mxu3  ;;  %v4911_v40 = vpop.f32.mrf.mxu2 }
 0x419   : > { %v4855_v48 = vadd.f32 %v4854_v44, %v4836_v36  ;;  %v4912_v12 = vadd.f32 %v4911_v40, %v4893_v63  ;;  %v4065_v44 = vperm.slane %v10299_v45, 3  ;;  %v4949_v60 = vpop.f32.mrf.mxu0 }
 0x41b   : > { %vm5019_vm13 = vcmp.ge.f32.partialorder %v4855_v48, 0.0  ;;  %v5035_v57 = vmul.f32 0.2, %v4855_v48  ;;  %v4950_v51 = vadd.f32 %v4949_v60, %v4065_v44 }
 0x41d   : > { %v5051_v28 = vsel %vm5019_vm13, %v4855_v48, %v5035_v57  ;;  %v4948_v57 = vadd.f32 %v4947_v58, %v4065_v44 }
 0x41e   : > { %v5067_v10 = vmul.f32 1.4142135, %v5051_v28 }
 0x41f   : > { %v4967_v28 = vadd.f32 %v4966_v35, %v4948_v57 }
 0x420   : > { %5083 = vst [vmem:[%s10307_s4 + $0x28] sm:$0xff] %v5067_v10  ;;  %v4857_v30 = vpop.f32.mrf.mxu3  ;;  %v4914_v14 = vpop.f32.mrf.mxu2 }
 0x421   : > { %v4858_v41 = vadd.f32 %v4857_v30, %v4839_v6  ;;  %v4915_v50 = vadd.f32 %v4914_v14, %v4896_v62  ;;  %v4968_v10 = vpop.f32.mrf.mxu1  ;;  %v4952_v20 = vpop.f32.mrf.mxu0 }
 0x422   : > { %v4969_v37 = vadd.f32 %v4968_v10, %v4950_v51  ;;  %v4953_v25 = vadd.f32 %v4952_v20, %v4065_v44 }
 0x423   : > { %vm5023_vm14 = vcmp.ge.f32.partialorder %v4858_v41, 0.0  ;;  %v5039_v13 = vmul.f32 0.2, %v4858_v41 }
 0x425   : > { %v5055_v53 = vsel %vm5023_vm14, %v4858_v41, %v5039_v13 }
 0x426   : > { %v5071_v52 = vmul.f32 1.4142135, %v5055_v53 }
 0x428   : > { %5087 = vst [vmem:[%s10307_s4 + $0x48] sm:$0xff] %v5071_v52  ;;  %v4859_v3 = vpop.f32.mrf.mxu3  ;;  %v4916_v2 = vpop.f32.mrf.mxu2 }
 0x429   : > { %v4860_v33 = vadd.f32 %v4859_v3, %v4841_v24  ;;  %v4917_v48 = vadd.f32 %v4916_v2, %v4898_v54  ;;  %v4971_v24 = vpop.f32.mrf.mxu1 }
 0x42a   : > { %v4972_v46 = vadd.f32 %v4971_v24, %v4953_v25 }
 0x42b   : > { %vm5027_vm15 = vcmp.ge.f32.partialorder %v4860_v33, 0.0  ;;  %v5043_v11 = vmul.f32 0.2, %v4860_v33 }
 0x42d   : > { %v5059_v19 = vsel %vm5027_vm15, %v4860_v33, %v5043_v11 }
 0x42e   : > { %v5075_v32 = vmul.f32 1.4142135, %v5059_v19 }
 0x430   : > { %5091 = vst [vmem:[%s10307_s4 + $0x68] sm:$0xff] %v5075_v32  ;;  %v4928_v21 = vpop.f32.mrf.mxu3  ;;  %v4985_v59 = vpop.f32.mrf.mxu2 }
 0x431   : > { %v4929_v61 = vadd.f32 %v4928_v21, %v4910_v49  ;;  %v4986_v30 = vadd.f32 %v4985_v59, %v4967_v28  ;;  %v4954_v49 = vpop.f32.mrf.mxu0 }
 0x432   : > { %v4955_v14 = vadd.f32 %v4954_v49, %v4065_v44 }
 0x433   : > { %vm5016_vm0 = vcmp.ge.f32.partialorder %v4929_v61, 0.0  ;;  %v5032_v38 = vmul.f32 0.2, %v4929_v61 }
 0x435   : > { %v5048_v9 = vsel %vm5016_vm0, %v4929_v61, %v5032_v38  ;;  %v4973_v61 = vpop.f32.mrf.mxu1 }
 0x436   : > { %v5064_v7 = vmul.f32 1.4142135, %v5048_v9  ;;  %v4974_v63 = vadd.f32 %v4973_v61, %v4955_v14 }
 0x438   : > { %5080 = vst [vmem:[%s10307_s4 + $0x10] sm:$0xff] %v5064_v7  ;;  %v4930_v42 = vpop.f32.mrf.mxu3  ;;  %v4987_v41 = vpop.f32.mrf.mxu2 }
 0x439   : > { %v4931_v18 = vadd.f32 %v4930_v42, %v4912_v12  ;;  %v4988_v34 = vadd.f32 %v4987_v41, %v4969_v37 }
 0x43b   : > { %vm5020_vm1 = vcmp.ge.f32.partialorder %v4931_v18, 0.0  ;;  %v5036_v1 = vmul.f32 0.2, %v4931_v18 }
 0x43d   : > { %v5052_v27 = vsel %vm5020_vm1, %v4931_v18, %v5036_v1 }
 0x43e   : > { %v5068_v29 = vmul.f32 1.4142135, %v5052_v27 }
 0x440   : > { %5084 = vst [vmem:[%s10307_s4 + $0x30] sm:$0xff] %v5068_v29  ;;  %v4933_v26 = vpop.f32.mrf.mxu3  ;;  %v4990_v33 = vpop.f32.mrf.mxu2 }
 0x441   : > { %v4934_v17 = vadd.f32 %v4933_v26, %v4915_v50  ;;  %v4991_v32 = vadd.f32 %v4990_v33, %v4972_v46 }
 0x443   : > { %vm5024_vm2 = vcmp.ge.f32.partialorder %v4934_v17, 0.0  ;;  %v5040_v43 = vmul.f32 0.2, %v4934_v17 }
 0x445   : > { %v5056_v0 = vsel %vm5024_vm2, %v4934_v17, %v5040_v43 }
 0x446   : > { %v5072_v36 = vmul.f32 1.4142135, %v5056_v0 }
 0x448   : > { %5088 = vst [vmem:[%s10307_s4 + $0x50] sm:$0xff] %v5072_v36  ;;  %v4935_v47 = vpop.f32.mrf.mxu3  ;;  %v4992_v38 = vpop.f32.mrf.mxu2 }
 0x449   : > { %v4936_v56 = vadd.f32 %v4935_v47, %v4917_v48  ;;  %v4993_v12 = vadd.f32 %v4992_v38, %v4974_v63 }
 0x44b   : > { %vm5028_vm3 = vcmp.ge.f32.partialorder %v4936_v56, 0.0  ;;  %v5044_v23 = vmul.f32 0.2, %v4936_v56 }
 0x44d   : > { %v5060_v22 = vsel %vm5028_vm3, %v4936_v56, %v5044_v23 }
 0x44e   : > { %v5076_v6 = vmul.f32 1.4142135, %v5060_v22 }
 0x450   : > { %5092 = vst [vmem:[%s10307_s4 + $0x70] sm:$0xff] %v5076_v6  ;;  %v5004_v39 = vpop.f32.mrf.mxu3 }
 0x451   : > { %v5005_v13 = vadd.f32 %v5004_v39, %v4986_v30 }
 0x453   : > { %vm5017_vm4 = vcmp.ge.f32.partialorder %v5005_v13, 0.0  ;;  %v5033_v45 = vmul.f32 0.2, %v5005_v13 }
 0x455   : > { %v5049_v53 = vsel %vm5017_vm4, %v5005_v13, %v5033_v45 }
 0x456   : > { %v5065_v52 = vmul.f32 1.4142135, %v5049_v53 }
 0x458   : > { %5081 = vst [vmem:[%s10307_s4 + $0x18] sm:$0xff] %v5065_v52  ;;  %v5006_v40 = vpop.f32.mrf.mxu3 }
 0x459   : > { %v5007_v3 = vadd.f32 %v5006_v40, %v4988_v34 }
 0x45b   : > { %vm5021_vm5 = vcmp.ge.f32.partialorder %v5007_v3, 0.0  ;;  %v5037_v11 = vmul.f32 0.2, %v5007_v3 }
 0x45d   : > { %v5053_v19 = vsel %vm5021_vm5, %v5007_v3, %v5037_v11 }
 0x45e   : > { %v5069_v4 = vmul.f32 1.4142135, %v5053_v19 }
 0x460   : > { %5085 = vst [vmem:[%s10307_s4 + $0x38] sm:$0xff] %v5069_v4  ;;  %v5009_v15 = vpop.f32.mrf.mxu3 }
 0x461   : > { %v5010_v21 = vadd.f32 %v5009_v15, %v4991_v32 }
 0x463   : > { %vm5025_vm6 = vcmp.ge.f32.partialorder %v5010_v21, 0.0  ;;  %v5041_v5 = vmul.f32 0.2, %v5010_v21 }
 0x465   : > { %v5057_v9 = vsel %vm5025_vm6, %v5010_v21, %v5041_v5 }
 0x466   : > { %v5073_v7 = vmul.f32 1.4142135, %v5057_v9 }
 0x468   : > { %5089 = vst [vmem:[%s10307_s4 + $0x58] sm:$0xff] %v5073_v7  ;;  %v5011_v8 = vpop.f32.mrf.mxu3 }
 0x469   : > { %v5012_v42 = vadd.f32 %v5011_v8, %v4993_v12 }
 0x46b   : > { %vm5029_vm7 = vcmp.ge.f32.partialorder %v5012_v42, 0.0  ;;  %v5045_v18 = vmul.f32 0.2, %v5012_v42 }
 0x46d   : > { %v5061_v16 = vsel %vm5029_vm7, %v5012_v42, %v5045_v18 }
 0x46e   : > { %v5077_v31 = vmul.f32 1.4142135, %v5061_v16 }
 0x470   : > { %5093 = vst [vmem:[%s10307_s4 + $0x78] sm:$0xff] %v5077_v31 }
 0x471 PF: > { %p16_p5 = scmp.ge.s32.totalorder %s8370_s17, 5   ;;  %s10357_s12 = smov %s8314_s13 }
 0x472   : > { %s10358_s13 = smov %s8318_s14  ;;  %s10359_s14 = smov %s8380_s20 }
 0x473   : > { %s10360_s15 = smov %s8370_s17  ;;  %18 = sbr.rel (!%p16_p5) target bundleno = 5 (0x5), region = 91 }
 0x478   :  { %5115 = vsyncpa [#allocation3], 1 }
 0x479   :  { %5117 = vsyncpa [#allocation3 + $0x1], 1 }
 0x47a   :  { %5118 = vsyncpa [#allocation5], 1 }
 0x47b   :  { %5120 = vsyncpa [#allocation5 + $0x1], 1 }

</bundles_post_ra>
